<compile_context>
chip_gen: v5e
topology: v5e:2x2
jax: 0.10.0
libtpu: 0.0.40
codegen_flags: <defaults>
</compile_context>

<pallas_src>
import jax
import jax.numpy as jnp
from jax import lax
from jax.experimental import pallas as pl
from jax.experimental.pallas import tpu as pltpu


_DILATIONS = (1, 3, 9)
_K_RU = 7          # ResidualUnit conv kernel size
_MARGIN = 128      # lane-aligned left margin inside padded VMEM scratch


# ------------------------------------------------------------------ kernel --

def _make_decoder_block_kernel(C_in, C_out, L_in, L_out):
    half = (_K_RU - 1) // 2            # 3

    def kernel(x_ref, a0_ref, ia0_ref, we_ref, wo_ref, bt_ref,
               ra1_ref, ria1_ref, rw1_ref, rb1_ref,
               ra2_ref, ria2_ref, rw2_ref, rb2_ref,
               o_ref,
               spad_ref, tcol_ref, hpad_ref, imcol_ref):
        f32 = jnp.float32

        # Zero the padded scratch once per grid step; only the central data
        # window is rewritten afterwards, so the margins stay zero and supply
        # every conv's boundary zeros.
        spad_ref[...] = jnp.zeros_like(spad_ref)
        hpad_ref[...] = jnp.zeros_like(hpad_ref)

        # ---- Snake1d(C_in):  x + 1/(alpha+1e-9) * sin(alpha*x)^2 ----------
        x = x_ref[0].astype(f32)                                    # (C_in, L_in)
        s = x + ia0_ref[...] * jnp.square(jnp.sin(a0_ref[...] * x))

        # ---- ConvTranspose1d(C_in->C_out, K=4, stride=2, pad=1), polyphase -
        #   y[2m]   = W3^T s_pad[m]   + W1^T s_pad[m+1]
        #   y[2m+1] = W2^T s_pad[m+1] + W0^T s_pad[m+2]   with s_pad = [0, s, 0]
        spad_ref[:, _MARGIN:_MARGIN + L_in] = s
        sp = spad_ref[...]

        tcol_ref[:C_in, :] = sp[:, _MARGIN - 1:_MARGIN - 1 + L_in]    # s_pad[m]
        tcol_ref[C_in:, :] = sp[:, _MARGIN:_MARGIN + L_in]            # s_pad[m+1]
        y_even = jnp.dot(we_ref[...], tcol_ref[...],
                         preferred_element_type=f32)                  # (C_out, L_in)

        tcol_ref[:C_in, :] = sp[:, _MARGIN:_MARGIN + L_in]            # s_pad[m+1]
        tcol_ref[C_in:, :] = sp[:, _MARGIN + 1:_MARGIN + 1 + L_in]    # s_pad[m+2]
        y_odd = jnp.dot(wo_ref[...], tcol_ref[...],
                        preferred_element_type=f32)                   # (C_out, L_in)

        # Interleave even/odd phases along lanes with two scatter matmuls.
        rows = lax.broadcasted_iota(jnp.int32, (L_in, L_out), 0)
        cols = lax.broadcasted_iota(jnp.int32, (L_in, L_out), 1)
        even_sel = (cols == 2 * rows).astype(f32)
        odd_sel = (cols == 2 * rows + 1).astype(f32)
        y = (jnp.dot(y_even, even_sel, preferred_element_type=f32)
             + jnp.dot(y_odd, odd_sel, preferred_element_type=f32)
             + bt_ref[...])                                           # (C_out, L_out)

        # ---- 3x ResidualUnit(C_out, dilation d) ----------------------------
        for i, d in enumerate(_DILATIONS):
            h = y + ria1_ref[i] * jnp.square(jnp.sin(ra1_ref[i] * y))
            hpad_ref[:, _MARGIN:_MARGIN + L_out] = h
            hp = hpad_ref[...]
            # im2col slab -> ONE (C_out, 7*C_out) @ (7*C_out, L_out) matmul.
            for k in range(_K_RU):
                start = _MARGIN + (k - half) * d
                imcol_ref[k * C_out:(k + 1) * C_out, :] = hp[:, start:start + L_out]
            c1 = jnp.dot(rw1_ref[i], imcol_ref[...],
                         preferred_element_type=f32) + rb1_ref[i]
            h2 = c1 + ria2_ref[i] * jnp.square(jnp.sin(ra2_ref[i] * c1))
            y = y + jnp.dot(rw2_ref[i], h2,
                            preferred_element_type=f32) + rb2_ref[i]

        o_ref[0] = y.astype(o_ref.dtype)

    return kernel


# ----------------------------------------------------------------- wrapper --

def prepare_params(params, stride=2):
    """One-time layout prep (hoisted out of the forward path)."""
    assert stride == 2, "fused kernel implements the stride=2 DecoderBlock"
    C_out = params["bt"].shape[0]
    f32 = jnp.float32

    def col(v):                              # per-channel vector -> (C, 1)
        return v.reshape(-1, 1).astype(f32)

    wt = params["wt"].astype(f32)            # torch layout (C_in, C_out, 4)
    # polyphase split (by output parity) of the transposed conv taps
    w_even = jnp.concatenate([wt[:, :, 3].T, wt[:, :, 1].T], axis=1)  # (C_out, 2*C_in)
    w_odd = jnp.concatenate([wt[:, :, 2].T, wt[:, :, 0].T], axis=1)

    ru = params["ru"]
    return {
        "alpha0": col(params["alpha0"]),
        "inv_alpha0": col(1.0 / (params["alpha0"] + 1e-9)),
        "w_even": w_even,
        "w_odd": w_odd,
        "bt": col(params["bt"]),
        "ru_alpha1": jnp.stack([col(r["alpha1"]) for r in ru]),
        "ru_inv_alpha1": jnp.stack([col(1.0 / (r["alpha1"] + 1e-9)) for r in ru]),
        # torch conv weight (C_out, C_in, 7) -> im2col layout (C_out, 7*C_in)
        "ru_w1": jnp.stack([
            jnp.transpose(r["w1"].astype(f32), (0, 2, 1)).reshape(C_out, _K_RU * C_out)
            for r in ru]),
        "ru_b1": jnp.stack([col(r["b1"]) for r in ru]),
        "ru_alpha2": jnp.stack([col(r["alpha2"]) for r in ru]),
        "ru_inv_alpha2": jnp.stack([col(1.0 / (r["alpha2"] + 1e-9)) for r in ru]),
        "ru_w2": jnp.stack([r["w2"][:, :, 0].astype(f32) for r in ru]),
        "ru_b2": jnp.stack([col(r["b2"]) for r in ru]),
    }


def decoder_block_forward(x_ncl, prep):
    """x_ncl: (B, C_in, L) PyTorch NCL layout. Returns (B, C_out, 2*L)."""
    B, C_in, L_in = x_ncl.shape
    C_out = prep["bt"].shape[0]
    L_out = 2 * L_in

    kernel = _make_decoder_block_kernel(C_in, C_out, L_in, L_out)

    c2 = lambda b: (0, 0)
    c3 = lambda b: (0, 0, 0)
    in_specs = [
        pl.BlockSpec((1, C_in, L_in), lambda b: (b, 0, 0)),      # x
        pl.BlockSpec((C_in, 1), c2),                             # alpha0
        pl.BlockSpec((C_in, 1), c2),                             # inv_alpha0
        pl.BlockSpec((C_out, 2 * C_in), c2),                     # w_even
        pl.BlockSpec((C_out, 2 * C_in), c2),                     # w_odd
        pl.BlockSpec((C_out, 1), c2),                            # bt
        pl.BlockSpec((3, C_out, 1), c3),                         # ru alpha1
        pl.BlockSpec((3, C_out, 1), c3),                         # ru inv_alpha1
        pl.BlockSpec((3, C_out, _K_RU * C_out), c3),             # ru w1 (im2col)
        pl.BlockSpec((3, C_out, 1), c3),                         # ru b1
        pl.BlockSpec((3, C_out, 1), c3),                         # ru alpha2
        pl.BlockSpec((3, C_out, 1), c3),                         # ru inv_alpha2
        pl.BlockSpec((3, C_out, C_out), c3),                     # ru w2
        pl.BlockSpec((3, C_out, 1), c3),                         # ru b2
    ]
    out_specs = pl.BlockSpec((1, C_out, L_out), lambda b: (b, 0, 0))

    spad_w = _MARGIN + L_in + 1
    hpad_w = _MARGIN + L_out + ((_K_RU - 1) // 2) * max(_DILATIONS)
    scratch_shapes = [
        pltpu.VMEM((C_in, spad_w), jnp.float32),            # padded snake(x)
        pltpu.VMEM((2 * C_in, L_in), jnp.float32),           # polyphase 2-tap slab
        pltpu.VMEM((C_out, hpad_w), jnp.float32),            # padded snake(y)
        pltpu.VMEM((_K_RU * C_out, L_out), jnp.float32),     # 7-tap im2col slab
    ]

    return pl.pallas_call(
        kernel,
        out_shape=jax.ShapeDtypeStruct((B, C_out, L_out), jnp.float32),
        grid_spec=pltpu.PrefetchScalarGridSpec(
            num_scalar_prefetch=0,
            grid=(B,),
            in_specs=in_specs,
            out_specs=out_specs,
            scratch_shapes=scratch_shapes,
        ),
        compiler_params=pltpu.CompilerParams(
            dimension_semantics=("parallel",),      # v7x: batch across 2 TCs
        ),
    )(
        x_ncl.astype(jnp.float32),
        prep["alpha0"], prep["inv_alpha0"],
        prep["w_even"], prep["w_odd"], prep["bt"],
        prep["ru_alpha1"], prep["ru_inv_alpha1"], prep["ru_w1"], prep["ru_b1"],
        prep["ru_alpha2"], prep["ru_inv_alpha2"], prep["ru_w2"], prep["ru_b2"],
    )


# ------------------------------------------------- params + JAX reference --

def init_decoder_block_params(key, input_dim=16, output_dim=8, stride=2):
    """Deterministic synthetic parameters matching the PyTorch module shapes."""
    keys = jax.random.split(key, 16)
    it = iter(keys)
    scale = 0.1

    def rnd(shape):
        return scale * jax.random.normal(next(it), shape, dtype=jnp.float32)

    params = {
        "alpha0": jnp.ones((input_dim,), jnp.float32),            # Snake1d alpha
        "wt": rnd((input_dim, output_dim, 2 * stride)),           # torch (Cin,Cout,K)
        "bt": rnd((output_dim,)),
        "ru": [],
    }
    for _d in _DILATIONS:
        params["ru"].append({
            "alpha1": jnp.ones((output_dim,), jnp.float32),
            "w1": rnd((output_dim, output_dim, _K_RU)),           # torch (Cout,Cin,7)
            "b1": rnd((output_dim,)),
            "alpha2": jnp.ones((output_dim,), jnp.float32),
            "w2": rnd((output_dim, output_dim, 1)),               # torch (Cout,Cin,1)
            "b2": rnd((output_dim,)),
        })
    return params


def _reference_forward(x_ncl, params, stride=2):
    """Pure-JAX/XLA reference of the PyTorch DecoderBlock (for validation)."""
    hi = lax.Precision.HIGHEST

    def snake(x, alpha):                       # x: (B, L, C); alpha: (C,)
        a = alpha.reshape(1, 1, -1)
        return x + (1.0 / (a + 1e-9)) * jnp.sin(a * x) ** 2

    def conv1d(x, w, b, dilation):             # w: torch layout (C_out, C_in, K)
        K = w.shape[-1]
        L_o = x.shape[1] - (K - 1) * dilation
        acc = jnp.zeros((x.shape[0], L_o, w.shape[0]), jnp.float32) + b.reshape(1, 1, -1)
        for k in range(K):
            acc = acc + jnp.dot(x[:, k * dilation:k * dilation + L_o, :],
                                w[:, :, k].T, precision=hi)
        return acc

    x = jnp.transpose(x_ncl, (0, 2, 1)).astype(jnp.float32)       # (B, L, C_in)
    B, L, _ = x.shape
    K = 2 * stride
    p = stride // 2

    s = snake(x, params["alpha0"])
    # transposed conv == zero-stuff by stride, pad K-1-p, conv with flipped taps
    up = jnp.zeros((B, L, stride, s.shape[-1]), jnp.float32).at[:, :, 0, :].set(s)
    up = up.reshape(B, L * stride, -1)[:, :(L - 1) * stride + 1, :]
    up = jnp.pad(up, ((0, 0), (K - 1 - p, K - 1 - p), (0, 0)))
    w_conv = jnp.transpose(jnp.flip(params["wt"], axis=2), (1, 0, 2))
    y = conv1d(up, w_conv, params["bt"], 1)

    for ru, d in zip(params["ru"], _DILATIONS):
        h = snake(y, ru["alpha1"])
        h = jnp.pad(h, ((0, 0), (3 * d, 3 * d), (0, 0)))
        c1 = conv1d(h, ru["w1"], ru["b1"], d)
        h2 = snake(c1, ru["alpha2"])
        y = y + conv1d(h2, ru["w2"], ru["b2"], 1)

    return jnp.transpose(y, (0, 2, 1))                            # (B, C_out, L_out)


# --------------------------------------------------------------------- main --

if __name__ == "__main__":
    B, INPUT_DIM, OUTPUT_DIM, L, STRIDE = 2, 16, 8, 16, 2

    key = jax.random.PRNGKey(0)
    k_x, k_p = jax.random.split(key)
    x = jax.random.normal(k_x, (B, INPUT_DIM, L), dtype=jnp.float32)   # PyTorch NCL
    params = init_decoder_block_params(k_p, INPUT_DIM, OUTPUT_DIM, STRIDE)

    prep = prepare_params(params, STRIDE)          # one-time weight/layout prep
    fwd = jax.jit(decoder_block_forward)
    out = jax.block_until_ready(fwd(x, prep))

    expected_L = (L - 1) * STRIDE - 2 * (STRIDE // 2) + 2 * STRIDE
    assert out.shape == (B, OUTPUT_DIM, expected_L), out.shape
    assert bool(jnp.all(jnp.isfinite(out)))

    ref = _reference_forward(x, params, STRIDE)
    max_err = float(jnp.max(jnp.abs(out - ref)))
    assert max_err < 1e-4, f"mismatch vs reference: {max_err}"

    print("KERNEL_OK")
</pallas_src>

<mosaic_0001>
module attributes {stable_mosaic.version = 11 : i64} {
  func.func @kernel(%arg0: i32, %arg1: memref<1x16x16xf32, #tpu.memory_space<vmem>>, %arg2: memref<16x1xf32, #tpu.memory_space<vmem>>, %arg3: memref<16x1xf32, #tpu.memory_space<vmem>>, %arg4: memref<8x32xf32, #tpu.memory_space<vmem>>, %arg5: memref<8x32xf32, #tpu.memory_space<vmem>>, %arg6: memref<8x1xf32, #tpu.memory_space<vmem>>, %arg7: memref<3x8x1xf32, #tpu.memory_space<vmem>>, %arg8: memref<3x8x1xf32, #tpu.memory_space<vmem>>, %arg9: memref<3x8x56xf32, #tpu.memory_space<vmem>>, %arg10: memref<3x8x1xf32, #tpu.memory_space<vmem>>, %arg11: memref<3x8x1xf32, #tpu.memory_space<vmem>>, %arg12: memref<3x8x1xf32, #tpu.memory_space<vmem>>, %arg13: memref<3x8x8xf32, #tpu.memory_space<vmem>>, %arg14: memref<3x8x1xf32, #tpu.memory_space<vmem>>, %arg15: memref<1x8x32xf32, #tpu.memory_space<vmem>>, %arg16: memref<16x145xf32, #tpu.memory_space<vmem>>, %arg17: memref<32x16xf32, #tpu.memory_space<vmem>>, %arg18: memref<8x187xf32, #tpu.memory_space<vmem>>, %arg19: memref<56x32xf32, #tpu.memory_space<vmem>>) attributes {dimension_semantics = [#tpu.dimension_semantics<parallel>], iteration_bounds = array<i64: 2>, scalar_prefetch = 0 : i64, scratch_operands = 4 : i64, tpu.core_type = #tpu.core_type<tc>, window_params = [{transform_indices = @transform_0, window_bounds = array<i64: 1, 16, 16>}, {pipeline_mode = #tpu.pipeline_mode<synchronous>, transform_indices = @transform_1, window_bounds = array<i64: 16, 1>}, {pipeline_mode = #tpu.pipeline_mode<synchronous>, transform_indices = @transform_2, window_bounds = array<i64: 16, 1>}, {pipeline_mode = #tpu.pipeline_mode<synchronous>, transform_indices = @transform_3, window_bounds = array<i64: 8, 32>}, {pipeline_mode = #tpu.pipeline_mode<synchronous>, transform_indices = @transform_4, window_bounds = array<i64: 8, 32>}, {pipeline_mode = #tpu.pipeline_mode<synchronous>, transform_indices = @transform_5, window_bounds = array<i64: 8, 1>}, {pipeline_mode = #tpu.pipeline_mode<synchronous>, transform_indices = @transform_6, window_bounds = array<i64: 3, 8, 1>}, {pipeline_mode = #tpu.pipeline_mode<synchronous>, transform_indices = @transform_7, window_bounds = array<i64: 3, 8, 1>}, {pipeline_mode = #tpu.pipeline_mode<synchronous>, transform_indices = @transform_8, window_bounds = array<i64: 3, 8, 56>}, {pipeline_mode = #tpu.pipeline_mode<synchronous>, transform_indices = @transform_9, window_bounds = array<i64: 3, 8, 1>}, {pipeline_mode = #tpu.pipeline_mode<synchronous>, transform_indices = @transform_10, window_bounds = array<i64: 3, 8, 1>}, {pipeline_mode = #tpu.pipeline_mode<synchronous>, transform_indices = @transform_11, window_bounds = array<i64: 3, 8, 1>}, {pipeline_mode = #tpu.pipeline_mode<synchronous>, transform_indices = @transform_12, window_bounds = array<i64: 3, 8, 8>}, {pipeline_mode = #tpu.pipeline_mode<synchronous>, transform_indices = @transform_13, window_bounds = array<i64: 3, 8, 1>}, {transform_indices = @transform_14, window_bounds = array<i64: 1, 8, 32>}]} {
    %cst = arith.constant 0.000000e+00 : f32
    %0 = vector.broadcast %cst : f32 to vector<16x145xf32>
    %c0 = arith.constant 0 : index
    %c0_0 = arith.constant 0 : index
    %1 = vector.load %arg16[%c0, %c0_0] : memref<16x145xf32, #tpu.memory_space<vmem>>, vector<16x145xf32>
    tpu.vector_store %arg16[%c0, %c0_0], %0 {strides = array<i32>} : memref<16x145xf32, #tpu.memory_space<vmem>>, vector<16x145xf32>,
    %cst_1 = arith.constant 0.000000e+00 : f32
    %2 = vector.broadcast %cst_1 : f32 to vector<8x187xf32>
    %c0_2 = arith.constant 0 : index
    %c0_3 = arith.constant 0 : index
    %3 = vector.load %arg18[%c0_2, %c0_3] : memref<8x187xf32, #tpu.memory_space<vmem>>, vector<8x187xf32>
    tpu.vector_store %arg18[%c0_2, %c0_3], %2 {strides = array<i32>} : memref<8x187xf32, #tpu.memory_space<vmem>>, vector<8x187xf32>,
    %c0_4 = arith.constant 0 : index
    %c0_5 = arith.constant 0 : index
    %c0_6 = arith.constant 0 : index
    %4 = vector.load %arg1[%c0_4, %c0_5, %c0_6] : memref<1x16x16xf32, #tpu.memory_space<vmem>>, vector<1x16x16xf32>
    %5 = vector.shape_cast %4 : vector<1x16x16xf32> to vector<16x16xf32>
    %c0_7 = arith.constant 0 : index
    %c0_8 = arith.constant 0 : index
    %6 = vector.load %arg3[%c0_7, %c0_8] : memref<16x1xf32, #tpu.memory_space<vmem>>, vector<16x1xf32>
    %c0_9 = arith.constant 0 : index
    %c0_10 = arith.constant 0 : index
    %7 = vector.load %arg2[%c0_9, %c0_10] : memref<16x1xf32, #tpu.memory_space<vmem>>, vector<16x1xf32>
    %8 = vector.broadcast %7 : vector<16x1xf32> to vector<16x16xf32>
    %9 = arith.mulf %8, %5 : vector<16x16xf32>
    %10 = math.sin %9 : vector<16x16xf32>
    %11 = arith.mulf %10, %10 : vector<16x16xf32>
    %12 = vector.broadcast %6 : vector<16x1xf32> to vector<16x16xf32>
    %13 = arith.mulf %12, %11 : vector<16x16xf32>
    %14 = arith.addf %5, %13 : vector<16x16xf32>
    %c0_11 = arith.constant 0 : index
    %c128 = arith.constant 128 : index
    %15 = vector.load %arg16[%c0_11, %c128] : memref<16x145xf32, #tpu.memory_space<vmem>>, vector<16x16xf32>
    tpu.vector_store %arg16[%c0_11, %c128], %14 {strides = array<i32>} : memref<16x145xf32, #tpu.memory_space<vmem>>, vector<16x16xf32>,
    %c0_12 = arith.constant 0 : index
    %c0_13 = arith.constant 0 : index
    %16 = vector.load %arg16[%c0_12, %c0_13] : memref<16x145xf32, #tpu.memory_space<vmem>>, vector<16x145xf32>
    %17 = vector.extract_strided_slice %16 {offsets = [0, 127], sizes = [16, 16], strides = [1, 1]} : vector<16x145xf32> to vector<16x16xf32>
    %c0_14 = arith.constant 0 : index
    %c0_15 = arith.constant 0 : index
    %18 = vector.load %arg17[%c0_14, %c0_15] : memref<32x16xf32, #tpu.memory_space<vmem>>, vector<16x16xf32>
    tpu.vector_store %arg17[%c0_14, %c0_15], %17 {strides = array<i32>} : memref<32x16xf32, #tpu.memory_space<vmem>>, vector<16x16xf32>,
    %19 = vector.extract_strided_slice %16 {offsets = [0, 128], sizes = [16, 16], strides = [1, 1]} : vector<16x145xf32> to vector<16x16xf32>
    %c16 = arith.constant 16 : index
    %c0_16 = arith.constant 0 : index
    %20 = vector.load %arg17[%c16, %c0_16] : memref<32x16xf32, #tpu.memory_space<vmem>>, vector<16x16xf32>
    tpu.vector_store %arg17[%c16, %c0_16], %19 {strides = array<i32>} : memref<32x16xf32, #tpu.memory_space<vmem>>, vector<16x16xf32>,
    %c0_17 = arith.constant 0 : index
    %c0_18 = arith.constant 0 : index
    %21 = vector.load %arg4[%c0_17, %c0_18] : memref<8x32xf32, #tpu.memory_space<vmem>>, vector<8x32xf32>
    %c0_19 = arith.constant 0 : index
    %c0_20 = arith.constant 0 : index
    %22 = vector.load %arg17[%c0_19, %c0_20] : memref<32x16xf32, #tpu.memory_space<vmem>>, vector<32x16xf32>
    %cst_21 = arith.constant dense<0.000000e+00> : vector<8x16xf32>
    %23 = tpu.matmul %21, %22, %cst_21 {dimension_numbers = #tpu.dot_dimension_numbers<[1], [0], [0], [1], [0, 0, 1, 1], [], []>} : vector<8x32xf32>, vector<32x16xf32>, vector<8x16xf32> -> vector<8x16xf32>
    %24 = vector.extract_strided_slice %16 {offsets = [0, 128], sizes = [16, 16], strides = [1, 1]} : vector<16x145xf32> to vector<16x16xf32>
    %c0_22 = arith.constant 0 : index
    %c0_23 = arith.constant 0 : index
    %25 = vector.load %arg17[%c0_22, %c0_23] : memref<32x16xf32, #tpu.memory_space<vmem>>, vector<16x16xf32>
    tpu.vector_store %arg17[%c0_22, %c0_23], %24 {strides = array<i32>} : memref<32x16xf32, #tpu.memory_space<vmem>>, vector<16x16xf32>,
    %26 = vector.extract_strided_slice %16 {offsets = [0, 129], sizes = [16, 16], strides = [1, 1]} : vector<16x145xf32> to vector<16x16xf32>
    %c16_24 = arith.constant 16 : index
    %c0_25 = arith.constant 0 : index
    %27 = vector.load %arg17[%c16_24, %c0_25] : memref<32x16xf32, #tpu.memory_space<vmem>>, vector<16x16xf32>
    tpu.vector_store %arg17[%c16_24, %c0_25], %26 {strides = array<i32>} : memref<32x16xf32, #tpu.memory_space<vmem>>, vector<16x16xf32>,
    %c0_26 = arith.constant 0 : index
    %c0_27 = arith.constant 0 : index
    %28 = vector.load %arg5[%c0_26, %c0_27] : memref<8x32xf32, #tpu.memory_space<vmem>>, vector<8x32xf32>
    %c0_28 = arith.constant 0 : index
    %c0_29 = arith.constant 0 : index
    %29 = vector.load %arg17[%c0_28, %c0_29] : memref<32x16xf32, #tpu.memory_space<vmem>>, vector<32x16xf32>
    %cst_30 = arith.constant dense<0.000000e+00> : vector<8x16xf32>
    %30 = tpu.matmul %28, %29, %cst_30 {dimension_numbers = #tpu.dot_dimension_numbers<[1], [0], [0], [1], [0, 0, 1, 1], [], []>} : vector<8x32xf32>, vector<32x16xf32>, vector<8x16xf32> -> vector<8x16xf32>
    %31 = tpu.iota {dimensions = array<i32: 0>} : vector<16x32xi32>
    %32 = tpu.iota {dimensions = array<i32: 1>} : vector<16x32xi32>
    %c2_i32 = arith.constant 2 : i32
    %33 = vector.broadcast %c2_i32 : i32 to vector<16x32xi32>
    %34 = arith.muli %33, %31 : vector<16x32xi32>
    %35 = arith.cmpi eq, %32, %34 : vector<16x32xi32>
    %36 = arith.extui %35 : vector<16x32xi1> to vector<16x32xi32>
    %37 = arith.sitofp %36 : vector<16x32xi32> to vector<16x32xf32>
    %c2_i32_31 = arith.constant 2 : i32
    %38 = vector.broadcast %c2_i32_31 : i32 to vector<16x32xi32>
    %39 = arith.muli %38, %31 : vector<16x32xi32>
    %c1_i32 = arith.constant 1 : i32
    %40 = vector.broadcast %c1_i32 : i32 to vector<16x32xi32>
    %41 = arith.addi %39, %40 : vector<16x32xi32>
    %42 = arith.cmpi eq, %32, %41 : vector<16x32xi32>
    %43 = arith.extui %42 : vector<16x32xi1> to vector<16x32xi32>
    %44 = arith.sitofp %43 : vector<16x32xi32> to vector<16x32xf32>
    %cst_32 = arith.constant dense<0.000000e+00> : vector<8x32xf32>
    %45 = tpu.matmul %23, %37, %cst_32 {dimension_numbers = #tpu.dot_dimension_numbers<[1], [0], [0], [1], [0, 0, 1, 1], [], []>} : vector<8x16xf32>, vector<16x32xf32>, vector<8x32xf32> -> vector<8x32xf32>
    %cst_33 = arith.constant dense<0.000000e+00> : vector<8x32xf32>
    %46 = tpu.matmul %30, %44, %cst_33 {dimension_numbers = #tpu.dot_dimension_numbers<[1], [0], [0], [1], [0, 0, 1, 1], [], []>} : vector<8x16xf32>, vector<16x32xf32>, vector<8x32xf32> -> vector<8x32xf32>
    %47 = arith.addf %45, %46 : vector<8x32xf32>
    %c0_34 = arith.constant 0 : index
    %c0_35 = arith.constant 0 : index
    %48 = vector.load %arg6[%c0_34, %c0_35] : memref<8x1xf32, #tpu.memory_space<vmem>>, vector<8x1xf32>
    %49 = vector.broadcast %48 : vector<8x1xf32> to vector<8x32xf32>
    %50 = arith.addf %47, %49 : vector<8x32xf32>
    %c0_36 = arith.constant 0 : index
    %c0_37 = arith.constant 0 : index
    %c0_38 = arith.constant 0 : index
    %51 = vector.load %arg8[%c0_36, %c0_37, %c0_38] : memref<3x8x1xf32, #tpu.memory_space<vmem>>, vector<1x8x1xf32>
    %52 = vector.shape_cast %51 : vector<1x8x1xf32> to vector<8x1xf32>
    %c0_39 = arith.constant 0 : index
    %c0_40 = arith.constant 0 : index
    %c0_41 = arith.constant 0 : index
    %53 = vector.load %arg7[%c0_39, %c0_40, %c0_41] : memref<3x8x1xf32, #tpu.memory_space<vmem>>, vector<1x8x1xf32>
    %54 = vector.shape_cast %53 : vector<1x8x1xf32> to vector<8x1xf32>
    %55 = vector.broadcast %54 : vector<8x1xf32> to vector<8x32xf32>
    %56 = arith.mulf %55, %50 : vector<8x32xf32>
    %57 = math.sin %56 : vector<8x32xf32>
    %58 = arith.mulf %57, %57 : vector<8x32xf32>
    %59 = vector.broadcast %52 : vector<8x1xf32> to vector<8x32xf32>
    %60 = arith.mulf %59, %58 : vector<8x32xf32>
    %61 = arith.addf %50, %60 : vector<8x32xf32>
    %c0_42 = arith.constant 0 : index
    %c128_43 = arith.constant 128 : index
    %62 = vector.load %arg18[%c0_42, %c128_43] : memref<8x187xf32, #tpu.memory_space<vmem>>, vector<8x32xf32>
    tpu.vector_store %arg18[%c0_42, %c128_43], %61 {strides = array<i32>} : memref<8x187xf32, #tpu.memory_space<vmem>>, vector<8x32xf32>,
    %c0_44 = arith.constant 0 : index
    %c0_45 = arith.constant 0 : index
    %63 = vector.load %arg18[%c0_44, %c0_45] : memref<8x187xf32, #tpu.memory_space<vmem>>, vector<8x187xf32>
    %64 = vector.extract_strided_slice %63 {offsets = [0, 125], sizes = [8, 32], strides = [1, 1]} : vector<8x187xf32> to vector<8x32xf32>
    %c0_46 = arith.constant 0 : index
    %c0_47 = arith.constant 0 : index
    %65 = vector.load %arg19[%c0_46, %c0_47] : memref<56x32xf32, #tpu.memory_space<vmem>>, vector<8x32xf32>
    tpu.vector_store %arg19[%c0_46, %c0_47], %64 {strides = array<i32>} : memref<56x32xf32, #tpu.memory_space<vmem>>, vector<8x32xf32>,
    %66 = vector.extract_strided_slice %63 {offsets = [0, 126], sizes = [8, 32], strides = [1, 1]} : vector<8x187xf32> to vector<8x32xf32>
    %c8 = arith.constant 8 : index
    %c0_48 = arith.constant 0 : index
    %67 = vector.load %arg19[%c8, %c0_48] : memref<56x32xf32, #tpu.memory_space<vmem>>, vector<8x32xf32>
    tpu.vector_store %arg19[%c8, %c0_48], %66 {strides = array<i32>} : memref<56x32xf32, #tpu.memory_space<vmem>>, vector<8x32xf32>,
    %68 = vector.extract_strided_slice %63 {offsets = [0, 127], sizes = [8, 32], strides = [1, 1]} : vector<8x187xf32> to vector<8x32xf32>
    %c16_49 = arith.constant 16 : index
    %c0_50 = arith.constant 0 : index
    %69 = vector.load %arg19[%c16_49, %c0_50] : memref<56x32xf32, #tpu.memory_space<vmem>>, vector<8x32xf32>
    tpu.vector_store %arg19[%c16_49, %c0_50], %68 {strides = array<i32>} : memref<56x32xf32, #tpu.memory_space<vmem>>, vector<8x32xf32>,
    %70 = vector.extract_strided_slice %63 {offsets = [0, 128], sizes = [8, 32], strides = [1, 1]} : vector<8x187xf32> to vector<8x32xf32>
    %c24 = arith.constant 24 : index
    %c0_51 = arith.constant 0 : index
    %71 = vector.load %arg19[%c24, %c0_51] : memref<56x32xf32, #tpu.memory_space<vmem>>, vector<8x32xf32>
    tpu.vector_store %arg19[%c24, %c0_51], %70 {strides = array<i32>} : memref<56x32xf32, #tpu.memory_space<vmem>>, vector<8x32xf32>,
    %72 = vector.extract_strided_slice %63 {offsets = [0, 129], sizes = [8, 32], strides = [1, 1]} : vector<8x187xf32> to vector<8x32xf32>
    %c32 = arith.constant 32 : index
    %c0_52 = arith.constant 0 : index
    %73 = vector.load %arg19[%c32, %c0_52] : memref<56x32xf32, #tpu.memory_space<vmem>>, vector<8x32xf32>
    tpu.vector_store %arg19[%c32, %c0_52], %72 {strides = array<i32>} : memref<56x32xf32, #tpu.memory_space<vmem>>, vector<8x32xf32>,
    %74 = vector.extract_strided_slice %63 {offsets = [0, 130], sizes = [8, 32], strides = [1, 1]} : vector<8x187xf32> to vector<8x32xf32>
    %c40 = arith.constant 40 : index
    %c0_53 = arith.constant 0 : index
    %75 = vector.load %arg19[%c40, %c0_53] : memref<56x32xf32, #tpu.memory_space<vmem>>, vector<8x32xf32>
    tpu.vector_store %arg19[%c40, %c0_53], %74 {strides = array<i32>} : memref<56x32xf32, #tpu.memory_space<vmem>>, vector<8x32xf32>,
    %76 = vector.extract_strided_slice %63 {offsets = [0, 131], sizes = [8, 32], strides = [1, 1]} : vector<8x187xf32> to vector<8x32xf32>
    %c48 = arith.constant 48 : index
    %c0_54 = arith.constant 0 : index
    %77 = vector.load %arg19[%c48, %c0_54] : memref<56x32xf32, #tpu.memory_space<vmem>>, vector<8x32xf32>
    tpu.vector_store %arg19[%c48, %c0_54], %76 {strides = array<i32>} : memref<56x32xf32, #tpu.memory_space<vmem>>, vector<8x32xf32>,
    %c0_55 = arith.constant 0 : index
    %c0_56 = arith.constant 0 : index
    %c0_57 = arith.constant 0 : index
    %78 = vector.load %arg9[%c0_55, %c0_56, %c0_57] : memref<3x8x56xf32, #tpu.memory_space<vmem>>, vector<1x8x56xf32>
    %79 = vector.shape_cast %78 : vector<1x8x56xf32> to vector<8x56xf32>
    %c0_58 = arith.constant 0 : index
    %c0_59 = arith.constant 0 : index
    %80 = vector.load %arg19[%c0_58, %c0_59] : memref<56x32xf32, #tpu.memory_space<vmem>>, vector<56x32xf32>
    %cst_60 = arith.constant dense<0.000000e+00> : vector<8x32xf32>
    %81 = tpu.matmul %79, %80, %cst_60 {dimension_numbers = #tpu.dot_dimension_numbers<[1], [0], [0], [1], [0, 0, 1, 1], [], []>} : vector<8x56xf32>, vector<56x32xf32>, vector<8x32xf32> -> vector<8x32xf32>
    %c0_61 = arith.constant 0 : index
    %c0_62 = arith.constant 0 : index
    %c0_63 = arith.constant 0 : index
    %82 = vector.load %arg10[%c0_61, %c0_62, %c0_63] : memref<3x8x1xf32, #tpu.memory_space<vmem>>, vector<1x8x1xf32>
    %83 = vector.shape_cast %82 : vector<1x8x1xf32> to vector<8x1xf32>
    %84 = vector.broadcast %83 : vector<8x1xf32> to vector<8x32xf32>
    %85 = arith.addf %81, %84 : vector<8x32xf32>
    %c0_64 = arith.constant 0 : index
    %c0_65 = arith.constant 0 : index
    %c0_66 = arith.constant 0 : index
    %86 = vector.load %arg12[%c0_64, %c0_65, %c0_66] : memref<3x8x1xf32, #tpu.memory_space<vmem>>, vector<1x8x1xf32>
    %87 = vector.shape_cast %86 : vector<1x8x1xf32> to vector<8x1xf32>
    %c0_67 = arith.constant 0 : index
    %c0_68 = arith.constant 0 : index
    %c0_69 = arith.constant 0 : index
    %88 = vector.load %arg11[%c0_67, %c0_68, %c0_69] : memref<3x8x1xf32, #tpu.memory_space<vmem>>, vector<1x8x1xf32>
    %89 = vector.shape_cast %88 : vector<1x8x1xf32> to vector<8x1xf32>
    %90 = vector.broadcast %89 : vector<8x1xf32> to vector<8x32xf32>
    %91 = arith.mulf %90, %85 : vector<8x32xf32>
    %92 = math.sin %91 : vector<8x32xf32>
    %93 = arith.mulf %92, %92 : vector<8x32xf32>
    %94 = vector.broadcast %87 : vector<8x1xf32> to vector<8x32xf32>
    %95 = arith.mulf %94, %93 : vector<8x32xf32>
    %96 = arith.addf %85, %95 : vector<8x32xf32>
    %c0_70 = arith.constant 0 : index
    %c0_71 = arith.constant 0 : index
    %c0_72 = arith.constant 0 : index
    %97 = vector.load %arg13[%c0_70, %c0_71, %c0_72] : memref<3x8x8xf32, #tpu.memory_space<vmem>>, vector<1x8x8xf32>
    %98 = vector.shape_cast %97 : vector<1x8x8xf32> to vector<8x8xf32>
    %cst_73 = arith.constant dense<0.000000e+00> : vector<8x32xf32>
    %99 = tpu.matmul %98, %96, %cst_73 {dimension_numbers = #tpu.dot_dimension_numbers<[1], [0], [0], [1], [0, 0, 1, 1], [], []>} : vector<8x8xf32>, vector<8x32xf32>, vector<8x32xf32> -> vector<8x32xf32>
    %100 = arith.addf %50, %99 : vector<8x32xf32>
    %c0_74 = arith.constant 0 : index
    %c0_75 = arith.constant 0 : index
    %c0_76 = arith.constant 0 : index
    %101 = vector.load %arg14[%c0_74, %c0_75, %c0_76] : memref<3x8x1xf32, #tpu.memory_space<vmem>>, vector<1x8x1xf32>
    %102 = vector.shape_cast %101 : vector<1x8x1xf32> to vector<8x1xf32>
    %103 = vector.broadcast %102 : vector<8x1xf32> to vector<8x32xf32>
    %104 = arith.addf %100, %103 : vector<8x32xf32>
    %c1 = arith.constant 1 : index
    %c0_77 = arith.constant 0 : index
    %c0_78 = arith.constant 0 : index
    %105 = vector.load %arg8[%c1, %c0_77, %c0_78] : memref<3x8x1xf32, #tpu.memory_space<vmem>>, vector<1x8x1xf32>
    %106 = vector.shape_cast %105 : vector<1x8x1xf32> to vector<8x1xf32>
    %c1_79 = arith.constant 1 : index
    %c0_80 = arith.constant 0 : index
    %c0_81 = arith.constant 0 : index
    %107 = vector.load %arg7[%c1_79, %c0_80, %c0_81] : memref<3x8x1xf32, #tpu.memory_space<vmem>>, vector<1x8x1xf32>
    %108 = vector.shape_cast %107 : vector<1x8x1xf32> to vector<8x1xf32>
    %109 = vector.broadcast %108 : vector<8x1xf32> to vector<8x32xf32>
    %110 = arith.mulf %109, %104 : vector<8x32xf32>
    %111 = math.sin %110 : vector<8x32xf32>
    %112 = arith.mulf %111, %111 : vector<8x32xf32>
    %113 = vector.broadcast %106 : vector<8x1xf32> to vector<8x32xf32>
    %114 = arith.mulf %113, %112 : vector<8x32xf32>
    %115 = arith.addf %104, %114 : vector<8x32xf32>
    %c0_82 = arith.constant 0 : index
    %c128_83 = arith.constant 128 : index
    %116 = vector.load %arg18[%c0_82, %c128_83] : memref<8x187xf32, #tpu.memory_space<vmem>>, vector<8x32xf32>
    tpu.vector_store %arg18[%c0_82, %c128_83], %115 {strides = array<i32>} : memref<8x187xf32, #tpu.memory_space<vmem>>, vector<8x32xf32>,
    %c0_84 = arith.constant 0 : index
    %c0_85 = arith.constant 0 : index
    %117 = vector.load %arg18[%c0_84, %c0_85] : memref<8x187xf32, #tpu.memory_space<vmem>>, vector<8x187xf32>
    %118 = vector.extract_strided_slice %117 {offsets = [0, 119], sizes = [8, 32], strides = [1, 1]} : vector<8x187xf32> to vector<8x32xf32>
    %c0_86 = arith.constant 0 : index
    %c0_87 = arith.constant 0 : index
    %119 = vector.load %arg19[%c0_86, %c0_87] : memref<56x32xf32, #tpu.memory_space<vmem>>, vector<8x32xf32>
    tpu.vector_store %arg19[%c0_86, %c0_87], %118 {strides = array<i32>} : memref<56x32xf32, #tpu.memory_space<vmem>>, vector<8x32xf32>,
    %120 = vector.extract_strided_slice %117 {offsets = [0, 122], sizes = [8, 32], strides = [1, 1]} : vector<8x187xf32> to vector<8x32xf32>
    %c8_88 = arith.constant 8 : index
    %c0_89 = arith.constant 0 : index
    %121 = vector.load %arg19[%c8_88, %c0_89] : memref<56x32xf32, #tpu.memory_space<vmem>>, vector<8x32xf32>
    tpu.vector_store %arg19[%c8_88, %c0_89], %120 {strides = array<i32>} : memref<56x32xf32, #tpu.memory_space<vmem>>, vector<8x32xf32>,
    %122 = vector.extract_strided_slice %117 {offsets = [0, 125], sizes = [8, 32], strides = [1, 1]} : vector<8x187xf32> to vector<8x32xf32>
    %c16_90 = arith.constant 16 : index
    %c0_91 = arith.constant 0 : index
    %123 = vector.load %arg19[%c16_90, %c0_91] : memref<56x32xf32, #tpu.memory_space<vmem>>, vector<8x32xf32>
    tpu.vector_store %arg19[%c16_90, %c0_91], %122 {strides = array<i32>} : memref<56x32xf32, #tpu.memory_space<vmem>>, vector<8x32xf32>,
    %124 = vector.extract_strided_slice %117 {offsets = [0, 128], sizes = [8, 32], strides = [1, 1]} : vector<8x187xf32> to vector<8x32xf32>
    %c24_92 = arith.constant 24 : index
    %c0_93 = arith.constant 0 : index
    %125 = vector.load %arg19[%c24_92, %c0_93] : memref<56x32xf32, #tpu.memory_space<vmem>>, vector<8x32xf32>
    tpu.vector_store %arg19[%c24_92, %c0_93], %124 {strides = array<i32>} : memref<56x32xf32, #tpu.memory_space<vmem>>, vector<8x32xf32>,
    %126 = vector.extract_strided_slice %117 {offsets = [0, 131], sizes = [8, 32], strides = [1, 1]} : vector<8x187xf32> to vector<8x32xf32>
    %c32_94 = arith.constant 32 : index
    %c0_95 = arith.constant 0 : index
    %127 = vector.load %arg19[%c32_94, %c0_95] : memref<56x32xf32, #tpu.memory_space<vmem>>, vector<8x32xf32>
    tpu.vector_store %arg19[%c32_94, %c0_95], %126 {strides = array<i32>} : memref<56x32xf32, #tpu.memory_space<vmem>>, vector<8x32xf32>,
    %128 = vector.extract_strided_slice %117 {offsets = [0, 134], sizes = [8, 32], strides = [1, 1]} : vector<8x187xf32> to vector<8x32xf32>
    %c40_96 = arith.constant 40 : index
    %c0_97 = arith.constant 0 : index
    %129 = vector.load %arg19[%c40_96, %c0_97] : memref<56x32xf32, #tpu.memory_space<vmem>>, vector<8x32xf32>
    tpu.vector_store %arg19[%c40_96, %c0_97], %128 {strides = array<i32>} : memref<56x32xf32, #tpu.memory_space<vmem>>, vector<8x32xf32>,
    %130 = vector.extract_strided_slice %117 {offsets = [0, 137], sizes = [8, 32], strides = [1, 1]} : vector<8x187xf32> to vector<8x32xf32>
    %c48_98 = arith.constant 48 : index
    %c0_99 = arith.constant 0 : index
    %131 = vector.load %arg19[%c48_98, %c0_99] : memref<56x32xf32, #tpu.memory_space<vmem>>, vector<8x32xf32>
    tpu.vector_store %arg19[%c48_98, %c0_99], %130 {strides = array<i32>} : memref<56x32xf32, #tpu.memory_space<vmem>>, vector<8x32xf32>,
    %c1_100 = arith.constant 1 : index
    %c0_101 = arith.constant 0 : index
    %c0_102 = arith.constant 0 : index
    %132 = vector.load %arg9[%c1_100, %c0_101, %c0_102] : memref<3x8x56xf32, #tpu.memory_space<vmem>>, vector<1x8x56xf32>
    %133 = vector.shape_cast %132 : vector<1x8x56xf32> to vector<8x56xf32>
    %c0_103 = arith.constant 0 : index
    %c0_104 = arith.constant 0 : index
    %134 = vector.load %arg19[%c0_103, %c0_104] : memref<56x32xf32, #tpu.memory_space<vmem>>, vector<56x32xf32>
    %cst_105 = arith.constant dense<0.000000e+00> : vector<8x32xf32>
    %135 = tpu.matmul %133, %134, %cst_105 {dimension_numbers = #tpu.dot_dimension_numbers<[1], [0], [0], [1], [0, 0, 1, 1], [], []>} : vector<8x56xf32>, vector<56x32xf32>, vector<8x32xf32> -> vector<8x32xf32>
    %c1_106 = arith.constant 1 : index
    %c0_107 = arith.constant 0 : index
    %c0_108 = arith.constant 0 : index
    %136 = vector.load %arg10[%c1_106, %c0_107, %c0_108] : memref<3x8x1xf32, #tpu.memory_space<vmem>>, vector<1x8x1xf32>
    %137 = vector.shape_cast %136 : vector<1x8x1xf32> to vector<8x1xf32>
    %138 = vector.broadcast %137 : vector<8x1xf32> to vector<8x32xf32>
    %139 = arith.addf %135, %138 : vector<8x32xf32>
    %c1_109 = arith.constant 1 : index
    %c0_110 = arith.constant 0 : index
    %c0_111 = arith.constant 0 : index
    %140 = vector.load %arg12[%c1_109, %c0_110, %c0_111] : memref<3x8x1xf32, #tpu.memory_space<vmem>>, vector<1x8x1xf32>
    %141 = vector.shape_cast %140 : vector<1x8x1xf32> to vector<8x1xf32>
    %c1_112 = arith.constant 1 : index
    %c0_113 = arith.constant 0 : index
    %c0_114 = arith.constant 0 : index
    %142 = vector.load %arg11[%c1_112, %c0_113, %c0_114] : memref<3x8x1xf32, #tpu.memory_space<vmem>>, vector<1x8x1xf32>
    %143 = vector.shape_cast %142 : vector<1x8x1xf32> to vector<8x1xf32>
    %144 = vector.broadcast %143 : vector<8x1xf32> to vector<8x32xf32>
    %145 = arith.mulf %144, %139 : vector<8x32xf32>
    %146 = math.sin %145 : vector<8x32xf32>
    %147 = arith.mulf %146, %146 : vector<8x32xf32>
    %148 = vector.broadcast %141 : vector<8x1xf32> to vector<8x32xf32>
    %149 = arith.mulf %148, %147 : vector<8x32xf32>
    %150 = arith.addf %139, %149 : vector<8x32xf32>
    %c1_115 = arith.constant 1 : index
    %c0_116 = arith.constant 0 : index
    %c0_117 = arith.constant 0 : index
    %151 = vector.load %arg13[%c1_115, %c0_116, %c0_117] : memref<3x8x8xf32, #tpu.memory_space<vmem>>, vector<1x8x8xf32>
    %152 = vector.shape_cast %151 : vector<1x8x8xf32> to vector<8x8xf32>
    %cst_118 = arith.constant dense<0.000000e+00> : vector<8x32xf32>
    %153 = tpu.matmul %152, %150, %cst_118 {dimension_numbers = #tpu.dot_dimension_numbers<[1], [0], [0], [1], [0, 0, 1, 1], [], []>} : vector<8x8xf32>, vector<8x32xf32>, vector<8x32xf32> -> vector<8x32xf32>
    %154 = arith.addf %104, %153 : vector<8x32xf32>
    %c1_119 = arith.constant 1 : index
    %c0_120 = arith.constant 0 : index
    %c0_121 = arith.constant 0 : index
    %155 = vector.load %arg14[%c1_119, %c0_120, %c0_121] : memref<3x8x1xf32, #tpu.memory_space<vmem>>, vector<1x8x1xf32>
    %156 = vector.shape_cast %155 : vector<1x8x1xf32> to vector<8x1xf32>
    %157 = vector.broadcast %156 : vector<8x1xf32> to vector<8x32xf32>
    %158 = arith.addf %154, %157 : vector<8x32xf32>
    %c2 = arith.constant 2 : index
    %c0_122 = arith.constant 0 : index
    %c0_123 = arith.constant 0 : index
    %159 = vector.load %arg8[%c2, %c0_122, %c0_123] : memref<3x8x1xf32, #tpu.memory_space<vmem>>, vector<1x8x1xf32>
    %160 = vector.shape_cast %159 : vector<1x8x1xf32> to vector<8x1xf32>
    %c2_124 = arith.constant 2 : index
    %c0_125 = arith.constant 0 : index
    %c0_126 = arith.constant 0 : index
    %161 = vector.load %arg7[%c2_124, %c0_125, %c0_126] : memref<3x8x1xf32, #tpu.memory_space<vmem>>, vector<1x8x1xf32>
    %162 = vector.shape_cast %161 : vector<1x8x1xf32> to vector<8x1xf32>
    %163 = vector.broadcast %162 : vector<8x1xf32> to vector<8x32xf32>
    %164 = arith.mulf %163, %158 : vector<8x32xf32>
    %165 = math.sin %164 : vector<8x32xf32>
    %166 = arith.mulf %165, %165 : vector<8x32xf32>
    %167 = vector.broadcast %160 : vector<8x1xf32> to vector<8x32xf32>
    %168 = arith.mulf %167, %166 : vector<8x32xf32>
    %169 = arith.addf %158, %168 : vector<8x32xf32>
    %c0_127 = arith.constant 0 : index
    %c128_128 = arith.constant 128 : index
    %170 = vector.load %arg18[%c0_127, %c128_128] : memref<8x187xf32, #tpu.memory_space<vmem>>, vector<8x32xf32>
    tpu.vector_store %arg18[%c0_127, %c128_128], %169 {strides = array<i32>} : memref<8x187xf32, #tpu.memory_space<vmem>>, vector<8x32xf32>,
    %c0_129 = arith.constant 0 : index
    %c0_130 = arith.constant 0 : index
    %171 = vector.load %arg18[%c0_129, %c0_130] : memref<8x187xf32, #tpu.memory_space<vmem>>, vector<8x187xf32>
    %172 = vector.extract_strided_slice %171 {offsets = [0, 101], sizes = [8, 32], strides = [1, 1]} : vector<8x187xf32> to vector<8x32xf32>
    %c0_131 = arith.constant 0 : index
    %c0_132 = arith.constant 0 : index
    %173 = vector.load %arg19[%c0_131, %c0_132] : memref<56x32xf32, #tpu.memory_space<vmem>>, vector<8x32xf32>
    tpu.vector_store %arg19[%c0_131, %c0_132], %172 {strides = array<i32>} : memref<56x32xf32, #tpu.memory_space<vmem>>, vector<8x32xf32>,
    %174 = vector.extract_strided_slice %171 {offsets = [0, 110], sizes = [8, 32], strides = [1, 1]} : vector<8x187xf32> to vector<8x32xf32>
    %c8_133 = arith.constant 8 : index
    %c0_134 = arith.constant 0 : index
    %175 = vector.load %arg19[%c8_133, %c0_134] : memref<56x32xf32, #tpu.memory_space<vmem>>, vector<8x32xf32>
    tpu.vector_store %arg19[%c8_133, %c0_134], %174 {strides = array<i32>} : memref<56x32xf32, #tpu.memory_space<vmem>>, vector<8x32xf32>,
    %176 = vector.extract_strided_slice %171 {offsets = [0, 119], sizes = [8, 32], strides = [1, 1]} : vector<8x187xf32> to vector<8x32xf32>
    %c16_135 = arith.constant 16 : index
    %c0_136 = arith.constant 0 : index
    %177 = vector.load %arg19[%c16_135, %c0_136] : memref<56x32xf32, #tpu.memory_space<vmem>>, vector<8x32xf32>
    tpu.vector_store %arg19[%c16_135, %c0_136], %176 {strides = array<i32>} : memref<56x32xf32, #tpu.memory_space<vmem>>, vector<8x32xf32>,
    %178 = vector.extract_strided_slice %171 {offsets = [0, 128], sizes = [8, 32], strides = [1, 1]} : vector<8x187xf32> to vector<8x32xf32>
    %c24_137 = arith.constant 24 : index
    %c0_138 = arith.constant 0 : index
    %179 = vector.load %arg19[%c24_137, %c0_138] : memref<56x32xf32, #tpu.memory_space<vmem>>, vector<8x32xf32>
    tpu.vector_store %arg19[%c24_137, %c0_138], %178 {strides = array<i32>} : memref<56x32xf32, #tpu.memory_space<vmem>>, vector<8x32xf32>,
    %180 = vector.extract_strided_slice %171 {offsets = [0, 137], sizes = [8, 32], strides = [1, 1]} : vector<8x187xf32> to vector<8x32xf32>
    %c32_139 = arith.constant 32 : index
    %c0_140 = arith.constant 0 : index
    %181 = vector.load %arg19[%c32_139, %c0_140] : memref<56x32xf32, #tpu.memory_space<vmem>>, vector<8x32xf32>
    tpu.vector_store %arg19[%c32_139, %c0_140], %180 {strides = array<i32>} : memref<56x32xf32, #tpu.memory_space<vmem>>, vector<8x32xf32>,
    %182 = vector.extract_strided_slice %171 {offsets = [0, 146], sizes = [8, 32], strides = [1, 1]} : vector<8x187xf32> to vector<8x32xf32>
    %c40_141 = arith.constant 40 : index
    %c0_142 = arith.constant 0 : index
    %183 = vector.load %arg19[%c40_141, %c0_142] : memref<56x32xf32, #tpu.memory_space<vmem>>, vector<8x32xf32>
    tpu.vector_store %arg19[%c40_141, %c0_142], %182 {strides = array<i32>} : memref<56x32xf32, #tpu.memory_space<vmem>>, vector<8x32xf32>,
    %184 = vector.extract_strided_slice %171 {offsets = [0, 155], sizes = [8, 32], strides = [1, 1]} : vector<8x187xf32> to vector<8x32xf32>
    %c48_143 = arith.constant 48 : index
    %c0_144 = arith.constant 0 : index
    %185 = vector.load %arg19[%c48_143, %c0_144] : memref<56x32xf32, #tpu.memory_space<vmem>>, vector<8x32xf32>
    tpu.vector_store %arg19[%c48_143, %c0_144], %184 {strides = array<i32>} : memref<56x32xf32, #tpu.memory_space<vmem>>, vector<8x32xf32>,
    %c2_145 = arith.constant 2 : index
    %c0_146 = arith.constant 0 : index
    %c0_147 = arith.constant 0 : index
    %186 = vector.load %arg9[%c2_145, %c0_146, %c0_147] : memref<3x8x56xf32, #tpu.memory_space<vmem>>, vector<1x8x56xf32>
    %187 = vector.shape_cast %186 : vector<1x8x56xf32> to vector<8x56xf32>
    %c0_148 = arith.constant 0 : index
    %c0_149 = arith.constant 0 : index
    %188 = vector.load %arg19[%c0_148, %c0_149] : memref<56x32xf32, #tpu.memory_space<vmem>>, vector<56x32xf32>
    %cst_150 = arith.constant dense<0.000000e+00> : vector<8x32xf32>
    %189 = tpu.matmul %187, %188, %cst_150 {dimension_numbers = #tpu.dot_dimension_numbers<[1], [0], [0], [1], [0, 0, 1, 1], [], []>} : vector<8x56xf32>, vector<56x32xf32>, vector<8x32xf32> -> vector<8x32xf32>
    %c2_151 = arith.constant 2 : index
    %c0_152 = arith.constant 0 : index
    %c0_153 = arith.constant 0 : index
    %190 = vector.load %arg10[%c2_151, %c0_152, %c0_153] : memref<3x8x1xf32, #tpu.memory_space<vmem>>, vector<1x8x1xf32>
    %191 = vector.shape_cast %190 : vector<1x8x1xf32> to vector<8x1xf32>
    %192 = vector.broadcast %191 : vector<8x1xf32> to vector<8x32xf32>
    %193 = arith.addf %189, %192 : vector<8x32xf32>
    %c2_154 = arith.constant 2 : index
    %c0_155 = arith.constant 0 : index
    %c0_156 = arith.constant 0 : index
    %194 = vector.load %arg12[%c2_154, %c0_155, %c0_156] : memref<3x8x1xf32, #tpu.memory_space<vmem>>, vector<1x8x1xf32>
    %195 = vector.shape_cast %194 : vector<1x8x1xf32> to vector<8x1xf32>
    %c2_157 = arith.constant 2 : index
    %c0_158 = arith.constant 0 : index
    %c0_159 = arith.constant 0 : index
    %196 = vector.load %arg11[%c2_157, %c0_158, %c0_159] : memref<3x8x1xf32, #tpu.memory_space<vmem>>, vector<1x8x1xf32>
    %197 = vector.shape_cast %196 : vector<1x8x1xf32> to vector<8x1xf32>
    %198 = vector.broadcast %197 : vector<8x1xf32> to vector<8x32xf32>
    %199 = arith.mulf %198, %193 : vector<8x32xf32>
    %200 = math.sin %199 : vector<8x32xf32>
    %201 = arith.mulf %200, %200 : vector<8x32xf32>
    %202 = vector.broadcast %195 : vector<8x1xf32> to vector<8x32xf32>
    %203 = arith.mulf %202, %201 : vector<8x32xf32>
    %204 = arith.addf %193, %203 : vector<8x32xf32>
    %c2_160 = arith.constant 2 : index
    %c0_161 = arith.constant 0 : index
    %c0_162 = arith.constant 0 : index
    %205 = vector.load %arg13[%c2_160, %c0_161, %c0_162] : memref<3x8x8xf32, #tpu.memory_space<vmem>>, vector<1x8x8xf32>
    %206 = vector.shape_cast %205 : vector<1x8x8xf32> to vector<8x8xf32>
    %cst_163 = arith.constant dense<0.000000e+00> : vector<8x32xf32>
    %207 = tpu.matmul %206, %204, %cst_163 {dimension_numbers = #tpu.dot_dimension_numbers<[1], [0], [0], [1], [0, 0, 1, 1], [], []>} : vector<8x8xf32>, vector<8x32xf32>, vector<8x32xf32> -> vector<8x32xf32>
    %208 = arith.addf %158, %207 : vector<8x32xf32>
    %c2_164 = arith.constant 2 : index
    %c0_165 = arith.constant 0 : index
    %c0_166 = arith.constant 0 : index
    %209 = vector.load %arg14[%c2_164, %c0_165, %c0_166] : memref<3x8x1xf32, #tpu.memory_space<vmem>>, vector<1x8x1xf32>
    %210 = vector.shape_cast %209 : vector<1x8x1xf32> to vector<8x1xf32>
    %211 = vector.broadcast %210 : vector<8x1xf32> to vector<8x32xf32>
    %212 = arith.addf %208, %211 : vector<8x32xf32>
    %c0_167 = arith.constant 0 : index
    %c0_168 = arith.constant 0 : index
    %c0_169 = arith.constant 0 : index
    %213 = vector.load %arg15[%c0_167, %c0_168, %c0_169] : memref<1x8x32xf32, #tpu.memory_space<vmem>>, vector<1x8x32xf32>
    %214 = vector.shape_cast %213 : vector<1x8x32xf32> to vector<8x32xf32>
    %215 = vector.shape_cast %212 : vector<8x32xf32> to vector<1x8x32xf32>
    tpu.vector_store %arg15[%c0_167, %c0_168, %c0_169], %215 {strides = array<i32>} : memref<1x8x32xf32, #tpu.memory_space<vmem>>, vector<1x8x32xf32>,
    return
  }
  func.func @transform_0(%arg0: i32) -> (i32, i32, i32) {
    %c0_i32 = arith.constant 0 : i32
    %c0_i32_0 = arith.constant 0 : i32
    %c0_i32_1 = arith.constant 0 : i32
    return %arg0, %c0_i32, %c0_i32_0 : i32, i32, i32
  }
  func.func @transform_1(%arg0: i32) -> (i32, i32) {
    %c0_i32 = arith.constant 0 : i32
    %c0_i32_0 = arith.constant 0 : i32
    %c0_i32_1 = arith.constant 0 : i32
    return %c0_i32, %c0_i32_0 : i32, i32
  }
  func.func @transform_2(%arg0: i32) -> (i32, i32) {
    %c0_i32 = arith.constant 0 : i32
    %c0_i32_0 = arith.constant 0 : i32
    %c0_i32_1 = arith.constant 0 : i32
    return %c0_i32, %c0_i32_0 : i32, i32
  }
  func.func @transform_3(%arg0: i32) -> (i32, i32) {
    %c0_i32 = arith.constant 0 : i32
    %c0_i32_0 = arith.constant 0 : i32
    %c0_i32_1 = arith.constant 0 : i32
    return %c0_i32, %c0_i32_0 : i32, i32
  }
  func.func @transform_4(%arg0: i32) -> (i32, i32) {
    %c0_i32 = arith.constant 0 : i32
    %c0_i32_0 = arith.constant 0 : i32
    %c0_i32_1 = arith.constant 0 : i32
    return %c0_i32, %c0_i32_0 : i32, i32
  }
  func.func @transform_5(%arg0: i32) -> (i32, i32) {
    %c0_i32 = arith.constant 0 : i32
    %c0_i32_0 = arith.constant 0 : i32
    %c0_i32_1 = arith.constant 0 : i32
    return %c0_i32, %c0_i32_0 : i32, i32
  }
  func.func @transform_6(%arg0: i32) -> (i32, i32, i32) {
    %c0_i32 = arith.constant 0 : i32
    %c0_i32_0 = arith.constant 0 : i32
    %c0_i32_1 = arith.constant 0 : i32
    %c0_i32_2 = arith.constant 0 : i32
    return %c0_i32, %c0_i32_0, %c0_i32_1 : i32, i32, i32
  }
  func.func @transform_7(%arg0: i32) -> (i32, i32, i32) {
    %c0_i32 = arith.constant 0 : i32
    %c0_i32_0 = arith.constant 0 : i32
    %c0_i32_1 = arith.constant 0 : i32
    %c0_i32_2 = arith.constant 0 : i32
    return %c0_i32, %c0_i32_0, %c0_i32_1 : i32, i32, i32
  }
  func.func @transform_8(%arg0: i32) -> (i32, i32, i32) {
    %c0_i32 = arith.constant 0 : i32
    %c0_i32_0 = arith.constant 0 : i32
    %c0_i32_1 = arith.constant 0 : i32
    %c0_i32_2 = arith.constant 0 : i32
    return %c0_i32, %c0_i32_0, %c0_i32_1 : i32, i32, i32
  }
  func.func @transform_9(%arg0: i32) -> (i32, i32, i32) {
    %c0_i32 = arith.constant 0 : i32
    %c0_i32_0 = arith.constant 0 : i32
    %c0_i32_1 = arith.constant 0 : i32
    %c0_i32_2 = arith.constant 0 : i32
    return %c0_i32, %c0_i32_0, %c0_i32_1 : i32, i32, i32
  }
  func.func @transform_10(%arg0: i32) -> (i32, i32, i32) {
    %c0_i32 = arith.constant 0 : i32
    %c0_i32_0 = arith.constant 0 : i32
    %c0_i32_1 = arith.constant 0 : i32
    %c0_i32_2 = arith.constant 0 : i32
    return %c0_i32, %c0_i32_0, %c0_i32_1 : i32, i32, i32
  }
  func.func @transform_11(%arg0: i32) -> (i32, i32, i32) {
    %c0_i32 = arith.constant 0 : i32
    %c0_i32_0 = arith.constant 0 : i32
    %c0_i32_1 = arith.constant 0 : i32
    %c0_i32_2 = arith.constant 0 : i32
    return %c0_i32, %c0_i32_0, %c0_i32_1 : i32, i32, i32
  }
  func.func @transform_12(%arg0: i32) -> (i32, i32, i32) {
    %c0_i32 = arith.constant 0 : i32
    %c0_i32_0 = arith.constant 0 : i32
    %c0_i32_1 = arith.constant 0 : i32
    %c0_i32_2 = arith.constant 0 : i32
    return %c0_i32, %c0_i32_0, %c0_i32_1 : i32, i32, i32
  }
  func.func @transform_13(%arg0: i32) -> (i32, i32, i32) {
    %c0_i32 = arith.constant 0 : i32
    %c0_i32_0 = arith.constant 0 : i32
    %c0_i32_1 = arith.constant 0 : i32
    %c0_i32_2 = arith.constant 0 : i32
    return %c0_i32, %c0_i32_0, %c0_i32_1 : i32, i32, i32
  }
  func.func @transform_14(%arg0: i32) -> (i32, i32, i32) {
    %c0_i32 = arith.constant 0 : i32
    %c0_i32_0 = arith.constant 0 : i32
    %c0_i32_1 = arith.constant 0 : i32
    return %arg0, %c0_i32, %c0_i32_0 : i32, i32, i32
  }
}

</mosaic_0001>

<bundles_post_ra>
// kernel: decoder_block_forward.1
= control target key start
LH: loop header
LB: loop body
LE: loop exit
PB: predicated region body
PF: predicated region fallthrough
CT: control target
= control target key end

     0   :  { %s3575_s0 = inlined_call_operand.vmem [shape: f32[2,16,16], index: 0, kind: input, shape index: {}]   ;;  %s3576_s1 = inlined_call_operand.vmem [shape: f32[16,1], index: 1, kind: input, shape index: {}]   ;;  %s3577_s2 = inlined_call_operand.vmem [shape: f32[16,1], index: 2, kind: input, shape index: {}]   ;;  %s3578_s3 = inlined_call_operand.vmem [shape: f32[8,32], index: 3, kind: input, shape index: {}]   ;;  %s3579_s4 = inlined_call_operand.vmem [shape: f32[8,32], index: 4, kind: input, shape index: {}]   ;;  %s3580_s5 = inlined_call_operand.vmem [shape: f32[8,1], index: 5, kind: input, shape index: {}]   ;;  %s3581_s6 = inlined_call_operand.vmem [shape: f32[3,8,1], index: 6, kind: input, shape index: {}]   ;;  %s3582_s7 = inlined_call_operand.vmem [shape: f32[3,8,1], index: 7, kind: input, shape index: {}]   ;;  %s3583_s8 = inlined_call_operand.vmem [shape: f32[3,8,56], index: 8, kind: input, shape index: {}]   ;;  %s3584_s9 = inlined_call_operand.vmem [shape: f32[3,8,1], index: 9, kind: input, shape index: {}]   ;;  %s3585_s10 = inlined_call_operand.vmem [shape: f32[3,8,1], index: 10, kind: input, shape index: {}]   ;;  %s3586_s11 = inlined_call_operand.vmem [shape: f32[3,8,1], index: 11, kind: input, shape index: {}]   ;;  %s3587_s12 = inlined_call_operand.vmem [shape: f32[3,8,8], index: 12, kind: input, shape index: {}]   ;;  %s3588_s13 = inlined_call_operand.vmem [shape: f32[3,8,1], index: 13, kind: input, shape index: {}]   ;;  %s3589_s14 = inlined_call_operand.hbm [shape: f32[2,8,32], index: 14, kind: output, shape index: {}]  }
   0x1   :  { %3597 = sst [smem:[#allocation11_spill]] %s3575_s0 }
   0x2   :  { %3598 = sst [smem:[#allocation12_spill]] %s3576_s1 }
   0x3   :  { %19 = vsyncpa [#allocation7], 0 }
   0x4   :  { %21 = vsyncpa [#allocation7 + $0x1], 0  ;;  %s2741_s29 = smov 0   ;;  %s2743_s30 = smov 0  }
   0x5   :  { %s2745_s15 = smov 0   ;;  %s2747_s16 = smov 0  }
   0x6 LB: > { %3599 = sst [smem:[#allocation9_spill]] %s2637_s15  ;;  %s2762_s17 = sadd.s32 4294967295, %s2641_s16   ;;  %s2641_s16 = sphi %s2747_s16, %s3617_s16   ;;  %s2637_s15 = sphi %s2745_s15, %s3614_s15   ;;  %s2633_s30 = sphi %s2743_s30, %s3616_s30   ;;  %s2629_s29 = sphi %s2741_s29, %s3615_s29  }
   0x7   : > { %s2437_s18 = sadd.s32 4294967294, %s2641_s16   ;;  %s2766_s19 = sadd.s32 1, %s2641_s16  }
   0x8   : > { %s333_s20 = sadd.s32 1, %s2637_s15  ;;  %s330_s21 = ssub.s32 %s2641_s16, %s2766_s19 }
   0x9   : > { %p343_p0 = scmp.ne.s32.totalorder %s2637_s15, %s2633_s30  ;;  %p331_p1 = scmp.eq.s32.totalorder %s330_s21, 0 }
   0xa   : > { %p344_p2 = scmp.eq.s32.totalorder %s2762_s17, 1  ;;  %p349_p3 = scmp.ne.s32.totalorder %s2633_s30, %s2629_s29 }
   0xb   : > { %p350_p4 = scmp.eq.s32.totalorder %s2437_s18, 1  ;;  %p2440_p7 = scmp.ge.s32.totalorder %s2641_s16, 1 }
   0xc   : > { %s2777_s22 = scalar_select %p331_p1, %s2637_s15, %s333_s20  }
   0xd   : > { %p2779_p5 = por %p344_p2, %p343_p0  ;;  %p2783_p6 = por %p350_p4, %p349_p3 }
   0xe   : > { %3600 = sst [smem:[#allocation10_spill]] %s2777_s22  ;;  %p415_p8 = scmp.lt.s32.totalorder %s2641_s16, 3 }
  0x10   : > { %p416_p9 = pnand %p2440_p7, %p415_p8 }
  0x11   : > { %s3603_s1 = sld [smem:[#allocation12_spill]] (!%p416_p9)  ;;  %p461_p10 = scmp.lt.s32.totalorder (!%p416_p9), %s2762_s17, 1 }
  0x12   : > { %419 = sbr.rel (%p416_p9) target bundleno = 2544 (0x9f0), region = 76  ;;  %s3604_s0 = sld [smem:[#allocation11_spill]] (!%p416_p9) }
  0x13   : > { %s2652_s22 = smov (!%p416_p9), 127   ;;  %s2654_s25 = smov (!%p416_p9), 2  }
  0x14   : > { %s3592_s28 = smov (!%p416_p9), 3   ;;  %s2658_s21 = smov (!%p416_p9), 6  }
  0x15   : > { %s3594_s18 = smov (!%p416_p9), 119   ;;  %s3595_s20 = smov (!%p416_p9), 9  }
  0x17   : > { %v479_v0 = vld [vmem:[%s3603_s1 + $0x8] sm:$0xff]  ;;  %v2643_v2 = vmov 0   ;;  %v478_v3 = vld [vmem:[%s3603_s1] sm:$0xff]  ;;  %s462_s26 = scalar_select %p461_p10, %s2762_s17, 1  ;;  %vm467_vm1 = vcmask 138240   ;;  %v2644_v25 = vmov 0.0  }
  0x18   : > { %v477_v1 = vld [vmem:[%s3577_s2 + $0x8] sm:$0xff]  ;;  %2569 = vset.pattern.permute.xlu0 %v2643_v2  ;;  %2570 = vset.pattern.permute.xlu1 %v2643_v2  ;;  %v476_v4 = vld [vmem:[%s3577_s2] sm:$0xff]  ;;  %466 = vst [vmem:[#allocation2] sm:$0xff] %v2644_v25  ;;  %v2645_v27 = vmov 683565275  }
  0x19   : > { %487 = vperm.xlu0 %2569, %v479_v0   ;;  %811 = vperm.xlu1 %2570, %v477_v1   ;;  %s2506_s27 = sshll.u32 %s462_s26, 4  ;;  %v2646_v29 = vmov 2475754826   ;;  %v2647_v33 = vmov 2131351028   ;;  %470 = vst.msk [vmem:[#allocation2 + $0x18] sm:$0xff] %vm467_vm1, %v2644_v25 }
  0x1a   : > { %2576 = vset.pattern.permute.xlu2 %v2643_v2  ;;  %s465_s15 = scalar_lea.vmem %s3604_s0, %s2506_s27  ;;  %v2648_v36 = vmov 2102212464   ;;  %v2649_v39 = vmov 920167782   ;;  %v2650_v42 = vmov 1326507024  }
  0x1b   : > { %v2809_v5 = vld [vmem:[%s465_s15 + $0x8] sm:$0xff]  ;;  %v2816_v11 = vld [vmem:[%s465_s15] sm:$0xff]  ;;  %468 = vst.msk [vmem:[#allocation2 + $0x8] sm:$0xff] %vm467_vm1, %v2644_v25  ;;  %s2651_s15 = smov 1   ;;  %s2655_s26 = smov 126  }
  0x1c   : > { %2572 = vrot.lane.b32.xlu2 %v2644_v25, %s2651_s15  ;;  %s3591_s27 = smov 125   ;;  %s2664_s0 = smov 101  }
  0x21   : > { %482 = vperm.xlu0 %2569, %v478_v3   ;;  %806 = vperm.xlu1 %2570, %v476_v4  }
  0x8b   : > { %v488_v6 = vpop.permute.xlu0 %487 }
  0x8c   : > { %v2812_v7 = vmul.f32 %v488_v6, %v2809_v5 }
  0x8e   : > { %v647_v8 = vand.u32 2147483647, %v2812_v7  ;;  %v650_v9 = vand.u32 2139095040, %v2812_v7 }
  0x90   : > { %v651_v10 = vshrl.u32 %v650_v9, 23  ;;  %v654_v13 = vand.u32 8388607, %v647_v8 }
  0x92   : > { %v2447_v12 = vadd.s32 4294967169, %v651_v10  ;;  %v655_v17 = vor.u32 8388608, %v654_v13 }
  0x93   : > { %v483_v14 = vpop.permute.xlu0 %482 }
  0x94   : > { %v657_v15 = vadd.s32 1, %v2447_v12  ;;  %v2821_v16 = vmul.f32 %v483_v14, %v2816_v11  ;;  %v2825_v23 = vshll.u32 %v655_v17, 8 }
  0x96   : > { %vm658_vm0 = vcmp.gt.s32.totalorder %v657_v15, 0  ;;  %v492_v19 = vand.u32 2147483647, %v2821_v16  ;;  %v495_v20 = vand.u32 2139095040, %v2821_v16  ;;  %v696_v63 = vand.u32 65535, %v2825_v23 }
  0x97   : > { %v659_v18 = vsel %vm658_vm0, %v657_v15, 0  ;;  %v697_v10 = vshrl.u32 %v2825_v23, 16 }
  0x98   : > { %v661_v21 = vand.u32 31, %v659_v18  ;;  %v496_v24 = vshrl.u32 %v495_v20, 23  ;;  %v660_v26 = vshrl.u32 %v659_v18, 5  ;;  %v499_v31 = vand.u32 8388607, %v492_v19 }
  0x9a   : > { %v662_v22 = vsub.s32 32, %v661_v21  ;;  %v664_v28 = vshll.u32 %v2645_v27, %v661_v21  ;;  %v667_v30 = vshll.u32 %v2646_v29, %v661_v21  ;;  %v670_v35 = vshll.u32 %v2647_v33, %v661_v21 }
  0x9b   : > { %v673_v38 = vshll.u32 %v2648_v36, %v661_v21  ;;  %v676_v41 = vshll.u32 %v2649_v39, %v661_v21  ;;  %v2444_v47 = vadd.s32 4294967169, %v496_v24  ;;  %vm679_vm2 = vcmp.lt.s32.totalorder %v660_v26, 1 }
  0x9c   : > { %v665_v32 = vshrl.u32 %v2646_v29, %v662_v22  ;;  %v668_v34 = vshrl.u32 %v2647_v33, %v662_v22  ;;  %v671_v37 = vshrl.u32 %v2648_v36, %v662_v22  ;;  %v674_v40 = vshrl.u32 %v2649_v39, %v662_v22 }
  0x9d   : > { %v677_v43 = vshrl.u32 %v2650_v42, %v662_v22  ;;  %vm682_vm3 = vcmp.lt.s32.totalorder %v660_v26, 4  ;;  %vm680_vm4 = vcmp.lt.s32.totalorder %v660_v26, 2  ;;  %vm681_vm5 = vcmp.lt.s32.totalorder %v660_v26, 3 }
  0x9e   : > { %v666_v44 = vor.u32 %v665_v32, %v664_v28  ;;  %v669_v45 = vor.u32 %v668_v34, %v667_v30  ;;  %v672_v46 = vor.u32 %v671_v37, %v670_v35  ;;  %v675_v48 = vor.u32 %v674_v40, %v673_v38 }
  0x9f   : > { %v678_v49 = vor.u32 %v677_v43, %v676_v41  ;;  %v500_v54 = vor.u32 8388608, %v499_v31  ;;  %v502_v55 = vadd.s32 1, %v2444_v47  ;;  %v663_v56 = vshrl.u32 %v2645_v27, %v662_v22 }
  0xa0   : > { %v684_v50 = vsel %vm682_vm3, %v672_v46, 2102212464  ;;  %v691_v51 = vsel %vm679_vm2, %v669_v45, %v672_v46  ;;  %v688_v52 = vsel %vm682_vm3, %v675_v48, 920167782  ;;  %v687_v57 = vsel %vm679_vm2, %v666_v44, %v669_v45 }
  0xa1   : > { %v692_v53 = vsel %vm682_vm3, %v678_v49, 1326507024  ;;  %v689_v58 = vsel %vm681_vm5, %v672_v46, %v688_v52  ;;  %vm503_vm6 = vcmp.gt.s32.totalorder %v502_v55, 0  ;;  %v683_v61 = vsel %vm679_vm2, %v663_v56, %v666_v44 }
  0xa2   : > { %v693_v59 = vsel %vm681_vm5, %v675_v48, %v692_v53  ;;  %v685_v62 = vsel %vm681_vm5, %v669_v45, %v684_v50  ;;  %v690_v1 = vsel %vm680_vm4, %v687_v57, %v689_v58  ;;  %v504_v4 = vsel %vm503_vm6, %v502_v55, 0 }
  0xa3   : > { %v694_v60 = vsel %vm680_vm4, %v691_v51, %v693_v59  ;;  %v2851_v6 = vshll.u32 %v500_v54, 8  ;;  %v506_v12 = vand.u32 31, %v504_v4  ;;  %v2857_v13 = vsel %vm680_vm4, %v683_v61, %v685_v62 }
  0xa4   : > { %v699_v0 = vshrl.u32 %v694_v60, 16  ;;  %v698_v3 = vand.u32 65535, %v694_v60  ;;  %v720_v14 = vand.u32 65535, %v690_v1  ;;  %v721_v15 = vshrl.u32 %v690_v1, 16 }
  0xa5   : > { %v2859_v20 = vsub.s32 32, %v506_v12  ;;  %v2862_v21 = vand.u32 65535, %v2851_v6  ;;  %v2865_v24 = vshrl.u32 %v504_v4, 5  ;;  %v509_v28 = vshll.u32 %v2645_v27, %v506_v12 }
  0xa6   : > { %v2853_v9 = vmul.u32 %v699_v0, %v696_v63  ;;  %v700_v17 = vmul.u32 %v698_v3, %v696_v63  ;;  %v703_v18 = vmul.u32 %v699_v0, %v697_v10  ;;  %v512_v30 = vshll.u32 %v2646_v29, %v506_v12 }
  0xa7   : > { %v510_v26 = vshrl.u32 %v2646_v29, %v2859_v20  ;;  %v513_v31 = vshrl.u32 %v2647_v33, %v2859_v20  ;;  %v515_v32 = vshll.u32 %v2647_v33, %v506_v12  ;;  %v516_v34 = vshrl.u32 %v2648_v36, %v2859_v20 }
  0xa8   : > { %v704_v22 = vshll.u32 %v2853_v9, 16  ;;  %v518_v35 = vshll.u32 %v2648_v36, %v506_v12  ;;  %v519_v37 = vshrl.u32 %v2649_v39, %v2859_v20  ;;  %v521_v38 = vshll.u32 %v2649_v39, %v506_v12 }
  0xa9   : > { %v522_v40 = vshrl.u32 %v2650_v42, %v2859_v20  ;;  %v2882_v41 = vor.u32 %v510_v26, %v509_v28  ;;  %v2884_v43 = vor.u32 %v513_v31, %v512_v30  ;;  %v2886_v44 = vor.u32 %v516_v34, %v515_v32 }
  0xaa   : > { %v702_v45 = vmul.u32 %v698_v3, %v697_v10  ;;  %vm708_vm7 = vc.u32 %v700_v17, %v704_v22  ;;  %v520_v46 = vor.u32 %v519_v37, %v518_v35  ;;  %vm524_vm8 = vcmp.lt.s32.totalorder %v2865_v24, 1 }
  0xab   : > { %v523_v47 = vor.u32 %v522_v40, %v521_v38  ;;  %v723_v48 = vmul.u32 %v721_v15, %v696_v63  ;;  %vm527_vm9 = vcmp.lt.s32.totalorder %v2865_v24, 4  ;;  %v532_v49 = vsel %vm524_vm8, %v2882_v41, %v2884_v43 }
  0xac   : > { %v536_v50 = vsel %vm524_vm8, %v2884_v43, %v2886_v44  ;;  %v710_v51 = vadd.s32 %v704_v22, %v700_v17  ;;  %vm526_vm10 = vcmp.lt.s32.totalorder %v2865_v24, 3  ;;  %v533_v52 = vsel %vm527_vm9, %v520_v46, 920167782 }
  0xad   : > { %v537_v53 = vsel %vm527_vm9, %v523_v47, 1326507024  ;;  %vm525_vm11 = vcmp.lt.s32.totalorder %v2865_v24, 2  ;;  %v534_v54 = vsel %vm526_vm10, %v2886_v44, %v533_v52  ;;  %v709_v56 = vsel %vm708_vm7, 1, %v2643_v2 }
  0xae   : > { %v538_v55 = vsel %vm526_vm10, %v520_v46, %v537_v53  ;;  %v535_v57 = vsel %vm525_vm11, %v532_v49, %v534_v54  ;;  %v706_v59 = vshll.u32 %v702_v45, 16  ;;  %v724_v60 = vmul.u32 %v720_v14, %v697_v10 }
  0xaf   : > { %v539_v58 = vsel %vm525_vm11, %v536_v50, %v538_v55  ;;  %v542_v61 = vshrl.u32 %v2851_v6, 16  ;;  %v711_v1 = vadd.s32 %v709_v56, %v703_v18  ;;  %v566_v3 = vshrl.u32 %v535_v57, 16 }
  0xb0   : > { %v543_v62 = vand.u32 65535, %v539_v58  ;;  %v544_v0 = vshrl.u32 %v539_v58, 16  ;;  %vm712_vm12 = vc.u32 %v710_v51, %v706_v59  ;;  %v722_v4 = vmul.u32 %v720_v14, %v696_v63 }
  0xb1   : > { %v726_v12 = vshll.u32 %v723_v48, 16  ;;  %v725_v17 = vmul.u32 %v721_v15, %v697_v10  ;;  %v565_v28 = vand.u32 65535, %v535_v57  ;;  %v705_v30 = vshrl.u32 %v2853_v9, 16 }
  0xb2   : > { %v546_v22 = vmul.u32 %v544_v0, %v2862_v21  ;;  %v545_v26 = vmul.u32 %v543_v62, %v2862_v21  ;;  %v713_v31 = vsel %vm712_vm12, 1, %v2643_v2  ;;  %v728_v32 = vshll.u32 %v724_v60, 16 }
  0xb3   : > { %vm730_vm13 = vc.u32 %v722_v4, %v726_v12  ;;  %v715_v35 = vadd.s32 %v713_v31, %v711_v1  ;;  %v732_v37 = vadd.s32 %v726_v12, %v722_v4  ;;  %v568_v63 = vmul.u32 %v566_v3, %v2862_v21 }
  0xb4   : > { %v549_v34 = vshll.u32 %v546_v22, 16  ;;  %v731_v18 = vsel %vm730_vm13, 1, %v2643_v2  ;;  %v707_v14 = vshrl.u32 %v702_v45, 16  ;;  %v547_v15 = vmul.u32 %v543_v62, %v542_v61 }
  0xb5   : > { %v733_v10 = vadd.s32 %v731_v18, %v725_v17  ;;  %v716_v40 = vadd.s32 %v715_v35, %v705_v30  ;;  %vm734_vm15 = vc.u32 %v732_v37, %v728_v32  ;;  %v548_v9 = vmul.u32 %v544_v0, %v542_v61 }
  0xb6   : > { %vm553_vm14 = vc.u32 %v545_v26, %v549_v34  ;;  %v555_v38 = vadd.s32 %v549_v34, %v545_v26  ;;  %v727_v46 = vshrl.u32 %v723_v48, 16  ;;  %v735_v47 = vsel %vm734_vm15, 1, %v2643_v2 }
  0xb7   : > { %v551_v49 = vshll.u32 %v547_v15, 16  ;;  %v737_v50 = vadd.s32 %v735_v47, %v733_v10  ;;  %v554_v51 = vsel %vm553_vm14, 1, %v2643_v2  ;;  %v567_v52 = vmul.u32 %v565_v28, %v2862_v21 }
  0xb8   : > { %v569_v53 = vmul.u32 %v565_v28, %v542_v61  ;;  %v717_v54 = vadd.s32 %v716_v40, %v707_v14  ;;  %v556_v55 = vadd.s32 %v554_v51, %v548_v9  ;;  %v571_v45 = vshll.u32 %v568_v63, 16 }
  0xb9   : > { %vm557_vm0 = vc.u32 %v555_v38, %v551_v49  ;;  %v570_v56 = vmul.u32 %v566_v3, %v542_v61  ;;  %v729_v57 = vshrl.u32 %v724_v60, 16  ;;  %v738_v58 = vadd.s32 %v737_v50, %v727_v46 }
  0xba   : > { %v558_v59 = vsel %vm557_vm0, 1, %v2643_v2  ;;  %v736_v62 = vadd.s32 %v732_v37, %v728_v32  ;;  %v550_v48 = vshrl.u32 %v546_v22, 16  ;;  %vm575_vm1 = vc.u32 %v567_v52, %v571_v45 }
  0xbb   : > { %v560_v0 = vadd.s32 %v558_v59, %v556_v55  ;;  %v739_v1 = vadd.s32 %v738_v58, %v729_v57  ;;  %v573_v4 = vshll.u32 %v569_v53, 16  ;;  %v576_v12 = vsel %vm575_vm1, 1, %v2643_v2 }
  0xbc   : > { %v577_v17 = vadd.s32 %v571_v45, %v567_v52  ;;  %vm742_vm2 = vc.u32 %v717_v54, %v736_v62  ;;  %v578_v28 = vadd.s32 %v576_v12, %v570_v56  ;;  %v529_v61 = vsel %vm527_vm9, %v2886_v44, 2102212464 }
  0xbd   : > { %v561_v21 = vadd.s32 %v560_v0, %v550_v48  ;;  %v743_v60 = vadd.s32 1, %v739_v1  ;;  %v740_v3 = vmul.u32 %v2825_v23, %v2857_v13  ;;  %v508_v22 = vshrl.u32 %v2645_v27, %v2859_v20 }
  0xbe   : > { %vm579_vm3 = vc.u32 %v577_v17, %v573_v4  ;;  %v552_v30 = vshrl.u32 %v547_v15, 16  ;;  %v572_v32 = vshrl.u32 %v568_v63, 16  ;;  %v530_v44 = vsel %vm526_vm10, %v2884_v43, %v529_v61 }
  0xbf   : > { %v580_v26 = vsel %vm579_vm3, 1, %v2643_v2  ;;  %v744_v31 = vsel %vm742_vm2, %v743_v60, %v739_v1  ;;  %v528_v35 = vsel %vm524_vm8, %v508_v22, %v2882_v41  ;;  %v574_v23 = vshrl.u32 %v569_v53, 16 }
  0xc0   : > { %v582_v34 = vadd.s32 %v580_v26, %v578_v28  ;;  %v745_v18 = vadd.s32 %v744_v31, %v740_v3  ;;  %v562_v37 = vadd.s32 %v561_v21, %v552_v30  ;;  %v581_v20 = vadd.s32 %v577_v17, %v573_v4 }
  0xc1   : > { %v531_v10 = vsel %vm525_vm11, %v528_v35, %v530_v44  ;;  %vm649_vm9 = vcmp.lt.s32.totalorder %v2812_v7, 0  ;;  %vm2951_vm10 = vcmp.le.f32.partialorder %v647_v8, 0.7853982  ;;  %vm494_vm11 = vcmp.lt.s32.totalorder %v2821_v16, 0 }
  0xc2   : > { %v583_v13 = vadd.s32 %v582_v34, %v572_v32  ;;  %v746_v14 = vadd.s32 536870912, %v745_v18  ;;  %vm587_vm4 = vc.u32 %v562_v37, %v581_v20  ;;  %v585_v40 = vmul.u32 %v2851_v6, %v531_v10 }
  0xc3   : > { %v741_v6 = vadd.s32 %v736_v62, %v717_v54  ;;  %v586_v61 = vadd.s32 %v581_v20, %v562_v37  ;;  %vm2961_vm12 = vcmp.le.f32.partialorder %v492_v19, 0.7853982  ;;  %vm790_vm0 = vweird.f32 %v2812_v7 }
  0xc4   : > { %v584_v15 = vadd.s32 %v583_v13, %v574_v23  ;;  %v747_v63 = vshrl.u32 %v746_v14, 30  ;;  %vm818_vm1 = vcmask 130048  }
  0xc6   : > { %v588_v38 = vadd.s32 1, %v584_v15  ;;  %v748_v41 = vshll.u32 %v747_v63, 30  ;;  %v771_v13 = vsub.s32 4, %v747_v63 }
  0xc8   : > { %v589_v9 = vsel %vm587_vm4, %v588_v38, %v584_v15  ;;  %v749_v46 = vsub.s32 %v745_v18, %v748_v41 }
  0xc9   : > { %v590_v47 = vadd.s32 %v589_v9, %v585_v40  ;;  %v772_v9 = vsel %vm649_vm9, %v771_v13, %v747_v63 }
  0xca   : > { %vm750_vm5 = vcmp.lt.s32.totalorder %v749_v46, 0  ;;  %v751_v43 = vsub.s32 0, %v749_v46 }
  0xcb   : > { %v591_v49 = vadd.s32 536870912, %v590_v47 }
  0xcc   : > { %v752_v50 = vsel %vm750_vm5, %v751_v43, %v749_v46  ;;  %vm635_vm5 = vweird.f32 %v2821_v16 }
  0xcd   : > { %v2943_v51 = vshrl.u32 %v591_v49, 30  ;;  %v753_v52 = vclz %v752_v50  ;;  %v774_v50 = vsel %vm2951_vm10, 0, %v772_v9 }
  0xcf   : > { %v593_v24 = vshll.u32 %v2943_v51, 30  ;;  %v2448_v53 = vadd.s32 4294967294, %v753_v52  ;;  %v616_v49 = vsub.s32 4, %v2943_v51 }
  0xd1   : > { %v594_v55 = vsub.s32 %v590_v47, %v593_v24  ;;  %vm2449_vm6 = vcmp.lt.s32.totalorder %v2448_v53, 0  ;;  %v617_v19 = vsel %vm494_vm11, %v616_v49, %v2943_v51 }
  0xd2   : > { %v756_v45 = vsel %vm2449_vm6, 0, %v2448_v53  ;;  %vm837_vm6 = vcmask 7168  }
  0xd3   : > { %vm595_vm7 = vcmp.lt.s32.totalorder %v594_v55, 0  ;;  %v596_v56 = vsub.s32 0, %v594_v55  ;;  %v757_v57 = vsub.s32 32, %v756_v45  ;;  %v761_v58 = vsub.s32 4294967266, %v756_v45 }
  0xd4   : > { %v758_v48 = vshll.u32 %v749_v46, %v756_v45 }
  0xd5   : > { %v597_v59 = vsel %vm595_vm7, %v596_v56, %v594_v55  ;;  %v759_v0 = vshrl.u32 %v741_v6, %v757_v57  ;;  %v762_v1 = vadd.s32 127, %v761_v58  ;;  %v791_v6 = vadd.s32 3, %v774_v50 }
  0xd6   : > { %v598_v4 = vclz %v597_v59 }
  0xd7   : > { %v760_v12 = vor.u32 %v759_v0, %v758_v48  ;;  %v763_v17 = vshll.u32 %v762_v1, 23 }
  0xd8   : > { %v2445_v21 = vadd.s32 4294967294, %v598_v4 }
  0xd9   : > { %v764_v28 = vor.u32 4788187, %v763_v17  ;;  %v767_v22 = vcvt.s32.f32 %v760_v12  ;;  %v792_v17 = vand.u32 3, %v791_v6  ;;  %v913_v6 = vlaneseq }
  0xda   : > { %vm2446_vm8 = vcmp.lt.s32.totalorder %v2445_v21, 0 }
  0xdb   : > { %v601_v60 = vsel %vm2446_vm8, 0, %v2445_v21  ;;  %v765_v3 = vand.u32 2147483647, %v764_v28  ;;  %v619_v21 = vsel %vm2961_vm12, 0, %v617_v19  ;;  %vm793_vm13 = vcmp.lt.s32.totalorder %v792_v17, 2 }
  0xdc   : > { %v602_v30 = vsub.s32 32, %v601_v60  ;;  %v606_v26 = vsub.s32 4294967266, %v601_v60  ;;  %v603_v54 = vshll.u32 %v594_v55, %v601_v60  ;;  %vm794_vm14 = vcmp.eq.s32.totalorder %v792_v17, 0 }
  0xdd   : > { %v768_v31 = vmul.f32 %v767_v22, %v765_v3  ;;  %vm797_vm15 = vcmp.eq.s32.totalorder %v792_v17, 2  ;;  %v636_v51 = vadd.s32 3, %v619_v21  ;;  %v914_v19 = vshrl.u32 %v913_v6, 7 }
  0xde   : > { %v604_v62 = vshrl.u32 %v586_v61, %v602_v30  ;;  %v607_v32 = vadd.s32 127, %v606_v26 }
  0xdf   : > { %v769_v34 = vxor.u32 2147483648, %v768_v31  ;;  %v637_v13 = vand.u32 3, %v636_v51 }
  0xe0   : > { %v605_v35 = vor.u32 %v604_v62, %v603_v54  ;;  %v608_v44 = vshll.u32 %v607_v32, 23 }
  0xe1   : > { %v770_v37 = vsel %vm649_vm9, %v769_v34, %v768_v31  ;;  %vm639_vm2 = vcmp.eq.s32.totalorder %v637_v13, 0  ;;  %vm642_vm3 = vcmp.eq.s32.totalorder %v637_v13, 2  ;;  %vm638_vm4 = vcmp.lt.s32.totalorder %v637_v13, 2 }
  0xe2   : > { %v609_v23 = vor.u32 4788187, %v608_v44  ;;  %v773_v14 = vsel %vm2951_vm10, %v2812_v7, %v770_v37  ;;  %v612_v15 = vcvt.s32.f32 %v605_v35  ;;  %v812_v35 = vpop.permute.xlu1 %811  ;;  %vm851_vm9 = vcmask 261120  }
  0xe3   : > { %v775_v20 = vmul.f32 %v773_v14, %v773_v14 }
  0xe4   : > { %v610_v10 = vand.u32 2147483647, %v609_v23 }
  0xe5   : > { %v776_v38 = vmul.f32 -0.001358992, %v775_v20  ;;  %v783_v40 = vmul.f32 -0.00019511016, %v775_v20 }
  0xe6   : > { %v613_v41 = vmul.f32 %v612_v15, %v610_v10 }
  0xe7   : > { %v777_v46 = vadd.f32 0.041655596, %v776_v38  ;;  %v784_v47 = vadd.f32 0.008332121, %v783_v40 }
  0xe8   : > { %v614_v8 = vxor.u32 2147483648, %v613_v41 }
  0xe9   : > { %v778_v52 = vmul.f32 %v777_v46, %v775_v20  ;;  %v785_v24 = vmul.f32 %v784_v47, %v775_v20 }
  0xea   : > { %v615_v53 = vsel %vm494_vm11, %v614_v8, %v613_v41  ;;  %v807_v47 = vpop.permute.xlu1 %806 }
  0xeb   : > { %v618_v63 = vsel %vm2961_vm12, %v2821_v16, %v615_v53  ;;  %v779_v55 = vadd.f32 -0.4999988, %v778_v52  ;;  %v786_v45 = vadd.f32 -0.16666654, %v785_v24  ;;  %v2573_v24 = vpop.permute.xlu2 %2572  ;;  %vm472_vm12 = vcmask 482304  }
  0xec   : > { %v620_v56 = vmul.f32 %v618_v63, %v618_v63  ;;  %v2574_v53 = vunpack.i.l.bf16 %v2573_v24  ;;  %473 = vst.msk [vmem:[#allocation4 + $0x8] sm:$0xff] %vm472_vm12, %v2644_v25 }
  0xed   : > { %v780_v57 = vmul.f32 %v779_v55, %v775_v20  ;;  %v787_v58 = vmul.f32 %v786_v45, %v775_v20 }
  0xee   : > { %v621_v59 = vmul.f32 -0.001358992, %v620_v56  ;;  %v628_v48 = vmul.f32 -0.00019511016, %v620_v56 }
  0xef   : > { %v781_v0 = vadd.f32 1.0, %v780_v57  ;;  %v788_v1 = vadd.f32 1.0, %v787_v58  ;;  %v915_v58 = vadd.s32 8, %v914_v19 }
  0xf0   : > { %v622_v4 = vadd.f32 0.041655596, %v621_v59  ;;  %v629_v12 = vadd.f32 0.008332121, %v628_v48  ;;  %v917_v59 = vand.u32 127, %v913_v6 }
  0xf1   : > { %v789_v28 = vmul.f32 %v788_v1, %v773_v14  ;;  %v798_v61 = vxor.u32 2147483648, %v781_v0  ;;  %v919_v48 = vmul.u32 2, %v915_v58  ;;  %v2653_v1 = vmov 1.0  }
  0xf2   : > { %v623_v60 = vmul.f32 %v622_v4, %v620_v56  ;;  %v630_v3 = vmul.f32 %v629_v12, %v620_v56  ;;  %v2575_v4 = vunpack.i.h.bf16 %v2573_v24 }
  0xf3   : > { %v795_v22 = vxor.u32 2147483648, %v789_v28  ;;  %v799_v54 = vsel %vm797_vm15, %v798_v61, %v789_v28  ;;  %vm921_vm7 = vcmp.eq.s32.totalorder %v917_v59, %v919_v48 }
  0xf4   : > { %v624_v30 = vadd.f32 -0.4999988, %v623_v60  ;;  %v631_v26 = vadd.f32 -0.16666654, %v630_v3  ;;  %2459 = vmatpush.msk.msra.mxu3 %vm921_vm7, %v2653_v1  ;;  %v846_v60 = vld [vmem:[%s3578_s3] sm:$0xff] }
  0xf5   : > { %v796_v31 = vsel %vm794_vm14, %v781_v0, %v795_v22  ;;  %v927_v0 = vadd.s32 1, %v919_v48  ;;  %v885_v22 = vld [vmem:[%s3579_s4] sm:$0xff] }
  0xf6   : > { %v625_v62 = vmul.f32 %v624_v30, %v620_v56  ;;  %v632_v32 = vmul.f32 %v631_v26, %v620_v56  ;;  %v800_v34 = vsel %vm793_vm13, %v796_v31, %v799_v54  ;;  %v918_v26 = vmul.u32 2, %v914_v19 }
  0xf7   : > { %v801_v44 = vsel %vm790_vm0, nan, %v800_v34  ;;  %vm929_vm8 = vcmp.eq.s32.totalorder %v917_v59, %v927_v0 }
  0xf8   : > { %v626_v18 = vadd.f32 1.0, %v625_v62  ;;  %v633_v37 = vadd.f32 1.0, %v632_v32  ;;  %v803_v23 = vmul.f32 %v801_v44, %v801_v44  ;;  %2456 = vmatpush.msk.msra.mxu2 %vm929_vm8, %v2653_v1  ;;  %v926_v51 = vadd.s32 1, %v918_v26  ;;  %v987_v62 = vld [vmem:[%s3582_s7] sm:$0xff] }
  0xf9   : > { %vm920_vm11 = vcmp.eq.s32.totalorder %v917_v59, %v918_v26 }
  0xfa   : > { %v634_v14 = vmul.f32 %v633_v37, %v618_v63  ;;  %v643_v20 = vxor.u32 2147483648, %v626_v18  ;;  %v815_v10 = vmul.f32 %v812_v35, %v803_v23  ;;  %vm928_vm10 = vcmp.eq.s32.totalorder %v917_v59, %v926_v51  ;;  %2460 = vmatpush.msk.msra.mxu3 %vm920_vm11, %v2653_v1 }
  0xfb   : > { %2457 = vmatpush.msk.msra.mxu2 %vm928_vm10, %v2653_v1 }
  0xfc   : > { %v640_v15 = vxor.u32 2147483648, %v634_v14  ;;  %v817_v38 = vadd.f32 %v815_v10, %v2809_v5  ;;  %v644_v41 = vsel %vm642_vm3, %v643_v20, %v634_v14  ;;  %v988_v5 = vld [vmem:[%s3581_s6] sm:$0xff] }
  0xfe   : > { %v641_v40 = vsel %vm639_vm2, %v626_v18, %v640_v15  ;;  %820 = vst.msk [vmem:[#allocation2 + $0x18] sm:$0xff] %vm818_vm1, %v817_v38 }
  0xff   : > { %v645_v7 = vsel %vm638_vm4, %v641_v40, %v644_v41 }
 0x100   : > { %v646_v9 = vsel %vm635_vm5, nan, %v645_v7 }
 0x101   : > { %v802_v46 = vmul.f32 %v646_v9, %v646_v9 }
 0x103   : > { %v814_v8 = vmul.f32 %v807_v47, %v802_v46 }
 0x105   : > { %v816_v43 = vadd.f32 %v814_v8, %v2816_v11  ;;  %v824_v49 = vld [vmem:[#allocation2 + $0x18] sm:$0xff]  ;;  %v980_v11 = vld [vmem:[%s3580_s5] sm:$0xff] }
 0x106   : > { %879 = vrot.lane.b32.xlu1 %v824_v49, %s2652_s22  ;;  %835 = vrot.lane.b32.xlu2 %v824_v49, %s2651_s15  ;;  %845 = vst.msk [vmem:[#allocation3 + $0x18] sm:$0xff] %vm818_vm1, %v824_v49 }
 0x107   : > { %819 = vst.msk [vmem:[#allocation2 + $0x8] sm:$0xff] %vm818_vm1, %v816_v43 }
 0x10d   : > { %v850_v50 = vld [vmem:[#allocation3 + $0x18] sm:$0xff] }
 0x10e   : > { %v822_v16 = vld [vmem:[#allocation2 + $0x8] sm:$0xff]  ;;  %991 = vperm.xlu1 %2570, %v988_v5   ;;  %867 = vmatpush.msra.mxu0 %v850_v50 }
 0x10f   : > { %877 = vrot.lane.b32.xlu2 %v822_v16, %s2652_s22  ;;  %844 = vst.msk [vmem:[#allocation3 + $0x10] sm:$0xff] %vm818_vm1, %v822_v16  ;;  %831 = vrot.lane.b32.xlu0 %v822_v16, %s2651_s15 }
 0x116   : > { %v849_v52 = vld [vmem:[#allocation3 + $0x10] sm:$0xff] }
 0x117   : > { %868 = vmatpush.msra.mxu0 %v849_v52  ;;  %983 = vperm.xlu0 %2569, %v980_v11  }
 0x118   : > { %1153 = vperm.xlu2 %2576, %v987_v62  }
 0x120   : > { %1171 = vrot.lane.b32.xlu2 %v2644_v25, %s2654_s25 }
 0x160   : > { %v836_v63 = vpop.permute.xlu2 %835 }
 0x161   : > { %v839_v55 = vsel %vm837_vm6, %v2574_v53, %v836_v63 }
 0x162   : > { %843 = vst.msk [vmem:[#allocation3 + $0x8] sm:$0xff] %vm818_vm1, %v839_v55 }
 0x169   : > { %v878_v45 = vpop.permute.xlu2 %877  ;;  %v848_v56 = vld [vmem:[#allocation3 + $0x8] sm:$0xff] }
 0x16a   : > { %883 = vst.msk [vmem:[#allocation3 + $0x10] sm:$0xff] %vm818_vm1, %v878_v45  ;;  %869 = vmatpush.msra.mxu0 %v848_v56 }
 0x16b   : > { %876 = vst.msk [vmem:[#allocation3 + $0x8] sm:$0xff] %vm818_vm1, %v824_v49 }
 0x171   : > { %v888_v28 = vld [vmem:[#allocation3 + $0x10] sm:$0xff] }
 0x172   : > { %v887_v61 = vld [vmem:[#allocation3 + $0x8] sm:$0xff] }
 0x178   : > { %v880_v57 = vpop.permute.xlu1 %879 }
 0x179   : > { %884 = vst.msk [vmem:[#allocation3 + $0x18] sm:$0xff] %vm818_vm1, %v880_v57 }
 0x180   : > { %v889_v12 = vld [vmem:[#allocation3 + $0x18] sm:$0xff]  ;;  %v992_v37 = vpop.permute.xlu1 %991 }
 0x181   : > { %v832_v17 = vpop.permute.xlu0 %831  ;;  %905 = vmatpush.msra.mxu1 %v889_v12 }
 0x182   : > { %v838_v21 = vsel %vm837_vm6, %v2575_v4, %v832_v17 }
 0x183   : > { %842 = vst.msk [vmem:[#allocation3] sm:$0xff] %vm818_vm1, %v838_v21  ;;  %906 = vmatpush.msra.mxu1 %v888_v28 }
 0x185   : > { %907 = vmatpush.msra.mxu1 %v887_v61 }
 0x189   : > { %v984_v44 = vpop.permute.xlu0 %983 }
 0x18a   : > { %v847_v3 = vld [vmem:[#allocation3] sm:$0xff] }
 0x18b   : > { %870 = vmatpush.msra.mxu0 %v847_v3  ;;  %875 = vst.msk [vmem:[#allocation3] sm:$0xff] %vm818_vm1, %v822_v16 }
 0x18c   : > { %2450 = vmatmul.msk.f32.vlgmr.msra.gmra.mxu0 %vm851_vm9, %v846_v60 }
 0x192   : > { %v886_v30 = vld [vmem:[#allocation3] sm:$0xff] }
 0x193   : > { %908 = vmatpush.msra.mxu1 %v886_v30 }
 0x194   : > { %2451 = vmatmul.msk.f32.vlgmr.msra.gmra.mxu1 %vm851_vm9, %v885_v22 }
 0x209   : > { %v872_v31 = vpop.f32.mrf.mxu0 }
 0x20a   : > { %2461 = vmatmul.msk.f32.vlgmr.msra.gmra.mxu3 %vm818_vm1, %v872_v31 }
 0x211   : > { %v910_v54 = vpop.f32.mrf.mxu1 }
 0x212   : > { %2458 = vmatmul.msk.f32.vlgmr.msra.gmra.mxu2 %vm818_vm1, %v910_v54 }
 0x28d   : > { %v977_v32 = vpop.f32.mrf.mxu3 }
 0x295   : > { %v954_v34 = vpop.f32.mrf.mxu2 }
 0x296   : > { %v978_v35 = vadd.f32 %v977_v32, %v954_v34 }
 0x298   : > { %v3016_v18 = vadd.f32 %v984_v44, %v978_v35 }
 0x29a   : > { %v3019_v23 = vmul.f32 %v992_v37, %v3016_v18 }
 0x29c   : > { %v998_v13 = vand.u32 2139095040, %v3019_v23  ;;  %v995_v10 = vand.u32 2147483647, %v3019_v23  ;;  %vm997_vm11 = vcmp.lt.s32.totalorder %v3019_v23, 0 }
 0x29e   : > { %v999_v14 = vshrl.u32 %v998_v13, 23  ;;  %v1002_v25 = vand.u32 8388607, %v995_v10  ;;  %vm996_vm12 = vcmp.le.f32.partialorder %v995_v10, 0.7853982 }
 0x2a0   : > { %v2462_v20 = vadd.s32 4294967169, %v999_v14  ;;  %v1003_v9 = vor.u32 8388608, %v1002_v25 }
 0x2a2   : > { %v1005_v15 = vadd.s32 1, %v2462_v20  ;;  %v3038_v56 = vshll.u32 %v1003_v9, 8 }
 0x2a4   : > { %vm1006_vm13 = vcmp.gt.s32.totalorder %v1005_v15, 0  ;;  %v1044_v4 = vand.u32 65535, %v3038_v56  ;;  %v1045_v12 = vshrl.u32 %v3038_v56, 16 }
 0x2a5   : > { %v1007_v38 = vsel %vm1006_vm13, %v1005_v15, 0 }
 0x2a6   : > { %v1009_v40 = vand.u32 31, %v1007_v38  ;;  %v3025_v7 = vshrl.u32 %v1007_v38, 5 }
 0x2a8   : > { %v1010_v41 = vsub.s32 32, %v1009_v40  ;;  %v1012_v46 = vshll.u32 %v2645_v27, %v1009_v40  ;;  %v1015_v47 = vshll.u32 %v2646_v29, %v1009_v40  ;;  %v1018_v49 = vshll.u32 %v2647_v33, %v1009_v40 }
 0x2a9   : > { %v1021_v16 = vshll.u32 %v2648_v36, %v1009_v40  ;;  %v1024_v11 = vshll.u32 %v2649_v39, %v1009_v40  ;;  %vm1027_vm14 = vcmp.lt.s32.totalorder %v3025_v7, 1  ;;  %vm1030_vm15 = vcmp.lt.s32.totalorder %v3025_v7, 4 }
 0x2aa   : > { %v1013_v8 = vshrl.u32 %v2646_v29, %v1010_v41  ;;  %v1016_v43 = vshrl.u32 %v2647_v33, %v1010_v41  ;;  %v1019_v5 = vshrl.u32 %v2648_v36, %v1010_v41  ;;  %v1022_v50 = vshrl.u32 %v2649_v39, %v1010_v41 }
 0x2ab   : > { %v1025_v52 = vshrl.u32 %v2650_v42, %v1010_v41  ;;  %vm1029_vm0 = vcmp.lt.s32.totalorder %v3025_v7, 3  ;;  %vm1028_vm1 = vcmp.lt.s32.totalorder %v3025_v7, 2  ;;  %v1011_v40 = vshrl.u32 %v2645_v27, %v1010_v41 }
 0x2ac   : > { %v1014_v24 = vor.u32 %v1013_v8, %v1012_v46  ;;  %v1017_v53 = vor.u32 %v1016_v43, %v1015_v47  ;;  %v1020_v63 = vor.u32 %v1019_v5, %v1018_v49  ;;  %v1023_v55 = vor.u32 %v1022_v50, %v1021_v16 }
 0x2ad   : > { %v1026_v45 = vor.u32 %v1025_v52, %v1024_v11 }
 0x2ae   : > { %v1035_v6 = vsel %vm1027_vm14, %v1014_v24, %v1017_v53  ;;  %v1039_v19 = vsel %vm1027_vm14, %v1017_v53, %v1020_v63  ;;  %v1036_v57 = vsel %vm1030_vm15, %v1023_v55, 920167782  ;;  %v1032_v15 = vsel %vm1030_vm15, %v1020_v63, 2102212464 }
 0x2af   : > { %v1040_v58 = vsel %vm1030_vm15, %v1026_v45, 1326507024  ;;  %v1037_v59 = vsel %vm1029_vm0, %v1020_v63, %v1036_v57  ;;  %v1031_v49 = vsel %vm1027_vm14, %v1011_v40, %v1014_v24  ;;  %v1033_v5 = vsel %vm1029_vm0, %v1017_v53, %v1032_v15 }
 0x2b0   : > { %v1041_v48 = vsel %vm1029_vm0, %v1023_v55, %v1040_v58  ;;  %v1038_v0 = vsel %vm1028_vm1, %v1035_v6, %v1037_v59  ;;  %v1034_v41 = vsel %vm1028_vm1, %v1031_v49, %v1033_v5  ;;  %vm1138_vm0 = vweird.f32 %v3019_v23 }
 0x2b1   : > { %v1042_v1 = vsel %vm1028_vm1, %v1039_v19, %v1041_v48  ;;  %v1068_v28 = vand.u32 65535, %v1038_v0  ;;  %v1069_v61 = vshrl.u32 %v1038_v0, 16  ;;  %v1088_v19 = vmul.u32 %v3038_v56, %v1034_v41 }
 0x2b2   : > { %v1046_v17 = vand.u32 65535, %v1042_v1  ;;  %v1047_v21 = vshrl.u32 %v1042_v1, 16  ;;  %vm1167_vm1 = vcmask 23552  }
 0x2b3   : > { %v1071_v22 = vmul.u32 %v1069_v61, %v1044_v4  ;;  %v1072_v30 = vmul.u32 %v1068_v28, %v1045_v12  ;;  %v1070_v54 = vmul.u32 %v1068_v28, %v1044_v4  ;;  %v1073_v35 = vmul.u32 %v1069_v61, %v1045_v12 }
 0x2b4   : > { %v1049_v60 = vmul.u32 %v1047_v21, %v1044_v4  ;;  %v1050_v3 = vmul.u32 %v1046_v17, %v1045_v12  ;;  %v1048_v26 = vmul.u32 %v1046_v17, %v1044_v4  ;;  %v1051_v31 = vmul.u32 %v1047_v21, %v1045_v12 }
 0x2b5   : > { %v1074_v62 = vshll.u32 %v1071_v22, 16  ;;  %v1076_v37 = vshll.u32 %v1072_v30, 16  ;;  %v1075_v8 = vshrl.u32 %v1071_v22, 16  ;;  %v1077_v11 = vshrl.u32 %v1072_v30, 16 }
 0x2b6   : > { %v1052_v51 = vshll.u32 %v1049_v60, 16  ;;  %v1054_v32 = vshll.u32 %v1050_v3, 16  ;;  %v1053_v9 = vshrl.u32 %v1049_v60, 16  ;;  %v1055_v16 = vshrl.u32 %v1050_v3, 16 }
 0x2b7   : > { %vm1078_vm3 = vc.u32 %v1070_v54, %v1074_v62  ;;  %v1080_v13 = vadd.s32 %v1074_v62, %v1070_v54 }
 0x2b8   : > { %vm1056_vm2 = vc.u32 %v1048_v26, %v1052_v51  ;;  %v1058_v34 = vadd.s32 %v1052_v51, %v1048_v26  ;;  %v1079_v20 = vsel %vm1078_vm3, 1, %v2643_v2 }
 0x2b9   : > { %v1057_v44 = vsel %vm1056_vm2, 1, %v2643_v2  ;;  %v1081_v25 = vadd.s32 %v1079_v20, %v1073_v35  ;;  %vm1082_vm5 = vc.u32 %v1080_v13, %v1076_v37  ;;  %v1084_v55 = vadd.s32 %v1080_v13, %v1076_v37 }
 0x2ba   : > { %v1059_v14 = vadd.s32 %v1057_v44, %v1051_v31  ;;  %vm1060_vm4 = vc.u32 %v1058_v34, %v1054_v32  ;;  %v1083_v47 = vsel %vm1082_vm5, 1, %v2643_v2  ;;  %vm1175_vm2 = vcmask 15360  }
 0x2bb   : > { %v1061_v38 = vsel %vm1060_vm4, 1, %v2643_v2  ;;  %v1085_v43 = vadd.s32 %v1083_v47, %v1081_v25 }
 0x2bc   : > { %v1063_v46 = vadd.s32 %v1061_v38, %v1059_v14 }
 0x2bd   : > { %v1086_v52 = vadd.s32 %v1085_v43, %v1075_v8 }
 0x2be   : > { %v1064_v50 = vadd.s32 %v1063_v46, %v1053_v9 }
 0x2bf   : > { %v1087_v45 = vadd.s32 %v1086_v52, %v1077_v11 }
 0x2c0   : > { %v1065_v63 = vadd.s32 %v1064_v50, %v1055_v16 }
 0x2c1   : > { %v1091_v6 = vadd.s32 1, %v1087_v45 }
 0x2c2   : > { %vm1090_vm7 = vc.u32 %v1065_v63, %v1084_v55  ;;  %v1089_v7 = vadd.s32 %v1084_v55, %v1065_v63  ;;  %v1154_v55 = vpop.permute.xlu2 %1153 }
 0x2c3   : > { %v1092_v57 = vsel %vm1090_vm7, %v1091_v6, %v1087_v45 }
 0x2c4   : > { %v1093_v58 = vadd.s32 %v1092_v57, %v1088_v19 }
 0x2c6   : > { %v1094_v24 = vadd.s32 536870912, %v1093_v58 }
 0x2c8   : > { %v1095_v59 = vshrl.u32 %v1094_v24, 30  ;;  %v2470_v24 = vld [vmem:[%s3582_s7 + $0x8] sm:$0xff] }
 0x2ca   : > { %v1096_v48 = vshll.u32 %v1095_v59, 30  ;;  %v1119_v32 = vsub.s32 4, %v1095_v59 }
 0x2cc   : > { %v1097_v53 = vsub.s32 %v1093_v58, %v1096_v48  ;;  %v1120_v13 = vsel %vm997_vm11, %v1119_v32, %v1095_v59  ;;  %v1237_v58 = vld [vmem:[%s3586_s11] sm:$0xff] }
 0x2cd   : > { %v1122_v15 = vsel %vm996_vm12, 0, %v1120_v13  ;;  %v1238_v59 = vld [vmem:[%s3585_s10] sm:$0xff] }
 0x2ce   : > { %vm1098_vm8 = vcmp.lt.s32.totalorder %v1097_v53, 0  ;;  %v1099_v0 = vsub.s32 0, %v1097_v53  ;;  %v1139_v46 = vadd.s32 3, %v1122_v15  ;;  %v1207_v48 = vld [vmem:[%s3584_s9] sm:$0xff] }
 0x2cf   : > { %v1199_v32 = vld [vmem:[%s3583_s8] sm:$0xff] }
 0x2d0   : > { %v1100_v1 = vsel %vm1098_vm8, %v1099_v0, %v1097_v53  ;;  %v1140_v49 = vand.u32 3, %v1139_v46  ;;  %v1434_v0 = vld [vmem:[%s3588_s13] sm:$0xff] }
 0x2d1   : > { %v1101_v4 = vclz %v1100_v1  ;;  %v1172_v1 = vpop.permute.xlu2 %1171 }
 0x2d2   : > { %vm1142_vm13 = vcmp.eq.s32.totalorder %v1140_v49, 0  ;;  %vm1145_vm14 = vcmp.eq.s32.totalorder %v1140_v49, 2  ;;  %vm1141_vm15 = vcmp.lt.s32.totalorder %v1140_v49, 2 }
 0x2d3   : > { %v2463_v12 = vadd.s32 4294967294, %v1101_v4 }
 0x2d5   : > { %vm2464_vm10 = vcmp.lt.s32.totalorder %v2463_v12, 0 }
 0x2d6   : > { %v1104_v17 = vsel %vm2464_vm10, 0, %v2463_v12 }
 0x2d7   : > { %v1105_v21 = vsub.s32 32, %v1104_v17  ;;  %v1109_v28 = vsub.s32 4294967266, %v1104_v17  ;;  %v1106_v61 = vshll.u32 %v1097_v53, %v1104_v17  ;;  %v2471_v53 = vld [vmem:[%s3581_s6 + $0x8] sm:$0xff] }
 0x2d9   : > { %v1107_v60 = vshrl.u32 %v1089_v7, %v1105_v21  ;;  %v1110_v3 = vadd.s32 127, %v1109_v28 }
 0x2db   : > { %v1108_v56 = vor.u32 %v1107_v60, %v1106_v61  ;;  %v1111_v22 = vshll.u32 %v1110_v3, 23 }
 0x2dd   : > { %v1112_v30 = vor.u32 4788187, %v1111_v22  ;;  %v1115_v51 = vcvt.s32.f32 %v1108_v56 }
 0x2df   : > { %v1113_v26 = vand.u32 2147483647, %v1112_v30 }
 0x2e1   : > { %v1116_v31 = vmul.f32 %v1115_v51, %v1113_v26 }
 0x2e3   : > { %v1117_v54 = vxor.u32 2147483648, %v1116_v31 }
 0x2e5   : > { %v1118_v62 = vsel %vm997_vm11, %v1117_v54, %v1116_v31 }
 0x2e6   : > { %v1121_v34 = vsel %vm996_vm12, %v3019_v23, %v1118_v62  ;;  %v3087_v23 = vld [vmem:[#allocation2] sm:$0xff] }
 0x2e7   : > { %v1123_v35 = vmul.f32 %v1121_v34, %v1121_v34 }
 0x2e9   : > { %v1124_v44 = vmul.f32 -0.001358992, %v1123_v35  ;;  %v1131_v37 = vmul.f32 -0.00019511016, %v1123_v35 }
 0x2eb   : > { %v1125_v14 = vadd.f32 0.041655596, %v1124_v44  ;;  %v1132_v20 = vadd.f32 0.008332121, %v1131_v37 }
 0x2ed   : > { %v1126_v38 = vmul.f32 %v1125_v14, %v1123_v35  ;;  %v1133_v25 = vmul.f32 %v1132_v20, %v1123_v35 }
 0x2ef   : > { %v1127_v40 = vadd.f32 -0.4999988, %v1126_v38  ;;  %v1134_v9 = vadd.f32 -0.16666654, %v1133_v25 }
 0x2f1   : > { %v1128_v47 = vmul.f32 %v1127_v40, %v1123_v35  ;;  %v1135_v8 = vmul.f32 %v1134_v9, %v1123_v35 }
 0x2f3   : > { %v1129_v43 = vadd.f32 1.0, %v1128_v47  ;;  %v1136_v10 = vadd.f32 1.0, %v1135_v8 }
 0x2f5   : > { %v1137_v5 = vmul.f32 %v1136_v10, %v1121_v34  ;;  %v1146_v16 = vxor.u32 2147483648, %v1129_v43 }
 0x2f7   : > { %v1143_v50 = vxor.u32 2147483648, %v1137_v5  ;;  %v1147_v52 = vsel %vm1145_vm14, %v1146_v16, %v1137_v5 }
 0x2f9   : > { %v1144_v11 = vsel %vm1142_vm13, %v1129_v43, %v1143_v50 }
 0x2fa   : > { %v1148_v63 = vsel %vm1141_vm15, %v1144_v11, %v1147_v52 }
 0x2fb   : > { %v1149_v41 = vsel %vm1138_vm0, nan, %v1148_v63 }
 0x2fc   : > { %v1150_v45 = vmul.f32 %v1149_v41, %v1149_v41 }
 0x2fe   : > { %v1156_v6 = vmul.f32 %v1154_v55, %v1150_v45 }
 0x300   : > { %v1157_v19 = vadd.f32 %v1156_v6, %v3016_v18 }
 0x302   : > { %1158 = vst.msk [vmem:[#allocation4 + $0x8] sm:$0xff] %vm851_vm9, %v1157_v19 }
 0x309   : > { %v1160_v57 = vld [vmem:[#allocation4 + $0x8] sm:$0xff] }
 0x30a   : > { %1187 = vrot.lane.b32.xlu2 %v1160_v57, %s2652_s22  ;;  %1186 = vst.msk [vmem:[#allocation5 + $0x18] sm:$0xff] %vm851_vm9, %v1160_v57  ;;  %1191 = vrot.lane.b32.xlu1 %v1160_v57, %s2655_s26  ;;  %s3609_s26 = smov 125  }
 0x30b   : > { %1195 = vrot.lane.b32.xlu0 %v1160_v57, %s3591_s27  ;;  %s2665_s27 = smov 27  }
 0x311   : > { %v1203_v56 = vld [vmem:[#allocation5 + $0x18] sm:$0xff] }
 0x312   : > { %1165 = vrot.lane.b32.xlu2 %v1160_v57, %s3592_s28  ;;  %1181 = vrot.lane.b32.xlu1 %v1160_v57, %s2651_s15 }
 0x313   : > { %1179 = vrot.lane.b32.xlu0 %v3087_v23, %s2651_s15  ;;  %s2659_s15 = smov 122  }
 0x31a   : > { %1403 = vperm.xlu2 %2576, %v1237_v58   ;;  %1163 = vrot.lane.b32.xlu1 %v3087_v23, %s3592_s28  ;;  %s458_s28 = sand.u32 1, %s2633_s30  }
 0x31b   : > { %1173 = vrot.lane.b32.xlu0 %v1160_v57, %s2654_s25  ;;  %s3610_s25 = smov 3   ;;  %s2441_s22 = sshll.u32 %s458_s28, 3 }
 0x322   : > { %1609 = vperm.xlu2 %2576, %v2470_v24   ;;  %1241 = vperm.xlu1 %2570, %v1238_v59  }
 0x323   : > { %1210 = vperm.xlu0 %2569, %v1207_v48  }
 0x32a   : > { %1447 = vperm.xlu1 %2570, %v2471_v53   ;;  %1627 = vrot.lane.b32.xlu2 %v3087_v23, %s2658_s21 }
 0x32b   : > { %1437 = vperm.xlu0 %2569, %v1434_v0  }
 0x364   : > { %v1188_v4 = vpop.permute.xlu2 %1187 }
 0x365   : > { %1190 = vst.msk [vmem:[#allocation5 + $0x20] sm:$0xff] %vm851_vm9, %v1188_v4 }
 0x36c   : > { %v1204_v3 = vld [vmem:[#allocation5 + $0x20] sm:$0xff]  ;;  %v1166_v22 = vpop.permute.xlu2 %1165 }
 0x37c   : > { %v1192_v12 = vpop.permute.xlu1 %1191 }
 0x37d   : > { %1194 = vst.msk [vmem:[#allocation5 + $0x28] sm:$0xff] %vm851_vm9, %v1192_v12  ;;  %v1196_v17 = vpop.permute.xlu0 %1195 }
 0x37e   : > { %1198 = vst.msk [vmem:[#allocation5 + $0x30] sm:$0xff] %vm851_vm9, %v1196_v17 }
 0x384   : > { %v1182_v7 = vpop.permute.xlu1 %1181  ;;  %v1205_v60 = vld [vmem:[#allocation5 + $0x28] sm:$0xff] }
 0x385   : > { %v1180_v21 = vpop.permute.xlu0 %1179  ;;  %v1206_v28 = vld [vmem:[#allocation5 + $0x30] sm:$0xff] }
 0x386   : > { %v1183_v61 = vsel %vm837_vm6, %v1180_v21, %v1182_v7  ;;  %1226 = vmatpush.msrb.mxu2 %v1206_v28  ;;  %vm1213_vm6 = vcmask 457728  }
 0x387   : > { %1185 = vst.msk [vmem:[#allocation5 + $0x10] sm:$0xff] %vm851_vm9, %v1183_v61 }
 0x388   : > { %1227 = vmatpush.msrb.mxu2 %v1205_v60 }
 0x38a   : > { %1228 = vmatpush.msrb.mxu2 %v1204_v3 }
 0x38c   : > { %1229 = vmatpush.msrb.mxu2 %v1203_v56  ;;  %v1164_v30 = vpop.permute.xlu1 %1163 }
 0x38d   : > { %v1168_v26 = vsel %vm1167_vm1, %v1164_v30, %v1166_v22  ;;  %v1174_v51 = vpop.permute.xlu0 %1173 }
 0x38e   : > { %1170 = vst.msk [vmem:[#allocation5] sm:$0xff] %vm851_vm9, %v1168_v26  ;;  %v1176_v31 = vsel %vm1175_vm2, %v1172_v1, %v1174_v51  ;;  %v1202_v54 = vld [vmem:[#allocation5 + $0x10] sm:$0xff] }
 0x38f   : > { %1178 = vst.msk [vmem:[#allocation5 + $0x8] sm:$0xff] %vm851_vm9, %v1176_v31  ;;  %1230 = vmatpush.msrb.mxu2 %v1202_v54 }
 0x394   : > { %v1242_v13 = vpop.permute.xlu1 %1241 }
 0x395   : > { %v1200_v34 = vld [vmem:[#allocation5] sm:$0xff]  ;;  %v1211_v35 = vpop.permute.xlu0 %1210 }
 0x396   : > { %v1201_v62 = vld [vmem:[#allocation5 + $0x8] sm:$0xff] }
 0x397   : > { %1231 = vmatpush.msrb.mxu2 %v1201_v62 }
 0x399   : > { %1232 = vmatpush.msrb.mxu2 %v1200_v34 }
 0x39a   : > { %2465 = vmatmul.msk.f32.vlgmr.msrb.gmra.mxu2 %vm1213_vm6, %v1199_v32 }
 0x41d   : > { %v1234_v44 = vpop.f32.mrf.mxu2 }
 0x41e   : > { %v3124_v37 = vadd.f32 %v1234_v44, %v1211_v35 }
 0x420   : > { %v3127_v14 = vmul.f32 %v1242_v13, %v3124_v37 }
 0x422   : > { %v1248_v20 = vand.u32 2139095040, %v3127_v14  ;;  %v1245_v25 = vand.u32 2147483647, %v3127_v14  ;;  %vm1247_vm2 = vcmp.lt.s32.totalorder %v3127_v14, 0 }
 0x424   : > { %v1249_v15 = vshrl.u32 %v1248_v20, 23  ;;  %v1252_v9 = vand.u32 8388607, %v1245_v25 }
 0x426   : > { %v2466_v38 = vadd.s32 4294967169, %v1249_v15  ;;  %v1253_v43 = vor.u32 8388608, %v1252_v9 }
 0x428   : > { %v1255_v40 = vadd.s32 1, %v2466_v38  ;;  %v3146_v59 = vshll.u32 %v1253_v43, 8 }
 0x42a   : > { %vm1256_vm3 = vcmp.gt.s32.totalorder %v1255_v40, 0  ;;  %v1294_v21 = vand.u32 65535, %v3146_v59  ;;  %v1295_v28 = vshrl.u32 %v3146_v59, 16 }
 0x42b   : > { %v1257_v46 = vsel %vm1256_vm3, %v1255_v40, 0  ;;  %vm1246_vm3 = vcmp.le.f32.partialorder %v1245_v25, 0.7853982 }
 0x42c   : > { %v1259_v47 = vand.u32 31, %v1257_v46  ;;  %v3133_v10 = vshrl.u32 %v1257_v46, 5 }
 0x42e   : > { %v1260_v8 = vsub.s32 32, %v1259_v47  ;;  %v1262_v49 = vshll.u32 %v2645_v27, %v1259_v47  ;;  %v1265_v5 = vshll.u32 %v2646_v29, %v1259_v47  ;;  %v1268_v11 = vshll.u32 %v2647_v33, %v1259_v47 }
 0x42f   : > { %v1271_v63 = vshll.u32 %v2648_v36, %v1259_v47  ;;  %v1274_v41 = vshll.u32 %v2649_v39, %v1259_v47  ;;  %vm1277_vm4 = vcmp.lt.s32.totalorder %v3133_v10, 1  ;;  %vm1280_vm5 = vcmp.lt.s32.totalorder %v3133_v10, 4 }
 0x430   : > { %v1263_v16 = vshrl.u32 %v2646_v29, %v1260_v8  ;;  %v1266_v50 = vshrl.u32 %v2647_v33, %v1260_v8  ;;  %v1269_v52 = vshrl.u32 %v2648_v36, %v1260_v8  ;;  %v1272_v55 = vshrl.u32 %v2649_v39, %v1260_v8 }
 0x431   : > { %v1275_v45 = vshrl.u32 %v2650_v42, %v1260_v8  ;;  %vm1279_vm7 = vcmp.lt.s32.totalorder %v3133_v10, 3  ;;  %vm1278_vm8 = vcmp.lt.s32.totalorder %v3133_v10, 2 }
 0x432   : > { %v1264_v6 = vor.u32 %v1263_v16, %v1262_v49  ;;  %v1267_v19 = vor.u32 %v1266_v50, %v1265_v5  ;;  %v1270_v57 = vor.u32 %v1269_v52, %v1268_v11  ;;  %v1273_v58 = vor.u32 %v1272_v55, %v1271_v63 }
 0x433   : > { %v1276_v24 = vor.u32 %v1275_v45, %v1274_v41  ;;  %v1261_v49 = vshrl.u32 %v2645_v27, %v1260_v8 }
 0x434   : > { %v1285_v48 = vsel %vm1277_vm4, %v1264_v6, %v1267_v19  ;;  %v1289_v53 = vsel %vm1277_vm4, %v1267_v19, %v1270_v57  ;;  %v1286_v0 = vsel %vm1280_vm5, %v1273_v58, 920167782  ;;  %v1282_v46 = vsel %vm1280_vm5, %v1270_v57, 2102212464 }
 0x435   : > { %v1290_v1 = vsel %vm1280_vm5, %v1276_v24, 1326507024  ;;  %v1287_v4 = vsel %vm1279_vm7, %v1270_v57, %v1286_v0  ;;  %v1281_v63 = vsel %vm1277_vm4, %v1261_v49, %v1264_v6  ;;  %v1283_v55 = vsel %vm1279_vm7, %v1267_v19, %v1282_v46 }
 0x436   : > { %v1291_v12 = vsel %vm1279_vm7, %v1273_v58, %v1290_v1  ;;  %v1288_v17 = vsel %vm1278_vm8, %v1285_v48, %v1287_v4  ;;  %v1284_v8 = vsel %vm1278_vm8, %v1281_v63, %v1283_v55 }
 0x437   : > { %v1292_v7 = vsel %vm1278_vm8, %v1289_v53, %v1291_v12  ;;  %v1318_v3 = vand.u32 65535, %v1288_v17  ;;  %v1319_v56 = vshrl.u32 %v1288_v17, 16  ;;  %v1338_v1 = vmul.u32 %v3146_v59, %v1284_v8 }
 0x438   : > { %v1296_v61 = vand.u32 65535, %v1292_v7  ;;  %v1297_v60 = vshrl.u32 %v1292_v7, 16  ;;  %vm1388_vm8 = vweird.f32 %v3127_v14 }
 0x439   : > { %v1321_v26 = vmul.u32 %v1319_v56, %v1294_v21  ;;  %v1322_v51 = vmul.u32 %v1318_v3, %v1295_v28  ;;  %v1320_v32 = vmul.u32 %v1318_v3, %v1294_v21  ;;  %v1323_v13 = vmul.u32 %v1319_v56, %v1295_v28 }
 0x43a   : > { %v1299_v22 = vmul.u32 %v1297_v60, %v1294_v21  ;;  %v1300_v30 = vmul.u32 %v1296_v61, %v1295_v28  ;;  %v1298_v31 = vmul.u32 %v1296_v61, %v1294_v21  ;;  %v1301_v62 = vmul.u32 %v1297_v60, %v1295_v28 }
 0x43b   : > { %v1324_v34 = vshll.u32 %v1321_v26, 16  ;;  %v1326_v15 = vshll.u32 %v1322_v51, 16  ;;  %v1325_v11 = vshrl.u32 %v1321_v26, 16  ;;  %v1327_v57 = vshrl.u32 %v1322_v51, 16 }
 0x43c   : > { %v1302_v54 = vshll.u32 %v1299_v22, 16  ;;  %v1304_v35 = vshll.u32 %v1300_v30, 16  ;;  %v1303_v5 = vshrl.u32 %v1299_v22, 16  ;;  %v1305_v41 = vshrl.u32 %v1300_v30, 16 }
 0x43d   : > { %vm1328_vm11 = vc.u32 %v1320_v32, %v1324_v34  ;;  %v1330_v38 = vadd.s32 %v1324_v34, %v1320_v32 }
 0x43e   : > { %vm1306_vm10 = vc.u32 %v1298_v31, %v1302_v54  ;;  %v1308_v44 = vadd.s32 %v1302_v54, %v1298_v31  ;;  %v1329_v9 = vsel %vm1328_vm11, 1, %v2643_v2 }
 0x43f   : > { %v1307_v20 = vsel %vm1306_vm10, 1, %v2643_v2  ;;  %v1331_v43 = vadd.s32 %v1329_v9, %v1323_v13  ;;  %vm1332_vm13 = vc.u32 %v1330_v38, %v1326_v15  ;;  %v1334_v48 = vadd.s32 %v1330_v38, %v1326_v15 }
 0x440   : > { %v1309_v40 = vadd.s32 %v1307_v20, %v1301_v62  ;;  %vm1310_vm12 = vc.u32 %v1308_v44, %v1304_v35  ;;  %v1333_v50 = vsel %vm1332_vm13, 1, %v2643_v2  ;;  %vm1409_vm10 = vcmask 64512  }
 0x441   : > { %v1311_v47 = vsel %vm1310_vm12, 1, %v2643_v2  ;;  %v1335_v52 = vadd.s32 %v1333_v50, %v1331_v43 }
 0x442   : > { %v1313_v16 = vadd.s32 %v1311_v47, %v1309_v40 }
 0x443   : > { %v1336_v58 = vadd.s32 %v1335_v52, %v1325_v11 }
 0x444   : > { %v1314_v45 = vadd.s32 %v1313_v16, %v1303_v5 }
 0x445   : > { %v1337_v53 = vadd.s32 %v1336_v58, %v1327_v57 }
 0x446   : > { %v1315_v24 = vadd.s32 %v1314_v45, %v1305_v41 }
 0x447   : > { %v1341_v0 = vadd.s32 1, %v1337_v53 }
 0x448   : > { %vm1340_vm14 = vc.u32 %v1315_v24, %v1334_v48  ;;  %v1339_v10 = vadd.s32 %v1334_v48, %v1315_v24 }
 0x449   : > { %v1342_v4 = vsel %vm1340_vm14, %v1341_v0, %v1337_v53 }
 0x44a   : > { %v1343_v12 = vadd.s32 %v1342_v4, %v1338_v1  ;;  %v1404_v1 = vpop.permute.xlu2 %1403 }
 0x44c   : > { %v1344_v6 = vadd.s32 536870912, %v1343_v12 }
 0x44e   : > { %v1345_v17 = vshrl.u32 %v1344_v6, 30  ;;  %v1408_v6 = vld [vmem:[%s3587_s12] sm:$0xff] }
 0x450   : > { %v1346_v7 = vshll.u32 %v1345_v17, 30  ;;  %v1369_v13 = vsub.s32 4, %v1345_v17 }
 0x452   : > { %v1347_v19 = vsub.s32 %v1343_v12, %v1346_v7  ;;  %v1370_v9 = vsel %vm1247_vm2, %v1369_v13, %v1345_v17  ;;  %v1438_v7 = vpop.permute.xlu0 %1437 }
 0x453   : > { %v1372_v43 = vsel %vm1246_vm3, 0, %v1370_v9 }
 0x454   : > { %vm1348_vm15 = vcmp.lt.s32.totalorder %v1347_v19, 0  ;;  %v1349_v21 = vsub.s32 0, %v1347_v19  ;;  %v1389_v11 = vadd.s32 3, %v1372_v43 }
 0x456   : > { %v1350_v28 = vsel %vm1348_vm15, %v1349_v21, %v1347_v19  ;;  %v1390_v41 = vand.u32 3, %v1389_v11  ;;  %v1448_v21 = vpop.permute.xlu1 %1447 }
 0x457   : > { %v1351_v61 = vclz %v1350_v28 }
 0x458   : > { %vm1392_vm4 = vcmp.eq.s32.totalorder %v1390_v41, 0  ;;  %vm1395_vm5 = vcmp.eq.s32.totalorder %v1390_v41, 2  ;;  %vm1391_vm7 = vcmp.lt.s32.totalorder %v1390_v41, 2 }
 0x459   : > { %v2467_v60 = vadd.s32 4294967294, %v1351_v61 }
 0x45b   : > { %vm2468_vm0 = vcmp.lt.s32.totalorder %v2467_v60, 0 }
 0x45c   : > { %v1354_v3 = vsel %vm2468_vm0, 0, %v2467_v60 }
 0x45d   : > { %v1355_v56 = vsub.s32 32, %v1354_v3  ;;  %v1359_v22 = vsub.s32 4294967266, %v1354_v3  ;;  %v1356_v30 = vshll.u32 %v1347_v19, %v1354_v3 }
 0x45f   : > { %v1357_v26 = vshrl.u32 %v1339_v10, %v1355_v56  ;;  %v1360_v51 = vadd.s32 127, %v1359_v22 }
 0x461   : > { %v1358_v59 = vor.u32 %v1357_v26, %v1356_v30  ;;  %v1361_v31 = vshll.u32 %v1360_v51, 23 }
 0x463   : > { %v1362_v54 = vor.u32 4788187, %v1361_v31  ;;  %v1365_v32 = vcvt.s32.f32 %v1358_v59 }
 0x465   : > { %v1363_v62 = vand.u32 2147483647, %v1362_v54 }
 0x467   : > { %v1366_v34 = vmul.f32 %v1365_v32, %v1363_v62 }
 0x469   : > { %v1367_v35 = vxor.u32 2147483648, %v1366_v34 }
 0x46b   : > { %v1368_v44 = vsel %vm1247_vm2, %v1367_v35, %v1366_v34 }
 0x46c   : > { %v1371_v20 = vsel %vm1246_vm3, %v3127_v14, %v1368_v44 }
 0x46d   : > { %v1373_v15 = vmul.f32 %v1371_v20, %v1371_v20 }
 0x46f   : > { %v1374_v38 = vmul.f32 -0.001358992, %v1373_v15  ;;  %v1381_v40 = vmul.f32 -0.00019511016, %v1373_v15 }
 0x471   : > { %v1375_v46 = vadd.f32 0.041655596, %v1374_v38  ;;  %v1382_v47 = vadd.f32 0.008332121, %v1381_v40 }
 0x473   : > { %v1376_v49 = vmul.f32 %v1375_v46, %v1373_v15  ;;  %v1383_v5 = vmul.f32 %v1382_v47, %v1373_v15 }
 0x475   : > { %v1377_v16 = vadd.f32 -0.4999988, %v1376_v49  ;;  %v1384_v50 = vadd.f32 -0.16666654, %v1383_v5 }
 0x477   : > { %v1378_v52 = vmul.f32 %v1377_v16, %v1373_v15  ;;  %v1385_v63 = vmul.f32 %v1384_v50, %v1373_v15 }
 0x479   : > { %v1379_v55 = vadd.f32 1.0, %v1378_v52  ;;  %v1386_v25 = vadd.f32 1.0, %v1385_v63 }
 0x47b   : > { %v1387_v45 = vmul.f32 %v1386_v25, %v1371_v20  ;;  %v1396_v57 = vxor.u32 2147483648, %v1379_v55 }
 0x47d   : > { %v1393_v58 = vxor.u32 2147483648, %v1387_v45  ;;  %v1397_v48 = vsel %vm1395_vm5, %v1396_v57, %v1387_v45 }
 0x47f   : > { %v1394_v24 = vsel %vm1392_vm4, %v1379_v55, %v1393_v58 }
 0x480   : > { %v1398_v8 = vsel %vm1391_vm7, %v1394_v24, %v1397_v48 }
 0x481   : > { %v1399_v53 = vsel %vm1388_vm8, nan, %v1398_v8 }
 0x482   : > { %v1400_v0 = vmul.f32 %v1399_v53, %v1399_v53 }
 0x484   : > { %v1406_v4 = vmul.f32 %v1404_v1, %v1400_v0 }
 0x486   : > { %v1407_v12 = vadd.f32 %v1406_v4, %v3124_v37 }
 0x488   : > { %1428 = vmatpush.msrb.mxu3 %v1407_v12 }
 0x489   : > { %2469 = vmatmul.msk.f32.vlgmr.msrb.gmra.mxu3 %vm1409_vm10, %v1408_v6 }
 0x50c   : > { %v1430_v14 = vpop.f32.mrf.mxu3 }
 0x50d   : > { %v1433_v17 = vadd.f32 %v1430_v14, %v3016_v18 }
 0x50f   : > { %v3196_v19 = vadd.f32 %v1438_v7, %v1433_v17 }
 0x511   : > { %v3199_v37 = vmul.f32 %v1448_v21, %v3196_v19 }
 0x513   : > { %v1454_v28 = vand.u32 2139095040, %v3199_v37  ;;  %v1451_v3 = vand.u32 2147483647, %v3199_v37 }
 0x515   : > { %v1455_v61 = vshrl.u32 %v1454_v28, 23  ;;  %v1458_v56 = vand.u32 8388607, %v1451_v3 }
 0x517   : > { %v2472_v60 = vadd.s32 4294967169, %v1455_v61  ;;  %v1459_v26 = vor.u32 8388608, %v1458_v56 }
 0x519   : > { %v1461_v10 = vadd.s32 1, %v2472_v60  ;;  %v3218_v47 = vshll.u32 %v1459_v26, 8 }
 0x51b   : > { %vm1462_vm11 = vcmp.gt.s32.totalorder %v1461_v10, 0  ;;  %v1500_v55 = vand.u32 65535, %v3218_v47  ;;  %v1501_v25 = vshrl.u32 %v3218_v47, 16 }
 0x51c   : > { %v1463_v22 = vsel %vm1462_vm11, %v1461_v10, 0  ;;  %vm1453_vm11 = vcmp.lt.s32.totalorder %v3199_v37, 0 }
 0x51d   : > { %v1465_v18 = vand.u32 31, %v1463_v22  ;;  %v3205_v51 = vshrl.u32 %v1463_v22, 5 }
 0x51f   : > { %v1466_v30 = vsub.s32 32, %v1465_v18  ;;  %v1468_v59 = vshll.u32 %v2645_v27, %v1465_v18  ;;  %v1471_v31 = vshll.u32 %v2646_v29, %v1465_v18  ;;  %v1474_v32 = vshll.u32 %v2647_v33, %v1465_v18 }
 0x520   : > { %v1477_v35 = vshll.u32 %v2648_v36, %v1465_v18  ;;  %v1480_v13 = vshll.u32 %v2649_v39, %v1465_v18  ;;  %vm1483_vm12 = vcmp.lt.s32.totalorder %v3205_v51, 1  ;;  %vm1486_vm13 = vcmp.lt.s32.totalorder %v3205_v51, 4 }
 0x521   : > { %v1469_v54 = vshrl.u32 %v2646_v29, %v1466_v30  ;;  %v1472_v62 = vshrl.u32 %v2647_v33, %v1466_v30  ;;  %v1475_v34 = vshrl.u32 %v2648_v36, %v1466_v30  ;;  %v1478_v44 = vshrl.u32 %v2649_v39, %v1466_v30 }
 0x522   : > { %v1481_v20 = vshrl.u32 %v2650_v42, %v1466_v30  ;;  %vm1485_vm14 = vcmp.lt.s32.totalorder %v3205_v51, 3  ;;  %vm1484_vm15 = vcmp.lt.s32.totalorder %v3205_v51, 2  ;;  %v1467_v26 = vshrl.u32 %v2645_v27, %v1466_v30 }
 0x523   : > { %v1470_v15 = vor.u32 %v1469_v54, %v1468_v59  ;;  %v1473_v38 = vor.u32 %v1472_v62, %v1471_v31  ;;  %v1476_v40 = vor.u32 %v1475_v34, %v1474_v32  ;;  %v1479_v9 = vor.u32 %v1478_v44, %v1477_v35 }
 0x524   : > { %v1482_v46 = vor.u32 %v1481_v20, %v1480_v13 }
 0x525   : > { %v1491_v43 = vsel %vm1483_vm12, %v1470_v15, %v1473_v38  ;;  %v1495_v49 = vsel %vm1483_vm12, %v1473_v38, %v1476_v40  ;;  %v1492_v5 = vsel %vm1486_vm13, %v1479_v9, 920167782  ;;  %v1488_v56 = vsel %vm1486_vm13, %v1476_v40, 2102212464 }
 0x526   : > { %v1496_v16 = vsel %vm1486_vm13, %v1482_v46, 1326507024  ;;  %v1493_v50 = vsel %vm1485_vm14, %v1476_v40, %v1492_v5  ;;  %v1487_v34 = vsel %vm1483_vm12, %v1467_v26, %v1470_v15  ;;  %v1489_v35 = vsel %vm1485_vm14, %v1473_v38, %v1488_v56 }
 0x527   : > { %v1497_v11 = vsel %vm1485_vm14, %v1479_v9, %v1496_v16  ;;  %v1494_v52 = vsel %vm1484_vm15, %v1491_v43, %v1493_v50  ;;  %v1490_v30 = vsel %vm1484_vm15, %v1487_v34, %v1489_v35  ;;  %vm1452_vm12 = vcmp.le.f32.partialorder %v1451_v3, 0.7853982 }
 0x528   : > { %v1498_v63 = vsel %vm1484_vm15, %v1495_v49, %v1497_v11  ;;  %v1524_v57 = vand.u32 65535, %v1494_v52  ;;  %v1525_v58 = vshrl.u32 %v1494_v52, 16  ;;  %v1544_v5 = vmul.u32 %v3218_v47, %v1490_v30 }
 0x529   : > { %v1502_v41 = vand.u32 65535, %v1498_v63  ;;  %v1503_v45 = vshrl.u32 %v1498_v63, 16 }
 0x52a   : > { %v1527_v8 = vmul.u32 %v1525_v58, %v1500_v55  ;;  %v1528_v53 = vmul.u32 %v1524_v57, %v1501_v25  ;;  %v1526_v12 = vmul.u32 %v1524_v57, %v1500_v55  ;;  %v1529_v7 = vmul.u32 %v1525_v58, %v1501_v25 }
 0x52b   : > { %v1505_v24 = vmul.u32 %v1503_v45, %v1500_v55  ;;  %v1506_v48 = vmul.u32 %v1502_v41, %v1501_v25  ;;  %v1504_v0 = vmul.u32 %v1502_v41, %v1500_v55  ;;  %v1507_v4 = vmul.u32 %v1503_v45, %v1501_v25 }
 0x52c   : > { %v1530_v6 = vshll.u32 %v1527_v8, 16  ;;  %v1532_v28 = vshll.u32 %v1528_v53, 16  ;;  %v1531_v62 = vshrl.u32 %v1527_v8, 16  ;;  %v1533_v20 = vshrl.u32 %v1528_v53, 16 }
 0x52d   : > { %v1508_v1 = vshll.u32 %v1505_v24, 16  ;;  %v1510_v14 = vshll.u32 %v1506_v48, 16  ;;  %v1509_v59 = vshrl.u32 %v1505_v24, 16  ;;  %v1511_v44 = vshrl.u32 %v1506_v48, 16 }
 0x52e   : > { %vm1534_vm2 = vc.u32 %v1526_v12, %v1530_v6  ;;  %v1536_v61 = vadd.s32 %v1530_v6, %v1526_v12 }
 0x52f   : > { %vm1512_vm0 = vc.u32 %v1504_v0, %v1508_v1  ;;  %v1514_v17 = vadd.s32 %v1508_v1, %v1504_v0  ;;  %v1535_v10 = vsel %vm1534_vm2, 1, %v2643_v2  ;;  %vm1623_vm2 = vcmask 72704  }
 0x530   : > { %v1513_v21 = vsel %vm1512_vm0, 1, %v2643_v2  ;;  %v1537_v18 = vadd.s32 %v1535_v10, %v1529_v7  ;;  %vm1538_vm4 = vc.u32 %v1536_v61, %v1532_v28  ;;  %v1540_v46 = vadd.s32 %v1536_v61, %v1532_v28 }
 0x531   : > { %v1515_v60 = vadd.s32 %v1513_v21, %v1507_v4  ;;  %vm1516_vm3 = vc.u32 %v1514_v17, %v1510_v14  ;;  %v1539_v54 = vsel %vm1538_vm4, 1, %v2643_v2  ;;  %vm1594_vm0 = vweird.f32 %v3199_v37 }
 0x532   : > { %v1517_v22 = vsel %vm1516_vm3, 1, %v2643_v2  ;;  %v1541_v32 = vadd.s32 %v1539_v54, %v1537_v18  ;;  %vm1631_vm3 = vcmask 48128  }
 0x533   : > { %v1519_v31 = vadd.s32 %v1517_v22, %v1515_v60 }
 0x534   : > { %v1542_v40 = vadd.s32 %v1541_v32, %v1531_v62 }
 0x535   : > { %v1520_v13 = vadd.s32 %v1519_v31, %v1509_v59 }
 0x536   : > { %v1543_v43 = vadd.s32 %v1542_v40, %v1533_v20 }
 0x537   : > { %v1521_v9 = vadd.s32 %v1520_v13, %v1511_v44 }
 0x538   : > { %v1547_v49 = vadd.s32 1, %v1543_v43 }
 0x539   : > { %vm1546_vm5 = vc.u32 %v1521_v9, %v1540_v46  ;;  %v1545_v51 = vadd.s32 %v1540_v46, %v1521_v9 }
 0x53a   : > { %v1548_v16 = vsel %vm1546_vm5, %v1547_v49, %v1543_v43  ;;  %v1610_v49 = vpop.permute.xlu2 %1609 }
 0x53b   : > { %v1549_v50 = vadd.s32 %v1548_v16, %v1544_v5 }
 0x53d   : > { %v1550_v15 = vadd.s32 536870912, %v1549_v50 }
 0x53f   : > { %v1551_v11 = vshrl.u32 %v1550_v15, 30  ;;  %v2486_v15 = vld [vmem:[%s3582_s7 + $0x10] sm:$0xff] }
 0x541   : > { %v1552_v52 = vshll.u32 %v1551_v11, 30  ;;  %v1575_v17 = vsub.s32 4, %v1551_v11 }
 0x543   : > { %v1553_v38 = vsub.s32 %v1549_v50, %v1552_v52  ;;  %v1576_v60 = vsel %vm1453_vm11, %v1575_v17, %v1551_v11  ;;  %v2479_v11 = vld [vmem:[%s3585_s10 + $0x8] sm:$0xff] }
 0x544   : > { %v1578_v22 = vsel %vm1452_vm12, 0, %v1576_v60  ;;  %v2476_v52 = vld [vmem:[%s3584_s9 + $0x8] sm:$0xff] }
 0x545   : > { %vm1554_vm7 = vcmp.lt.s32.totalorder %v1553_v38, 0  ;;  %v1555_v63 = vsub.s32 0, %v1553_v38  ;;  %v1595_v54 = vadd.s32 3, %v1578_v22 }
 0x547   : > { %v1556_v55 = vsel %vm1554_vm7, %v1555_v63, %v1553_v38  ;;  %v1596_v35 = vand.u32 3, %v1595_v54  ;;  %v1628_v63 = vpop.permute.xlu2 %1627 }
 0x548   : > { %v1557_v25 = vclz %v1556_v55 }
 0x549   : > { %vm1598_vm13 = vcmp.eq.s32.totalorder %v1596_v35, 0  ;;  %vm1601_vm14 = vcmp.eq.s32.totalorder %v1596_v35, 2  ;;  %vm1597_vm15 = vcmp.lt.s32.totalorder %v1596_v35, 2 }
 0x54a   : > { %v2473_v41 = vadd.s32 4294967294, %v1557_v25 }
 0x54c   : > { %vm2474_vm8 = vcmp.lt.s32.totalorder %v2473_v41, 0 }
 0x54d   : > { %v1560_v45 = vsel %vm2474_vm8, 0, %v2473_v41 }
 0x54e   : > { %v1561_v57 = vsub.s32 32, %v1560_v45  ;;  %v1565_v58 = vsub.s32 4294967266, %v1560_v45  ;;  %v1562_v24 = vshll.u32 %v1553_v38, %v1560_v45  ;;  %v2485_v38 = vld [vmem:[%s3588_s13 + $0x8] sm:$0xff] }
 0x550   : > { %v1563_v48 = vshrl.u32 %v1545_v51, %v1561_v57  ;;  %v1566_v8 = vadd.s32 127, %v1565_v58 }
 0x552   : > { %v1564_v47 = vor.u32 %v1563_v48, %v1562_v24  ;;  %v1567_v53 = vshll.u32 %v1566_v8, 23 }
 0x554   : > { %v1568_v0 = vor.u32 4788187, %v1567_v53  ;;  %v1571_v4 = vcvt.s32.f32 %v1564_v47 }
 0x556   : > { %v1569_v1 = vand.u32 2147483647, %v1568_v0 }
 0x558   : > { %v1572_v12 = vmul.f32 %v1571_v4, %v1569_v1 }
 0x55a   : > { %v1573_v6 = vxor.u32 2147483648, %v1572_v12 }
 0x55c   : > { %v1574_v14 = vsel %vm1453_vm11, %v1573_v6, %v1572_v12 }
 0x55d   : > { %v1577_v7 = vsel %vm1452_vm12, %v3199_v37, %v1574_v14  ;;  %v2478_v37 = vld [vmem:[%s3586_s11 + $0x8] sm:$0xff] }
 0x55e   : > { %v1579_v21 = vmul.f32 %v1577_v7, %v1577_v7  ;;  %v2475_v14 = vld [vmem:[%s3583_s8 + $0x8] sm:$0xff] }
 0x560   : > { %v1580_v28 = vmul.f32 -0.001358992, %v1579_v21  ;;  %v1587_v61 = vmul.f32 -0.00019511016, %v1579_v21 }
 0x562   : > { %v1581_v10 = vadd.f32 0.041655596, %v1580_v28  ;;  %v1588_v56 = vadd.f32 0.008332121, %v1587_v61 }
 0x564   : > { %v1582_v18 = vmul.f32 %v1581_v10, %v1579_v21  ;;  %v1589_v26 = vmul.f32 %v1588_v56, %v1579_v21 }
 0x566   : > { %v1583_v59 = vadd.f32 -0.4999988, %v1582_v18  ;;  %v1590_v31 = vadd.f32 -0.16666654, %v1589_v26 }
 0x568   : > { %v1584_v62 = vmul.f32 %v1583_v59, %v1579_v21  ;;  %v1591_v32 = vmul.f32 %v1590_v31, %v1579_v21 }
 0x56a   : > { %v1585_v34 = vadd.f32 1.0, %v1584_v62  ;;  %v1592_v3 = vadd.f32 1.0, %v1591_v32 }
 0x56c   : > { %v1593_v44 = vmul.f32 %v1592_v3, %v1577_v7  ;;  %v1602_v13 = vxor.u32 2147483648, %v1585_v34 }
 0x56e   : > { %v1599_v20 = vxor.u32 2147483648, %v1593_v44  ;;  %v1603_v9 = vsel %vm1601_vm14, %v1602_v13, %v1593_v44 }
 0x570   : > { %v1600_v40 = vsel %vm1598_vm13, %v1585_v34, %v1599_v20 }
 0x571   : > { %v1604_v46 = vsel %vm1597_vm15, %v1600_v40, %v1603_v9 }
 0x572   : > { %v1605_v30 = vsel %vm1594_vm0, nan, %v1604_v46 }
 0x573   : > { %v1606_v43 = vmul.f32 %v1605_v30, %v1605_v30 }
 0x575   : > { %v1612_v5 = vmul.f32 %v1610_v49, %v1606_v43 }
 0x577   : > { %v1613_v16 = vadd.f32 %v1612_v5, %v3196_v19 }
 0x579   : > { %1614 = vst.msk [vmem:[#allocation4 + $0x8] sm:$0xff] %vm851_vm9, %v1613_v16 }
 0x580   : > { %v1616_v50 = vld [vmem:[#allocation4 + $0x8] sm:$0xff] }
 0x581   : > { %1643 = vrot.lane.b32.xlu2 %v1616_v50, %s3609_s26  ;;  %1642 = vst.msk [vmem:[#allocation5 + $0x18] sm:$0xff] %vm851_vm9, %v1616_v50  ;;  %1647 = vrot.lane.b32.xlu1 %v1616_v50, %s2659_s15  ;;  %s2662_s26 = smov 18   ;;  %s3611_s15 = smov 119  }
 0x582   : > { %1651 = vrot.lane.b32.xlu0 %v1616_v50, %s3594_s18  ;;  %s2363_s18 = scalar_lea.sflag [#allocation7], %s458_s28 }
 0x588   : > { %v1660_v8 = vld [vmem:[#allocation5 + $0x18] sm:$0xff] }
 0x589   : > { %1621 = vrot.lane.b32.xlu2 %v1616_v50, %s3595_s20  ;;  %1637 = vrot.lane.b32.xlu1 %v1616_v50, %s3610_s25 }
 0x58a   : > { %1635 = vrot.lane.b32.xlu0 %v3087_v23, %s3610_s25  ;;  %s2663_s25 = smov 110  }
 0x591   : > { %1862 = vperm.xlu2 %2576, %v2478_v37   ;;  %1619 = vrot.lane.b32.xlu1 %v3087_v23, %s3595_s20  ;;  %v2487_v23 = vld [vmem:[%s3581_s6 + $0x10] sm:$0xff] }
 0x592   : > { %1629 = vrot.lane.b32.xlu0 %v1616_v50, %s2658_s21  ;;  %s3612_s21 = smov 9  }
 0x599   : > { %2069 = vperm.xlu2 %2576, %v2486_v15   ;;  %1700 = vperm.xlu1 %2570, %v2479_v11  }
 0x59a   : > { %1668 = vperm.xlu0 %2569, %v2476_v52  }
 0x5a1   : > { %1907 = vperm.xlu1 %2570, %v2487_v23  }
 0x5a2   : > { %1897 = vperm.xlu0 %2569, %v2485_v38  }
 0x5db   : > { %v1644_v55 = vpop.permute.xlu2 %1643 }
 0x5dc   : > { %1646 = vst.msk [vmem:[#allocation5 + $0x20] sm:$0xff] %vm851_vm9, %v1644_v55 }
 0x5e3   : > { %v1661_v48 = vld [vmem:[#allocation5 + $0x20] sm:$0xff]  ;;  %v1622_v47 = vpop.permute.xlu2 %1621 }
 0x5f3   : > { %v1648_v25 = vpop.permute.xlu1 %1647 }
 0x5f4   : > { %1650 = vst.msk [vmem:[#allocation5 + $0x28] sm:$0xff] %vm851_vm9, %v1648_v25  ;;  %v1652_v41 = vpop.permute.xlu0 %1651 }
 0x5f5   : > { %1654 = vst.msk [vmem:[#allocation5 + $0x30] sm:$0xff] %vm851_vm9, %v1652_v41 }
 0x5fb   : > { %v1638_v45 = vpop.permute.xlu1 %1637  ;;  %v1662_v24 = vld [vmem:[#allocation5 + $0x28] sm:$0xff] }
 0x5fc   : > { %v1636_v51 = vpop.permute.xlu0 %1635  ;;  %v1663_v57 = vld [vmem:[#allocation5 + $0x30] sm:$0xff] }
 0x5fd   : > { %v1639_v58 = vsel %vm1167_vm1, %v1636_v51, %v1638_v45  ;;  %1683 = vmatpush.msrb.mxu0 %v1663_v57 }
 0x5fe   : > { %1641 = vst.msk [vmem:[#allocation5 + $0x10] sm:$0xff] %vm851_vm9, %v1639_v58 }
 0x5ff   : > { %1684 = vmatpush.msrb.mxu0 %v1662_v24 }
 0x601   : > { %1685 = vmatpush.msrb.mxu0 %v1661_v48 }
 0x603   : > { %1686 = vmatpush.msrb.mxu0 %v1660_v8  ;;  %v1620_v53 = vpop.permute.xlu1 %1619 }
 0x604   : > { %v1624_v0 = vsel %vm1623_vm2, %v1620_v53, %v1622_v47  ;;  %v1630_v1 = vpop.permute.xlu0 %1629 }
 0x605   : > { %1626 = vst.msk [vmem:[#allocation5] sm:$0xff] %vm851_vm9, %v1624_v0  ;;  %v1632_v4 = vsel %vm1631_vm3, %v1628_v63, %v1630_v1  ;;  %v1659_v12 = vld [vmem:[#allocation5 + $0x10] sm:$0xff] }
 0x606   : > { %1634 = vst.msk [vmem:[#allocation5 + $0x8] sm:$0xff] %vm851_vm9, %v1632_v4  ;;  %1687 = vmatpush.msrb.mxu0 %v1659_v12 }
 0x60b   : > { %v1701_v61 = vpop.permute.xlu1 %1700 }
 0x60c   : > { %v1657_v17 = vld [vmem:[#allocation5] sm:$0xff]  ;;  %v1669_v7 = vpop.permute.xlu0 %1668 }
 0x60d   : > { %v1658_v6 = vld [vmem:[#allocation5 + $0x8] sm:$0xff] }
 0x60e   : > { %1688 = vmatpush.msrb.mxu0 %v1658_v6 }
 0x610   : > { %1689 = vmatpush.msrb.mxu0 %v1657_v17 }
 0x611   : > { %2477 = vmatmul.msk.f32.vlgmr.msrb.gmra.mxu0 %vm1213_vm6, %v2475_v14 }
 0x68e   : > { %v1691_v21 = vpop.f32.mrf.mxu0 }
 0x68f   : > { %v3302_v28 = vadd.f32 %v1691_v21, %v1669_v7 }
 0x691   : > { %v3305_v60 = vmul.f32 %v1701_v61, %v3302_v28 }
 0x693   : > { %v1707_v10 = vand.u32 2139095040, %v3305_v60  ;;  %v1704_v18 = vand.u32 2147483647, %v3305_v60 }
 0x695   : > { %v1708_v56 = vshrl.u32 %v1707_v10, 23  ;;  %v1711_v59 = vand.u32 8388607, %v1704_v18 }
 0x697   : > { %v2480_v22 = vadd.s32 4294967169, %v1708_v56  ;;  %v1712_v32 = vor.u32 8388608, %v1711_v59 }
 0x699   : > { %v1714_v26 = vadd.s32 1, %v2480_v22  ;;  %v3324_v15 = vshll.u32 %v1712_v32, 8 }
 0x69b   : > { %vm1715_vm1 = vcmp.gt.s32.totalorder %v1714_v26, 0  ;;  %v1753_v45 = vand.u32 65535, %v3324_v15  ;;  %v1754_v51 = vshrl.u32 %v3324_v15, 16 }
 0x69c   : > { %v1716_v31 = vsel %vm1715_vm1, %v1714_v26, 0  ;;  %vm1706_vm1 = vcmp.lt.s32.totalorder %v3305_v60, 0 }
 0x69d   : > { %v1718_v54 = vand.u32 31, %v1716_v31  ;;  %v3311_v34 = vshrl.u32 %v1716_v31, 5 }
 0x69f   : > { %v1719_v62 = vsub.s32 32, %v1718_v54  ;;  %v1721_v3 = vshll.u32 %v2645_v27, %v1718_v54  ;;  %v1724_v35 = vshll.u32 %v2646_v29, %v1718_v54  ;;  %v1727_v20 = vshll.u32 %v2647_v33, %v1718_v54 }
 0x6a0   : > { %v1730_v9 = vshll.u32 %v2648_v36, %v1718_v54  ;;  %v1733_v30 = vshll.u32 %v2649_v39, %v1718_v54  ;;  %vm1736_vm4 = vcmp.lt.s32.totalorder %v3311_v34, 1  ;;  %vm1739_vm5 = vcmp.lt.s32.totalorder %v3311_v34, 4 }
 0x6a1   : > { %v1722_v44 = vshrl.u32 %v2646_v29, %v1719_v62  ;;  %v1725_v13 = vshrl.u32 %v2647_v33, %v1719_v62  ;;  %v1728_v40 = vshrl.u32 %v2648_v36, %v1719_v62  ;;  %v1731_v46 = vshrl.u32 %v2649_v39, %v1719_v62 }
 0x6a2   : > { %v1734_v43 = vshrl.u32 %v2650_v42, %v1719_v62  ;;  %vm1738_vm7 = vcmp.lt.s32.totalorder %v3311_v34, 3  ;;  %vm1737_vm8 = vcmp.lt.s32.totalorder %v3311_v34, 2  ;;  %v1720_v32 = vshrl.u32 %v2645_v27, %v1719_v62 }
 0x6a3   : > { %v1723_v49 = vor.u32 %v1722_v44, %v1721_v3  ;;  %v1726_v5 = vor.u32 %v1725_v13, %v1724_v35  ;;  %v1729_v16 = vor.u32 %v1728_v40, %v1727_v20  ;;  %v1732_v50 = vor.u32 %v1731_v46, %v1730_v9 }
 0x6a4   : > { %v1735_v37 = vor.u32 %v1734_v43, %v1733_v30 }
 0x6a5   : > { %v1744_v11 = vsel %vm1736_vm4, %v1723_v49, %v1726_v5  ;;  %v1748_v52 = vsel %vm1736_vm4, %v1726_v5, %v1729_v16  ;;  %v1745_v23 = vsel %vm1739_vm5, %v1732_v50, 920167782  ;;  %v1741_v59 = vsel %vm1739_vm5, %v1729_v16, 2102212464 }
 0x6a6   : > { %v1749_v38 = vsel %vm1739_vm5, %v1735_v37, 1326507024  ;;  %v1746_v63 = vsel %vm1738_vm7, %v1729_v16, %v1745_v23  ;;  %v1740_v40 = vsel %vm1736_vm4, %v1720_v32, %v1723_v49  ;;  %v1742_v9 = vsel %vm1738_vm7, %v1726_v5, %v1741_v59 }
 0x6a7   : > { %v1750_v55 = vsel %vm1738_vm7, %v1732_v50, %v1749_v38  ;;  %v1747_v25 = vsel %vm1737_vm8, %v1744_v11, %v1746_v63  ;;  %v1743_v62 = vsel %vm1737_vm8, %v1740_v40, %v1742_v9  ;;  %vm1705_vm4 = vcmp.le.f32.partialorder %v1704_v18, 0.7853982 }
 0x6a8   : > { %v1751_v41 = vsel %vm1737_vm8, %v1748_v52, %v1750_v55  ;;  %v1777_v24 = vand.u32 65535, %v1747_v25  ;;  %v1778_v48 = vshrl.u32 %v1747_v25, 16  ;;  %v1797_v23 = vmul.u32 %v3324_v15, %v1743_v62 }
 0x6a9   : > { %v1755_v57 = vand.u32 65535, %v1751_v41  ;;  %v1756_v58 = vshrl.u32 %v1751_v41, 16 }
 0x6aa   : > { %v1780_v53 = vmul.u32 %v1778_v48, %v1753_v45  ;;  %v1781_v0 = vmul.u32 %v1777_v24, %v1754_v51  ;;  %v1779_v6 = vmul.u32 %v1777_v24, %v1753_v45  ;;  %v1782_v21 = vmul.u32 %v1778_v48, %v1754_v51 }
 0x6ab   : > { %v1758_v8 = vmul.u32 %v1756_v58, %v1753_v45  ;;  %v1759_v47 = vmul.u32 %v1755_v57, %v1754_v51  ;;  %v1757_v1 = vmul.u32 %v1755_v57, %v1753_v45  ;;  %v1760_v12 = vmul.u32 %v1756_v58, %v1754_v51 }
 0x6ac   : > { %v1783_v14 = vshll.u32 %v1780_v53, 16  ;;  %v1785_v10 = vshll.u32 %v1781_v0, 16  ;;  %v1784_v13 = vshrl.u32 %v1780_v53, 16  ;;  %v1786_v43 = vshrl.u32 %v1781_v0, 16 }
 0x6ad   : > { %v1761_v4 = vshll.u32 %v1758_v8, 16  ;;  %v1763_v17 = vshll.u32 %v1759_v47, 16  ;;  %v1762_v3 = vshrl.u32 %v1758_v8, 16  ;;  %v1764_v46 = vshrl.u32 %v1759_v47, 16 }
 0x6ae   : > { %vm1787_vm12 = vc.u32 %v1779_v6, %v1783_v14  ;;  %v1789_v56 = vadd.s32 %v1783_v14, %v1779_v6 }
 0x6af   : > { %vm1765_vm11 = vc.u32 %v1757_v1, %v1761_v4  ;;  %v1767_v7 = vadd.s32 %v1761_v4, %v1757_v1  ;;  %v1788_v26 = vsel %vm1787_vm12, 1, %v2643_v2 }
 0x6b0   : > { %v1766_v61 = vsel %vm1765_vm11, 1, %v2643_v2  ;;  %v1790_v54 = vadd.s32 %v1788_v26, %v1782_v21  ;;  %vm1791_vm14 = vc.u32 %v1789_v56, %v1785_v10  ;;  %v1793_v37 = vadd.s32 %v1789_v56, %v1785_v10 }
 0x6b1   : > { %v1768_v22 = vadd.s32 %v1766_v61, %v1760_v12  ;;  %vm1769_vm13 = vc.u32 %v1767_v7, %v1763_v17  ;;  %v1792_v44 = vsel %vm1791_vm14, 1, %v2643_v2  ;;  %vm1847_vm11 = vweird.f32 %v3305_v60 }
 0x6b2   : > { %v1770_v31 = vsel %vm1769_vm13, 1, %v2643_v2  ;;  %v1794_v20 = vadd.s32 %v1792_v44, %v1790_v54 }
 0x6b3   : > { %v1772_v35 = vadd.s32 %v1770_v31, %v1768_v22 }
 0x6b4   : > { %v1795_v16 = vadd.s32 %v1794_v20, %v1784_v13 }
 0x6b5   : > { %v1773_v30 = vadd.s32 %v1772_v35, %v1762_v3 }
 0x6b6   : > { %v1796_v11 = vadd.s32 %v1795_v16, %v1786_v43 }
 0x6b7   : > { %v1774_v50 = vadd.s32 %v1773_v30, %v1764_v46 }
 0x6b8   : > { %v1800_v52 = vadd.s32 1, %v1796_v11 }
 0x6b9   : > { %vm1799_vm15 = vc.u32 %v1774_v50, %v1793_v37  ;;  %v1798_v34 = vadd.s32 %v1793_v37, %v1774_v50 }
 0x6ba   : > { %v1801_v38 = vsel %vm1799_vm15, %v1800_v52, %v1796_v11  ;;  %v1863_v52 = vpop.permute.xlu2 %1862 }
 0x6bb   : > { %v1802_v63 = vadd.s32 %v1801_v38, %v1797_v23 }
 0x6bd   : > { %v1803_v49 = vadd.s32 536870912, %v1802_v63 }
 0x6bf   : > { %v1804_v55 = vshrl.u32 %v1803_v49, 30  ;;  %v3371_v49 = vld [vmem:[#allocation2] sm:$0xff] }
 0x6c0   : > { %2087 = vrot.lane.b32.xlu2 %v3371_v49, %s2662_s26 }
 0x6c1   : > { %v1805_v25 = vshll.u32 %v1804_v55, 30  ;;  %v1828_v7 = vsub.s32 4, %v1804_v55 }
 0x6c3   : > { %v1806_v5 = vsub.s32 %v1802_v63, %v1805_v25  ;;  %v1829_v22 = vsel %vm1706_vm1, %v1828_v7, %v1804_v55  ;;  %v2483_v63 = vld [vmem:[%s3587_s12 + $0x8] sm:$0xff]  ;;  %v1898_v25 = vpop.permute.xlu0 %1897 }
 0x6c4   : > { %v1831_v31 = vsel %vm1705_vm4, 0, %v1829_v22 }
 0x6c5   : > { %vm1807_vm0 = vcmp.lt.s32.totalorder %v1806_v5, 0  ;;  %v1808_v41 = vsub.s32 0, %v1806_v5  ;;  %v1848_v44 = vadd.s32 3, %v1831_v31 }
 0x6c7   : > { %v1809_v45 = vsel %vm1807_vm0, %v1808_v41, %v1806_v5  ;;  %v1849_v9 = vand.u32 3, %v1848_v44 }
 0x6c8   : > { %v1810_v51 = vclz %v1809_v45 }
 0x6c9   : > { %vm1851_vm5 = vcmp.eq.s32.totalorder %v1849_v9, 0  ;;  %vm1854_vm7 = vcmp.eq.s32.totalorder %v1849_v9, 2  ;;  %vm1850_vm8 = vcmp.lt.s32.totalorder %v1849_v9, 2 }
 0x6ca   : > { %v2481_v57 = vadd.s32 4294967294, %v1810_v51 }
 0x6cc   : > { %vm2482_vm3 = vcmp.lt.s32.totalorder %v2481_v57, 0 }
 0x6cd   : > { %v1813_v58 = vsel %vm2482_vm3, 0, %v2481_v57 }
 0x6ce   : > { %v1814_v24 = vsub.s32 32, %v1813_v58  ;;  %v1818_v48 = vsub.s32 4294967266, %v1813_v58  ;;  %v1815_v8 = vshll.u32 %v1806_v5, %v1813_v58 }
 0x6d0   : > { %v1816_v47 = vshrl.u32 %v1798_v34, %v1814_v24  ;;  %v1819_v53 = vadd.s32 127, %v1818_v48 }
 0x6d2   : > { %v1817_v15 = vor.u32 %v1816_v47, %v1815_v8  ;;  %v1820_v0 = vshll.u32 %v1819_v53, 23 }
 0x6d4   : > { %v1821_v1 = vor.u32 4788187, %v1820_v0  ;;  %v1824_v12 = vcvt.s32.f32 %v1817_v15 }
 0x6d6   : > { %v1822_v4 = vand.u32 2147483647, %v1821_v1 }
 0x6d8   : > { %v1825_v6 = vmul.f32 %v1824_v12, %v1822_v4 }
 0x6da   : > { %v1826_v14 = vxor.u32 2147483648, %v1825_v6 }
 0x6dc   : > { %v1827_v17 = vsel %vm1706_vm1, %v1826_v14, %v1825_v6 }
 0x6dd   : > { %v1830_v21 = vsel %vm1705_vm4, %v3305_v60, %v1827_v17 }
 0x6de   : > { %v1832_v61 = vmul.f32 %v1830_v21, %v1830_v21 }
 0x6e0   : > { %v1833_v10 = vmul.f32 -0.001358992, %v1832_v61  ;;  %v1840_v56 = vmul.f32 -0.00019511016, %v1832_v61 }
 0x6e2   : > { %v1834_v26 = vadd.f32 0.041655596, %v1833_v10  ;;  %v1841_v59 = vadd.f32 0.008332121, %v1840_v56 }
 0x6e4   : > { %v1835_v54 = vmul.f32 %v1834_v26, %v1832_v61  ;;  %v1842_v32 = vmul.f32 %v1841_v59, %v1832_v61 }
 0x6e6   : > { %v1836_v3 = vadd.f32 -0.4999988, %v1835_v54  ;;  %v1843_v35 = vadd.f32 -0.16666654, %v1842_v32 }
 0x6e8   : > { %v1837_v13 = vmul.f32 %v1836_v3, %v1832_v61  ;;  %v1844_v20 = vmul.f32 %v1843_v35, %v1832_v61 }
 0x6ea   : > { %v1838_v40 = vadd.f32 1.0, %v1837_v13  ;;  %v1845_v18 = vadd.f32 1.0, %v1844_v20 }
 0x6ec   : > { %v1846_v46 = vmul.f32 %v1845_v18, %v1830_v21  ;;  %v1855_v30 = vxor.u32 2147483648, %v1838_v40 }
 0x6ee   : > { %v1852_v43 = vxor.u32 2147483648, %v1846_v46  ;;  %v1856_v50 = vsel %vm1854_vm7, %v1855_v30, %v1846_v46 }
 0x6f0   : > { %v1853_v16 = vsel %vm1851_vm5, %v1838_v40, %v1852_v43 }
 0x6f1   : > { %v1857_v37 = vsel %vm1850_vm8, %v1853_v16, %v1856_v50 }
 0x6f2   : > { %v1858_v62 = vsel %vm1847_vm11, nan, %v1857_v37 }
 0x6f3   : > { %v1859_v11 = vmul.f32 %v1858_v62, %v1858_v62 }
 0x6f5   : > { %v1865_v23 = vmul.f32 %v1863_v52, %v1859_v11 }
 0x6f7   : > { %v1866_v38 = vadd.f32 %v1865_v23, %v3302_v28  ;;  %v1908_v28 = vpop.permute.xlu1 %1907 }
 0x6f9   : > { %1887 = vmatpush.msrb.mxu1 %v1866_v38 }
 0x6fa   : > { %2484 = vmatmul.msk.f32.vlgmr.msrb.gmra.mxu1 %vm1409_vm10, %v2483_v63 }
 0x777   : > { %v1889_v60 = vpop.f32.mrf.mxu1 }
 0x778   : > { %v1892_v55 = vadd.f32 %v1889_v60, %v3196_v19 }
 0x77a   : > { %v3376_v5 = vadd.f32 %v1898_v25, %v1892_v55 }
 0x77c   : > { %v3379_v41 = vmul.f32 %v1908_v28, %v3376_v5 }
 0x77e   : > { %v1914_v45 = vand.u32 2139095040, %v3379_v41  ;;  %v1911_v58 = vand.u32 2147483647, %v3379_v41 }
 0x780   : > { %v1915_v51 = vshrl.u32 %v1914_v45, 23  ;;  %v1918_v24 = vand.u32 8388607, %v1911_v58 }
 0x782   : > { %v2488_v57 = vadd.s32 4294967169, %v1915_v51  ;;  %v1919_v47 = vor.u32 8388608, %v1918_v24 }
 0x784   : > { %v1921_v34 = vadd.s32 1, %v2488_v57  ;;  %v3398_v59 = vshll.u32 %v1919_v47, 8 }
 0x786   : > { %vm1922_vm12 = vcmp.gt.s32.totalorder %v1921_v34, 0  ;;  %v1960_v40 = vand.u32 65535, %v3398_v59  ;;  %v1961_v18 = vshrl.u32 %v3398_v59, 16 }
 0x787   : > { %v1923_v48 = vsel %vm1922_vm12, %v1921_v34, 0  ;;  %vm1913_vm12 = vcmp.lt.s32.totalorder %v3379_v41, 0 }
 0x788   : > { %v1925_v19 = vand.u32 31, %v1923_v48  ;;  %v3385_v53 = vshrl.u32 %v1923_v48, 5 }
 0x78a   : > { %v1926_v8 = vsub.s32 32, %v1925_v19  ;;  %v1928_v15 = vshll.u32 %v2645_v27, %v1925_v19  ;;  %v1931_v0 = vshll.u32 %v2646_v29, %v1925_v19  ;;  %v1934_v12 = vshll.u32 %v2647_v33, %v1925_v19 }
 0x78b   : > { %v1937_v14 = vshll.u32 %v2648_v36, %v1925_v19  ;;  %v1940_v7 = vshll.u32 %v2649_v39, %v1925_v19  ;;  %vm1943_vm13 = vcmp.lt.s32.totalorder %v3385_v53, 1  ;;  %vm1946_vm14 = vcmp.lt.s32.totalorder %v3385_v53, 4 }
 0x78c   : > { %v1929_v1 = vshrl.u32 %v2646_v29, %v1926_v8  ;;  %v1932_v4 = vshrl.u32 %v2647_v33, %v1926_v8  ;;  %v1935_v6 = vshrl.u32 %v2648_v36, %v1926_v8  ;;  %v1938_v17 = vshrl.u32 %v2649_v39, %v1926_v8 }
 0x78d   : > { %v1941_v21 = vshrl.u32 %v2650_v42, %v1926_v8  ;;  %vm1945_vm15 = vcmp.lt.s32.totalorder %v3385_v53, 3  ;;  %vm1944_vm0 = vcmp.lt.s32.totalorder %v3385_v53, 2  ;;  %v1927_v47 = vshrl.u32 %v2645_v27, %v1926_v8 }
 0x78e   : > { %v1930_v61 = vor.u32 %v1929_v1, %v1928_v15  ;;  %v1933_v10 = vor.u32 %v1932_v4, %v1931_v0  ;;  %v1936_v56 = vor.u32 %v1935_v6, %v1934_v12  ;;  %v1939_v22 = vor.u32 %v1938_v17, %v1937_v14 }
 0x78f   : > { %v1942_v26 = vor.u32 %v1941_v21, %v1940_v7 }
 0x790   : > { %v1951_v31 = vsel %vm1943_vm13, %v1930_v61, %v1933_v10  ;;  %v1955_v54 = vsel %vm1943_vm13, %v1933_v10, %v1936_v56  ;;  %v1952_v32 = vsel %vm1946_vm14, %v1939_v22, 920167782  ;;  %v1948_v24 = vsel %vm1946_vm14, %v1936_v56, 2102212464 }
 0x791   : > { %v1956_v3 = vsel %vm1946_vm14, %v1942_v26, 1326507024  ;;  %v1953_v35 = vsel %vm1945_vm15, %v1936_v56, %v1952_v32  ;;  %v1947_v6 = vsel %vm1943_vm13, %v1927_v47, %v1930_v61  ;;  %v1949_v14 = vsel %vm1945_vm15, %v1933_v10, %v1948_v24 }
 0x792   : > { %v1957_v44 = vsel %vm1945_vm15, %v1939_v22, %v1956_v3  ;;  %v1954_v13 = vsel %vm1944_vm0, %v1951_v31, %v1953_v35  ;;  %v1950_v8 = vsel %vm1944_vm0, %v1947_v6, %v1949_v14  ;;  %vm1912_vm13 = vcmp.le.f32.partialorder %v1911_v58, 0.7853982 }
 0x793   : > { %v1958_v20 = vsel %vm1944_vm0, %v1955_v54, %v1957_v44  ;;  %v1984_v30 = vand.u32 65535, %v1954_v13  ;;  %v1985_v43 = vshrl.u32 %v1954_v13, 16  ;;  %v2004_v32 = vmul.u32 %v3398_v59, %v1950_v8 }
 0x794   : > { %v1962_v9 = vand.u32 65535, %v1958_v20  ;;  %v1963_v46 = vshrl.u32 %v1958_v20, 16 }
 0x795   : > { %v1987_v37 = vmul.u32 %v1985_v43, %v1960_v40  ;;  %v1988_v62 = vmul.u32 %v1984_v30, %v1961_v18  ;;  %v1986_v38 = vmul.u32 %v1984_v30, %v1960_v40  ;;  %v1989_v25 = vmul.u32 %v1985_v43, %v1961_v18 }
 0x796   : > { %v1965_v16 = vmul.u32 %v1963_v46, %v1960_v40  ;;  %v1966_v50 = vmul.u32 %v1962_v9, %v1961_v18  ;;  %v1964_v11 = vmul.u32 %v1962_v9, %v1960_v40  ;;  %v1967_v23 = vmul.u32 %v1963_v46, %v1961_v18 }
 0x797   : > { %v1990_v63 = vshll.u32 %v1987_v37, 16  ;;  %v1992_v45 = vshll.u32 %v1988_v62, 16  ;;  %v1991_v4 = vshrl.u32 %v1987_v37, 16  ;;  %v1993_v21 = vshrl.u32 %v1988_v62, 16 }
 0x798   : > { %v1968_v52 = vshll.u32 %v1965_v16, 16  ;;  %v1970_v60 = vshll.u32 %v1966_v50, 16  ;;  %v1969_v15 = vshrl.u32 %v1965_v16, 16  ;;  %v1971_v17 = vshrl.u32 %v1966_v50, 16 }
 0x799   : > { %vm1994_vm1 = vc.u32 %v1986_v38, %v1990_v63  ;;  %v1996_v51 = vadd.s32 %v1990_v63, %v1986_v38 }
 0x79a   : > { %vm1972_vm3 = vc.u32 %v1964_v11, %v1968_v52  ;;  %v1974_v55 = vadd.s32 %v1968_v52, %v1964_v11  ;;  %v1995_v34 = vsel %vm1994_vm1, 1, %v2643_v2  ;;  %vm2083_vm1 = vcmask 220160  }
 0x79b   : > { %v1973_v28 = vsel %vm1972_vm3, 1, %v2643_v2  ;;  %v1997_v19 = vadd.s32 %v1995_v34, %v1989_v25  ;;  %vm1998_vm5 = vc.u32 %v1996_v51, %v1992_v45  ;;  %v2000_v26 = vadd.s32 %v1996_v51, %v1992_v45 }
 0x79c   : > { %v1975_v57 = vadd.s32 %v1973_v28, %v1967_v23  ;;  %vm1976_vm4 = vc.u32 %v1974_v55, %v1970_v60  ;;  %v1999_v1 = vsel %vm1998_vm5, 1, %v2643_v2  ;;  %vm2054_vm3 = vweird.f32 %v3379_v41 }
 0x79d   : > { %v1977_v48 = vsel %vm1976_vm4, 1, %v2643_v2  ;;  %v2001_v12 = vadd.s32 %v1999_v1, %v1997_v19  ;;  %vm2091_vm4 = vcmask 146432  }
 0x79e   : > { %v1979_v0 = vadd.s32 %v1977_v48, %v1975_v57 }
 0x79f   : > { %v2002_v56 = vadd.s32 %v2001_v12, %v1991_v4 }
 0x7a0   : > { %v1980_v7 = vadd.s32 %v1979_v0, %v1969_v15 }
 0x7a1   : > { %v2003_v31 = vadd.s32 %v2002_v56, %v1993_v21 }
 0x7a2   : > { %v1981_v22 = vadd.s32 %v1980_v7, %v1971_v17 }
 0x7a3   : > { %v2007_v54 = vadd.s32 1, %v2003_v31 }
 0x7a4   : > { %vm2006_vm7 = vc.u32 %v1981_v22, %v2000_v26  ;;  %v2005_v53 = vadd.s32 %v2000_v26, %v1981_v22 }
 0x7a5   : > { %v2008_v3 = vsel %vm2006_vm7, %v2007_v54, %v2003_v31  ;;  %v2070_v54 = vpop.permute.xlu2 %2069 }
 0x7a6   : > { %v2009_v35 = vadd.s32 %v2008_v3, %v2004_v32 }
 0x7a8   : > { %v2010_v61 = vadd.s32 536870912, %v2009_v35 }
 0x7aa   : > { %v2011_v44 = vshrl.u32 %v2010_v61, 30  ;;  %v2495_v61 = vld [vmem:[%s3585_s10 + $0x10] sm:$0xff] }
 0x7ac   : > { %v2012_v13 = vshll.u32 %v2011_v44, 30  ;;  %v2035_v55 = vsub.s32 4, %v2011_v44 }
 0x7ae   : > { %v2013_v10 = vsub.s32 %v2009_v35, %v2012_v13  ;;  %v2036_v57 = vsel %vm1913_vm12, %v2035_v55, %v2011_v44  ;;  %v2492_v44 = vld [vmem:[%s3584_s9 + $0x10] sm:$0xff] }
 0x7af   : > { %v2038_v48 = vsel %vm1912_vm13, 0, %v2036_v57  ;;  %v2501_v13 = vld [vmem:[%s3588_s13 + $0x10] sm:$0xff] }
 0x7b0   : > { %vm2014_vm8 = vcmp.lt.s32.totalorder %v2013_v10, 0  ;;  %v2015_v20 = vsub.s32 0, %v2013_v10  ;;  %v2055_v1 = vadd.s32 3, %v2038_v48 }
 0x7b2   : > { %v2016_v40 = vsel %vm2014_vm8, %v2015_v20, %v2013_v10  ;;  %v2056_v14 = vand.u32 3, %v2055_v1 }
 0x7b3   : > { %v2017_v18 = vclz %v2016_v40 }
 0x7b4   : > { %vm2058_vm14 = vcmp.eq.s32.totalorder %v2056_v14, 0  ;;  %vm2061_vm15 = vcmp.eq.s32.totalorder %v2056_v14, 2  ;;  %vm2057_vm0 = vcmp.lt.s32.totalorder %v2056_v14, 2 }
 0x7b5   : > { %v2489_v9 = vadd.s32 4294967294, %v2017_v18 }
 0x7b7   : > { %vm2490_vm11 = vcmp.lt.s32.totalorder %v2489_v9, 0 }
 0x7b8   : > { %v2020_v46 = vsel %vm2490_vm11, 0, %v2489_v9 }
 0x7b9   : > { %v2021_v30 = vsub.s32 32, %v2020_v46  ;;  %v2025_v43 = vsub.s32 4294967266, %v2020_v46  ;;  %v2022_v16 = vshll.u32 %v2013_v10, %v2020_v46  ;;  %v2088_v10 = vpop.permute.xlu2 %2087 }
 0x7bb   : > { %v2023_v50 = vshrl.u32 %v2005_v53, %v2021_v30  ;;  %v2026_v37 = vadd.s32 127, %v2025_v43 }
 0x7bd   : > { %v2024_v59 = vor.u32 %v2023_v50, %v2022_v16  ;;  %v2027_v62 = vshll.u32 %v2026_v37, 23 }
 0x7bf   : > { %v2028_v11 = vor.u32 4788187, %v2027_v62  ;;  %v2031_v23 = vcvt.s32.f32 %v2024_v59 }
 0x7c1   : > { %v2029_v52 = vand.u32 2147483647, %v2028_v11 }
 0x7c3   : > { %v2032_v38 = vmul.f32 %v2031_v23, %v2029_v52 }
 0x7c5   : > { %v2033_v63 = vxor.u32 2147483648, %v2032_v38 }
 0x7c7   : > { %v2034_v60 = vsel %vm1913_vm12, %v2033_v63, %v2032_v38  ;;  %v2491_v38 = vld [vmem:[%s3583_s8 + $0x10] sm:$0xff] }
 0x7c8   : > { %v2037_v25 = vsel %vm1912_vm13, %v3379_v41, %v2034_v60  ;;  %v2494_v41 = vld [vmem:[%s3586_s11 + $0x10] sm:$0xff] }
 0x7c9   : > { %v2039_v28 = vmul.f32 %v2037_v25, %v2037_v25 }
 0x7cb   : > { %v2040_v45 = vmul.f32 -0.001358992, %v2039_v28  ;;  %v2047_v51 = vmul.f32 -0.00019511016, %v2039_v28 }
 0x7cd   : > { %v2041_v34 = vadd.f32 0.041655596, %v2040_v45  ;;  %v2048_v24 = vadd.f32 0.008332121, %v2047_v51 }
 0x7cf   : > { %v2042_v19 = vmul.f32 %v2041_v34, %v2039_v28  ;;  %v2049_v47 = vmul.f32 %v2048_v24, %v2039_v28 }
 0x7d1   : > { %v2043_v15 = vadd.f32 -0.4999988, %v2042_v19  ;;  %v2050_v0 = vadd.f32 -0.16666654, %v2049_v47 }
 0x7d3   : > { %v2044_v4 = vmul.f32 %v2043_v15, %v2039_v28  ;;  %v2051_v12 = vmul.f32 %v2050_v0, %v2039_v28 }
 0x7d5   : > { %v2045_v6 = vadd.f32 1.0, %v2044_v4  ;;  %v2052_v58 = vadd.f32 1.0, %v2051_v12 }
 0x7d7   : > { %v2053_v17 = vmul.f32 %v2052_v58, %v2037_v25  ;;  %v2062_v7 = vxor.u32 2147483648, %v2045_v6 }
 0x7d9   : > { %v2059_v21 = vxor.u32 2147483648, %v2053_v17  ;;  %v2063_v22 = vsel %vm2061_vm15, %v2062_v7, %v2053_v17 }
 0x7db   : > { %v2060_v56 = vsel %vm2058_vm14, %v2045_v6, %v2059_v21 }
 0x7dc   : > { %v2064_v26 = vsel %vm2057_vm0, %v2060_v56, %v2063_v22 }
 0x7dd   : > { %v2065_v8 = vsel %vm2054_vm3, nan, %v2064_v26 }
 0x7de   : > { %v2066_v31 = vmul.f32 %v2065_v8, %v2065_v8 }
 0x7e0   : > { %v2072_v32 = vmul.f32 %v2070_v54, %v2066_v31 }
 0x7e2   : > { %v2073_v3 = vadd.f32 %v2072_v32, %v3376_v5 }
 0x7e4   : > { %2074 = vst.msk [vmem:[#allocation4 + $0x8] sm:$0xff] %vm851_vm9, %v2073_v3 }
 0x7eb   : > { %v2076_v35 = vld [vmem:[#allocation4 + $0x8] sm:$0xff] }
 0x7ec   : > { %2103 = vrot.lane.b32.xlu2 %v2076_v35, %s3611_s15  ;;  %2102 = vst.msk [vmem:[#allocation5 + $0x18] sm:$0xff] %vm851_vm9, %v2076_v35  ;;  %2107 = vrot.lane.b32.xlu1 %v2076_v35, %s2663_s25  ;;  %s2503_s15 = sshll.u32 %s2762_s17, 3  ;;  %s2599_s25 = scalar_lea.hbm %s3589_s14, 16 }
 0x7ed   : > { %2111 = vrot.lane.b32.xlu0 %v2076_v35, %s2664_s0 }
 0x7f3   : > { %v2120_v16 = vld [vmem:[#allocation5 + $0x18] sm:$0xff] }
 0x7f4   : > { %2081 = vrot.lane.b32.xlu2 %v2076_v35, %s2665_s27  ;;  %2097 = vrot.lane.b32.xlu1 %v2076_v35, %s3612_s21 }
 0x7f5   : > { %2095 = vrot.lane.b32.xlu0 %v3371_v49, %s3612_s21  ;;  %s2373_s21 = scalar_lea.hbm %s3589_s14, %s2503_s15 }
 0x7f6   : > { %s2377_s1 = sshll.u32 %s2373_s21, 4  ;;  %s2378_s1 = int_to_ptr.hbm [resolvable:$true] %s2377_s1 }
 0x7f7   : > { %s2593_s20 = sshra.s32 %s2378_s1, 4  ;;  %s2594_s20 = int_to_ptr.hbm [resolvable:$true] %s2593_s20 }
 0x7f8   : > { %s2595_s17 = scalar_lea.hbm %s2594_s20, 8  ;;  %p2600_p0 = scmp.lt.s32.totalorder %s2594_s20, %s3589_s14 }
 0x7f9   : > { %p2596_p11 = scmp.ne.s32.totalorder %s2594_s20, %s2595_s17  ;;  %p2601_p1 = scmp.lt.s32.totalorder %s2599_s25, %s2595_s17 }
 0x7fb   : > { %p2597_p12 = pnand %p2596_p11, %p2779_p5  ;;  %p2602_p2 = por %p2601_p1, %p2600_p0 }
 0x7fc   : > { %2322 = vperm.xlu2 %2576, %v2494_v41   ;;  %2079 = vrot.lane.b32.xlu1 %v3371_v49, %s2665_s27 }
 0x7fd   : > { %2089 = vrot.lane.b32.xlu0 %v2076_v35, %s2662_s26  ;;  %s460_s26 = scalar_lea.vmem [#allocation6], %s2441_s22  ;;  %p2598_p13 = pneg %p2597_p12 }
 0x7fe   : > { %s2375_s27 = sshll.u32 %s460_s26, 4  ;;  %s2376_s27 = int_to_ptr.vmem [resolvable:$true] %s2375_s27 }
 0x7ff   : > { %p2603_p3 = pnand %p2602_p2, %p2598_p13 }
 0x804   : > { %2160 = vperm.xlu1 %2570, %v2495_v61  }
 0x805   : > { %2128 = vperm.xlu0 %2569, %v2492_v44  }
 0x80d   : > { %2357 = vperm.xlu0 %2569, %v2501_v13  }
 0x846   : > { %v2104_v20 = vpop.permute.xlu2 %2103 }
 0x847   : > { %2106 = vst.msk [vmem:[#allocation5 + $0x20] sm:$0xff] %vm851_vm9, %v2104_v20 }
 0x84e   : > { %v2121_v43 = vld [vmem:[#allocation5 + $0x20] sm:$0xff]  ;;  %v2082_v50 = vpop.permute.xlu2 %2081 }
 0x85e   : > { %v2108_v49 = vpop.permute.xlu1 %2107 }
 0x85f   : > { %2110 = vst.msk [vmem:[#allocation5 + $0x28] sm:$0xff] %vm851_vm9, %v2108_v49  ;;  %v2112_v40 = vpop.permute.xlu0 %2111 }
 0x860   : > { %2114 = vst.msk [vmem:[#allocation5 + $0x30] sm:$0xff] %vm851_vm9, %v2112_v40 }
 0x866   : > { %v2098_v18 = vpop.permute.xlu1 %2097  ;;  %v2122_v30 = vld [vmem:[#allocation5 + $0x28] sm:$0xff] }
 0x867   : > { %v2096_v9 = vpop.permute.xlu0 %2095  ;;  %v2123_v46 = vld [vmem:[#allocation5 + $0x30] sm:$0xff] }
 0x868   : > { %v2099_v53 = vsel %vm1623_vm2, %v2096_v9, %v2098_v18  ;;  %2143 = vmatpush.msra.mxu3 %v2123_v46 }
 0x869   : > { %2101 = vst.msk [vmem:[#allocation5 + $0x10] sm:$0xff] %vm851_vm9, %v2099_v53 }
 0x86a   : > { %2144 = vmatpush.msra.mxu3 %v2122_v30 }
 0x86c   : > { %2145 = vmatpush.msra.mxu3 %v2121_v43 }
 0x86e   : > { %2146 = vmatpush.msra.mxu3 %v2120_v16  ;;  %v2080_v37 = vpop.permute.xlu1 %2079 }
 0x86f   : > { %v2084_v59 = vsel %vm2083_vm1, %v2080_v37, %v2082_v50  ;;  %v2090_v62 = vpop.permute.xlu0 %2089 }
 0x870   : > { %2086 = vst.msk [vmem:[#allocation5] sm:$0xff] %vm851_vm9, %v2084_v59  ;;  %v2092_v11 = vsel %vm2091_vm4, %v2088_v10, %v2090_v62  ;;  %v2119_v52 = vld [vmem:[#allocation5 + $0x10] sm:$0xff] }
 0x871   : > { %2094 = vst.msk [vmem:[#allocation5 + $0x8] sm:$0xff] %vm851_vm9, %v2092_v11  ;;  %2147 = vmatpush.msra.mxu3 %v2119_v52 }
 0x876   : > { %v2161_v28 = vpop.permute.xlu1 %2160 }
 0x877   : > { %v2117_v63 = vld [vmem:[#allocation5] sm:$0xff]  ;;  %v2129_v60 = vpop.permute.xlu0 %2128 }
 0x878   : > { %v2118_v23 = vld [vmem:[#allocation5 + $0x8] sm:$0xff] }
 0x879   : > { %2148 = vmatpush.msra.mxu3 %v2118_v23 }
 0x87b   : > { %2149 = vmatpush.msra.mxu3 %v2117_v63 }
 0x87c   : > { %2493 = vmatmul.msk.f32.vlgmr.msra.gmra.mxu3 %vm1213_vm6, %v2491_v38 }
 0x8ff   : > { %v2151_v55 = vpop.f32.mrf.mxu3 }
 0x900   : > { %v3472_v25 = vadd.f32 %v2151_v55, %v2129_v60 }
 0x902   : > { %v3475_v45 = vmul.f32 %v2161_v28, %v3472_v25 }
 0x904   : > { %v2167_v51 = vand.u32 2139095040, %v3475_v45  ;;  %v2164_v24 = vand.u32 2147483647, %v3475_v45  ;;  %vm2166_vm1 = vcmp.lt.s32.totalorder %v3475_v45, 0 }
 0x906   : > { %v2168_v57 = vshrl.u32 %v2167_v51, 23  ;;  %v2171_v19 = vand.u32 8388607, %v2164_v24  ;;  %vm2165_vm4 = vcmp.le.f32.partialorder %v2164_v24, 0.7853982 }
 0x908   : > { %v2496_v34 = vadd.s32 4294967169, %v2168_v57  ;;  %v2172_v1 = vor.u32 8388608, %v2171_v19 }
 0x90a   : > { %v2174_v48 = vadd.s32 1, %v2496_v34 }
 0x90c   : > { %vm2175_vm2 = vcmp.gt.s32.totalorder %v2174_v48, 0 }
 0x90d   : > { %v2176_v47 = vsel %vm2175_vm2, %v2174_v48, 0 }
 0x90e   : > { %v2178_v15 = vand.u32 31, %v2176_v47  ;;  %v3481_v4 = vshrl.u32 %v2176_v47, 5 }
 0x910   : > { %v2179_v0 = vsub.s32 32, %v2178_v15  ;;  %v2181_v12 = vshll.u32 %v2645_v27, %v2178_v15  ;;  %v2184_v6 = vshll.u32 %v2646_v29, %v2178_v15  ;;  %v2187_v17 = vshll.u32 %v2647_v33, %v2178_v15 }
 0x911   : > { %v2190_v21 = vshll.u32 %v2648_v36, %v2178_v15  ;;  %v2193_v22 = vshll.u32 %v2649_v39, %v2178_v15  ;;  %vm2196_vm6 = vcmp.lt.s32.totalorder %v3481_v4, 1  ;;  %vm2199_vm5 = vcmp.lt.s32.totalorder %v3481_v4, 4 }
 0x912   : > { %v2182_v58 = vshrl.u32 %v2646_v29, %v2179_v0  ;;  %v2185_v14 = vshrl.u32 %v2647_v33, %v2179_v0  ;;  %v2188_v7 = vshrl.u32 %v2648_v36, %v2179_v0  ;;  %v2191_v56 = vshrl.u32 %v2649_v39, %v2179_v0 }
 0x913   : > { %v2194_v26 = vshrl.u32 %v2650_v42, %v2179_v0  ;;  %v3494_v29 = vshll.u32 %v2172_v1, 8  ;;  %vm2198_vm7 = vcmp.lt.s32.totalorder %v3481_v4, 3  ;;  %vm2197_vm8 = vcmp.lt.s32.totalorder %v3481_v4, 2 }
 0x914   : > { %v2183_v8 = vor.u32 %v2182_v58, %v2181_v12  ;;  %v2186_v31 = vor.u32 %v2185_v14, %v2184_v6  ;;  %v2189_v54 = vor.u32 %v2188_v7, %v2187_v17  ;;  %v2192_v32 = vor.u32 %v2191_v56, %v2190_v21 }
 0x915   : > { %v2195_v3 = vor.u32 %v2194_v26, %v2193_v22  ;;  %v2213_v13 = vand.u32 65535, %v3494_v29  ;;  %v2214_v10 = vshrl.u32 %v3494_v29, 16  ;;  %v2180_v34 = vshrl.u32 %v2645_v27, %v2179_v0 }
 0x916   : > { %v2204_v33 = vsel %vm2196_vm6, %v2183_v8, %v2186_v31  ;;  %v2208_v36 = vsel %vm2196_vm6, %v2186_v31, %v2189_v54  ;;  %v2205_v39 = vsel %vm2199_vm5, %v2192_v32, 920167782  ;;  %v2201_v28 = vsel %vm2199_vm5, %v2189_v54, 2102212464 }
 0x917   : > { %v2209_v42 = vsel %vm2199_vm5, %v2195_v3, 1326507024  ;;  %v2206_v35 = vsel %vm2198_vm7, %v2189_v54, %v2205_v39  ;;  %v2200_v12 = vsel %vm2196_vm6, %v2180_v34, %v2183_v8  ;;  %v2202_v6 = vsel %vm2198_vm7, %v2186_v31, %v2201_v28 }
 0x918   : > { %v2210_v41 = vsel %vm2198_vm7, %v2192_v32, %v2209_v42  ;;  %v2207_v61 = vsel %vm2197_vm8, %v2204_v33, %v2206_v35  ;;  %v2203_v27 = vsel %vm2197_vm8, %v2200_v12, %v2202_v6  ;;  %vm2307_vm7 = vweird.f32 %v3475_v45 }
 0x919   : > { %v2211_v44 = vsel %vm2197_vm8, %v2208_v36, %v2210_v41  ;;  %v2237_v40 = vand.u32 65535, %v2207_v61  ;;  %v2238_v18 = vshrl.u32 %v2207_v61, 16  ;;  %v2257_v22 = vmul.u32 %v3494_v29, %v2203_v27 }
 0x91a   : > { %v2215_v20 = vand.u32 65535, %v2211_v44  ;;  %v2216_v49 = vshrl.u32 %v2211_v44, 16 }
 0x91b   : > { %v2240_v53 = vmul.u32 %v2238_v18, %v2213_v13  ;;  %v2241_v30 = vmul.u32 %v2237_v40, %v2214_v10  ;;  %v2239_v37 = vmul.u32 %v2237_v40, %v2213_v13  ;;  %v2242_v52 = vmul.u32 %v2238_v18, %v2214_v10 }
 0x91c   : > { %v2218_v9 = vmul.u32 %v2216_v49, %v2213_v13  ;;  %v2219_v46 = vmul.u32 %v2215_v20, %v2214_v10  ;;  %v2217_v43 = vmul.u32 %v2215_v20, %v2213_v13  ;;  %v2220_v50 = vmul.u32 %v2216_v49, %v2214_v10 }
 0x91d   : > { %v2243_v59 = vshll.u32 %v2240_v53, 16  ;;  %v2245_v38 = vshll.u32 %v2241_v30, 16  ;;  %v2244_v15 = vshrl.u32 %v2240_v53, 16  ;;  %v2246_v17 = vshrl.u32 %v2241_v30, 16 }
 0x91e   : > { %v2221_v16 = vshll.u32 %v2218_v9, 16  ;;  %v2223_v62 = vshll.u32 %v2219_v46, 16  ;;  %v2222_v48 = vshrl.u32 %v2218_v9, 16  ;;  %v2224_v58 = vshrl.u32 %v2219_v46, 16 }
 0x91f   : > { %vm2247_vm12 = vc.u32 %v2239_v37, %v2243_v59  ;;  %v2249_v63 = vadd.s32 %v2243_v59, %v2239_v37 }
 0x920   : > { %vm2225_vm11 = vc.u32 %v2217_v43, %v2221_v16  ;;  %v2227_v11 = vadd.s32 %v2221_v16, %v2217_v43  ;;  %v2248_v55 = vsel %vm2247_vm12, 1, %v2643_v2 }
 0x921   : > { %v2226_v23 = vsel %vm2225_vm11, 1, %v2643_v2  ;;  %v2250_v57 = vadd.s32 %v2248_v55, %v2242_v52  ;;  %vm2251_vm14 = vc.u32 %v2249_v63, %v2245_v38  ;;  %v2253_v56 = vadd.s32 %v2249_v63, %v2245_v38 }
 0x922   : > { %v2228_v60 = vadd.s32 %v2226_v23, %v2220_v50  ;;  %vm2229_vm13 = vc.u32 %v2227_v11, %v2223_v62  ;;  %v2252_v47 = vsel %vm2251_vm14, 1, %v2643_v2 }
 0x923   : > { %v2230_v51 = vsel %vm2229_vm13, 1, %v2643_v2  ;;  %v2254_v1 = vadd.s32 %v2252_v47, %v2250_v57 }
 0x924   : > { %v2232_v19 = vadd.s32 %v2230_v51, %v2228_v60 }
 0x925   : > { %v2255_v7 = vadd.s32 %v2254_v1, %v2244_v15 }
 0x926   : > { %v2233_v14 = vadd.s32 %v2232_v19, %v2222_v48 }
 0x927   : > { %v2256_v0 = vadd.s32 %v2255_v7, %v2246_v17 }
 0x928   : > { %v2234_v21 = vadd.s32 %v2233_v14, %v2224_v58  ;;  %v2323_v14 = vpop.permute.xlu2 %2322 }
 0x929   : > { %v2260_v2 = vadd.s32 1, %v2256_v0 }
 0x92a   : > { %vm2259_vm15 = vc.u32 %v2234_v21, %v2253_v56  ;;  %v2258_v4 = vadd.s32 %v2253_v56, %v2234_v21  ;;  %v2499_v21 = vld [vmem:[%s3587_s12 + $0x10] sm:$0xff]  ;;  %v2358_v56 = vpop.permute.xlu0 %2357 }
 0x92b   : > { %v2261_v26 = vsel %vm2259_vm15, %v2260_v2, %v2256_v0 }
 0x92c   : > { %v2262_v54 = vadd.s32 %v2261_v26, %v2257_v22 }
 0x92e   : > { %v2263_v8 = vadd.s32 536870912, %v2262_v54 }
 0x930   : > { %v2264_v32 = vshrl.u32 %v2263_v8, 30 }
 0x932   : > { %v2265_v3 = vshll.u32 %v2264_v32, 30  ;;  %v2288_v30 = vsub.s32 4, %v2264_v32 }
 0x934   : > { %v2266_v31 = vsub.s32 %v2262_v54, %v2265_v3  ;;  %v2289_v59 = vsel %vm2166_vm1, %v2288_v30, %v2264_v32 }
 0x935   : > { %v2291_v52 = vsel %vm2165_vm4, 0, %v2289_v59 }
 0x936   : > { %vm2267_vm0 = vcmp.lt.s32.totalorder %v2266_v31, 0  ;;  %v2268_v33 = vsub.s32 0, %v2266_v31  ;;  %v2308_v55 = vadd.s32 3, %v2291_v52 }
 0x938   : > { %v2269_v36 = vsel %vm2267_vm0, %v2268_v33, %v2266_v31  ;;  %v2309_v34 = vand.u32 3, %v2308_v55 }
 0x939   : > { %v2270_v39 = vclz %v2269_v36 }
 0x93a   : > { %vm2311_vm2 = vcmp.eq.s32.totalorder %v2309_v34, 0  ;;  %vm2314_vm6 = vcmp.eq.s32.totalorder %v2309_v34, 2  ;;  %vm2310_vm5 = vcmp.lt.s32.totalorder %v2309_v34, 2 }
 0x93b   : > { %v2497_v42 = vadd.s32 4294967294, %v2270_v39 }
 0x93d   : > { %vm2498_vm3 = vcmp.lt.s32.totalorder %v2497_v42, 0 }
 0x93e   : > { %v2273_v35 = vsel %vm2498_vm3, 0, %v2497_v42 }
 0x93f   : > { %v2274_v41 = vsub.s32 32, %v2273_v35  ;;  %v2278_v61 = vsub.s32 4294967266, %v2273_v35  ;;  %v2275_v44 = vshll.u32 %v2266_v31, %v2273_v35 }
 0x941   : > { %v2276_v13 = vshrl.u32 %v2258_v4, %v2274_v41  ;;  %v2279_v10 = vadd.s32 127, %v2278_v61 }
 0x943   : > { %v2277_v29 = vor.u32 %v2276_v13, %v2275_v44  ;;  %v2280_v20 = vshll.u32 %v2279_v10, 23 }
 0x945   : > { %v2281_v49 = vor.u32 4788187, %v2280_v20  ;;  %v2284_v18 = vcvt.s32.f32 %v2277_v29 }
 0x947   : > { %v2282_v40 = vand.u32 2147483647, %v2281_v49 }
 0x949   : > { %v2285_v9 = vmul.f32 %v2284_v18, %v2282_v40 }
 0x94b   : > { %v2286_v46 = vxor.u32 2147483648, %v2285_v9 }
 0x94d   : > { %v2287_v53 = vsel %vm2166_vm1, %v2286_v46, %v2285_v9 }
 0x94e   : > { %v2290_v43 = vsel %vm2165_vm4, %v3475_v45, %v2287_v53 }
 0x94f   : > { %v2292_v16 = vmul.f32 %v2290_v43, %v2290_v43 }
 0x951   : > { %v2293_v50 = vmul.f32 -0.001358992, %v2292_v16  ;;  %v2300_v37 = vmul.f32 -0.00019511016, %v2292_v16 }
 0x953   : > { %v2294_v62 = vadd.f32 0.041655596, %v2293_v50  ;;  %v2301_v11 = vadd.f32 0.008332121, %v2300_v37 }
 0x955   : > { %v2295_v23 = vmul.f32 %v2294_v62, %v2292_v16  ;;  %v2302_v38 = vmul.f32 %v2301_v11, %v2292_v16 }
 0x957   : > { %v2296_v63 = vadd.f32 -0.4999988, %v2295_v23  ;;  %v2303_v60 = vadd.f32 -0.16666654, %v2302_v38 }
 0x959   : > { %v2297_v28 = vmul.f32 %v2296_v63, %v2292_v16  ;;  %v2304_v51 = vmul.f32 %v2303_v60, %v2292_v16 }
 0x95b   : > { %v2298_v57 = vadd.f32 1.0, %v2297_v28  ;;  %v2305_v24 = vadd.f32 1.0, %v2304_v51 }
 0x95d   : > { %v2306_v48 = vmul.f32 %v2305_v24, %v2290_v43  ;;  %v2315_v19 = vxor.u32 2147483648, %v2298_v57 }
 0x95f   : > { %v2312_v47 = vxor.u32 2147483648, %v2306_v48  ;;  %v2316_v1 = vsel %vm2314_vm6, %v2315_v19, %v2306_v48 }
 0x961   : > { %v2313_v15 = vsel %vm2311_vm2, %v2298_v57, %v2312_v47 }
 0x962   : > { %v2317_v12 = vsel %vm2310_vm5, %v2313_v15, %v2316_v1 }
 0x963   : > { %v2318_v6 = vsel %vm2307_vm7, nan, %v2317_v12 }
 0x964   : > { %v2319_v58 = vmul.f32 %v2318_v6, %v2318_v6 }
 0x966   : > { %v2325_v17 = vmul.f32 %v2323_v14, %v2319_v58 }
 0x968   : > { %v2326_v7 = vadd.f32 %v2325_v17, %v3472_v25 }
 0x96a   : > { %2347 = vmatpush.msra.mxu1 %v2326_v7 }
 0x96b   : > { %2500 = vmatmul.msk.f32.vlgmr.msra.gmra.mxu1 %vm1409_vm10, %v2499_v21 }
 0x9e8   : > { %v2349_v45 = vpop.f32.mrf.mxu1 }
 0x9e9   : > { %v2352_v25 = vadd.f32 %v2349_v45, %v3376_v5 }
 0x9eb   : > { %v2360_v27 = vadd.f32 %v2358_v56, %v2352_v25 }
 0x9ed   : > { %2361 = vst.msk [vmem:[%s460_s26] sm:$0xff] %vm851_vm9, %v2360_v27 }
 0x9ee   : > { %2606 = shalt.err (!%p2603_p3)
}
 0x9ef   : > { %2507 = dma.vmem_to_hbm [thread:$0]  (%p2779_p5), %s2376_s27, 128, %s2378_s1, %s2363_s18  }
 0x9f0 PF: > { %p2513_p4 = scmp.ge.s32.totalorder %s2641_s16, 2  ;;  %s2389_s28 = sand.u32 1, %s2629_s29  }
 0x9f1   : > { %s2390_s26 = scalar_lea.sflag [#allocation7], %s2389_s28 }
 0x9f2   : > { %p2510_p7 = pnand %p2513_p4, %p2783_p6 }
 0x9f4   : > { %p2511_p8 = pneg %p2510_p7 }
 0x9f6   : > { %2624 = dma.done.wait (%p2511_p8), %s2390_s26, 128  }
 0x9f7   : > { %2626 = vsyncadd (%p2511_p8), %s2390_s26, 4294967168  ;;  %s3613_s20 = sld [smem:[#allocation9_spill]]  ;;  %p24_p9 = scmp.ge.s32.totalorder %s2766_s19, 4  }
 0x9f8   : > { %s3614_s15 = sld [smem:[#allocation10_spill]]  ;;  %s3615_s29 = smov %s2633_s30 }
 0x9f9   : > { %s3617_s16 = smov %s2766_s19  ;;  %26 = sbr.rel (!%p24_p9) target bundleno = 6 (0x6), region = 127 }
 0x9fd   : > { %s3616_s30 = smov %s3613_s20 }
 0x9fe   :  { %2396 = vsyncpa [#allocation7], 1 }
 0x9ff   :  { %2398 = vsyncpa [#allocation7 + $0x1], 1 }

</bundles_post_ra>
